<compile_context>
chip_gen: v6e
topology: v6e:2x2x1
jax: 0.10.0
libtpu: 0.0.40
codegen_flags: <defaults>
</compile_context>

<pallas_src>
import jax
import jax.numpy as jnp
from jax.experimental import pallas as pl
from jax.experimental.pallas import tpu as pltpu

LEAKY_SLOPE = 0.01  # PyTorch nn.LeakyReLU default negative_slope
LAYER_DIMS = [(671, 1024), (1024, 1024), (1024, 512), (512, 128), (128, 30)]
D_IN = LAYER_DIMS[0][0]    # 671
D_OUT = LAYER_DIMS[-1][1]  # 30


def _round_up(x, m):
    return ((x + m - 1) // m) * m


D_IN_PAD = _round_up(D_IN, 128)    # 768
D_OUT_PAD = _round_up(D_OUT, 128)  # 128
# Cap the batch tile so bf16 weights (~4.9 MiB, possibly double-buffered) +
# double-buffered x/out tiles + f32 intermediates stay well under the 32 MiB
# scoped-VMEM limit we request (v7x physical VMEM is 64 MiB).
MAX_BATCH_TILE = 512
VMEM_LIMIT_BYTES = 32 * 1024 * 1024


def _fused_mlp_kernel(x_ref,
                      w0_ref, b0_ref, w1_ref, b1_ref, w2_ref, b2_ref,
                      w3_ref, b3_ref, w4_ref, b4_ref,
                      o_ref):
    """Fully fused 5-layer MLP over one VMEM-resident batch tile.

    Each matmul runs on the MXU with bf16 operands and f32 accumulation;
    bias add and LeakyReLU are done in f32 (VPU); activations are downcast
    to bf16 only at the next MXU input.
    """
    wbs = ((w0_ref, b0_ref), (w1_ref, b1_ref), (w2_ref, b2_ref),
           (w3_ref, b3_ref), (w4_ref, b4_ref))
    n = len(wbs)
    h = x_ref[...]  # bf16 batch tile
    for idx, (w_ref, b_ref) in enumerate(wbs):
        y = jnp.dot(h.astype(jnp.bfloat16), w_ref[...],
                    preferred_element_type=jnp.float32)
        y = y + b_ref[...]  # (1, Dout) f32 bias, broadcasts over batch rows
        if idx < n - 1:     # LeakyReLU after every layer except the last
            y = jnp.where(y > 0, y, LEAKY_SLOPE * y)
        h = y
    o_ref[...] = h.astype(o_ref.dtype)


def init_params(key):
    """Deterministic parameter init (PyTorch-style uniform bounds), f32, unpadded.

    Weights stored (in_features, out_features), i.e. transpose of nn.Linear.weight.
    """
    params = []
    for (din, dout) in LAYER_DIMS:
        key, kw, kb = jax.random.split(key, 3)
        bound = 1.0 / jnp.sqrt(din)
        w = jax.random.uniform(kw, (din, dout), jnp.float32, -bound, bound)
        b = jax.random.uniform(kb, (dout,), jnp.float32, -bound, bound)
        params.append((w, b))
    return params


def pack_params(params_f32):
    """Pad ragged dims to multiples of 128 and cast weights to bf16 (biases f32)."""
    packed = []
    for (w, b) in params_f32:
        din, dout = w.shape
        din_p = _round_up(din, 128)
        dout_p = _round_up(dout, 128)
        w_p = jnp.zeros((din_p, dout_p), jnp.float32).at[:din, :dout].set(w)
        w_p = w_p.astype(jnp.bfloat16)
        b_p = jnp.zeros((1, dout_p), jnp.float32).at[0, :dout].set(b)
        packed.append((w_p, b_p))
    return packed


def _cost_estimate(batch_rows, packed):
    flops = 0
    # x is bf16 (2 B), output f32 (4 B).
    bytes_accessed = batch_rows * D_IN_PAD * 2 + batch_rows * D_OUT_PAD * 4
    for (w, b) in packed:
        din, dout = w.shape
        flops += 2 * batch_rows * din * dout
        bytes_accessed += w.size * w.dtype.itemsize + b.size * b.dtype.itemsize
    return pl.CostEstimate(flops=flops, transcendentals=0,
                           bytes_accessed=bytes_accessed)


@jax.jit
def nn_linear_forward(x, packed):
    """x: (B, 671) f32 -> (B, 30) f32 using padded bf16 weights in `packed`."""
    B = x.shape[0]
    if B <= MAX_BATCH_TILE:
        tile = max(8, _round_up(B, 8))
    else:
        tile = MAX_BATCH_TILE
    Bp = _round_up(max(B, tile), tile)
    n_tiles = Bp // tile

    # Pad batch rows (to a sublane multiple) and input features (671 -> 768),
    # cast to bf16 (first matmul operand is bf16 regardless -> identical math,
    # half the HBM traffic for x).
    x_pad = jnp.zeros((Bp, D_IN_PAD), jnp.bfloat16)
    x_pad = x_pad.at[:B, :D_IN].set(x.astype(jnp.bfloat16))

    flat = []
    for (w, b) in packed:
        flat.extend((w, b))

    out_shape = jax.ShapeDtypeStruct((Bp, D_OUT_PAD), jnp.float32)
    ce = _cost_estimate(Bp, packed)

    if n_tiles == 1:
        # Grid-less: whole problem (weights + one batch tile) lives in VMEM,
        # no per-grid-step pipeline overhead.
        vmem = pl.BlockSpec(memory_space=pltpu.MemorySpace.VMEM)
        out = pl.pallas_call(
            _fused_mlp_kernel,
            out_shape=out_shape,
            in_specs=[vmem] * (1 + len(flat)),
            out_specs=vmem,
            cost_estimate=ce,
        )(x_pad, *flat)
    else:
        # Batch-tiled: weights/biases use constant index_maps so they stay
        # VMEM-resident across grid steps; batch axis is "parallel" (megacore).
        in_specs = [pl.BlockSpec((tile, D_IN_PAD), lambda i: (i, 0))]
        for (w, b) in packed:
            in_specs.append(pl.BlockSpec(w.shape, lambda i: (0, 0)))
            in_specs.append(pl.BlockSpec(b.shape, lambda i: (0, 0)))
        out = pl.pallas_call(
            _fused_mlp_kernel,
            out_shape=out_shape,
            grid=(n_tiles,),
            in_specs=in_specs,
            out_specs=pl.BlockSpec((tile, D_OUT_PAD), lambda i: (i, 0)),
            compiler_params=pltpu.CompilerParams(
                dimension_semantics=("parallel",),
                vmem_limit_bytes=VMEM_LIMIT_BYTES),
            cost_estimate=ce,
        )(x_pad, *flat)

    return out[:B, :D_OUT]


def _reference_forward(x, packed):
    """Pure-JAX reference using the same padded bf16 weights / f32 accumulation."""
    B = x.shape[0]
    h = jnp.zeros((B, D_IN_PAD), jnp.float32).at[:, :D_IN].set(x)
    n = len(packed)
    for idx, (w, b) in enumerate(packed):
        y = jnp.dot(h.astype(jnp.bfloat16), w,
                    preferred_element_type=jnp.float32) + b
        if idx < n - 1:
            y = jnp.where(y > 0, y, LEAKY_SLOPE * y)
        h = y
    return h[:, :D_OUT]


if __name__ == "__main__":
    key = jax.random.PRNGKey(0)
    key, kx = jax.random.split(key)

    batch = 8
    x = jax.random.normal(kx, (batch, D_IN), jnp.float32)

    params = init_params(key)
    packed = pack_params(params)

    out = nn_linear_forward(x, packed)
    jax.block_until_ready(out)

    assert out.shape == (batch, D_OUT), out.shape
    assert out.dtype == jnp.float32, out.dtype
    assert bool(jnp.all(jnp.isfinite(out)))

    # Both paths use bf16 operands with f32 MXU accumulation; allow a generous
    # tolerance for accumulation-order differences.
    ref = _reference_forward(x, packed)
    assert jnp.allclose(out, ref, rtol=2e-2, atol=2e-2), float(
        jnp.max(jnp.abs(out - ref)))

    print("KERNEL_OK")
</pallas_src>

<mosaic_0001>
module attributes {stable_mosaic.version = 11 : i64} {
  func.func @_fused_mlp_kernel(%arg0: memref<8x768xbf16, #tpu.memory_space<vmem>>, %arg1: memref<768x1024xbf16, #tpu.memory_space<vmem>>, %arg2: memref<1x1024xf32, #tpu.memory_space<vmem>>, %arg3: memref<1024x1024xbf16, #tpu.memory_space<vmem>>, %arg4: memref<1x1024xf32, #tpu.memory_space<vmem>>, %arg5: memref<1024x512xbf16, #tpu.memory_space<vmem>>, %arg6: memref<1x512xf32, #tpu.memory_space<vmem>>, %arg7: memref<512x128xbf16, #tpu.memory_space<vmem>>, %arg8: memref<1x128xf32, #tpu.memory_space<vmem>>, %arg9: memref<128x128xbf16, #tpu.memory_space<vmem>>, %arg10: memref<1x128xf32, #tpu.memory_space<vmem>>, %arg11: memref<8x128xf32, #tpu.memory_space<vmem>>) attributes {dimension_semantics = [], scalar_prefetch = 0 : i64, scratch_operands = 0 : i64, tpu.core_type = #tpu.core_type<tc>} {
    %c0 = arith.constant 0 : index
    %c0_0 = arith.constant 0 : index
    %0 = vector.load %arg0[%c0, %c0_0] : memref<8x768xbf16, #tpu.memory_space<vmem>>, vector<8x768xbf16>
    %c0_1 = arith.constant 0 : index
    %c0_2 = arith.constant 0 : index
    %1 = vector.load %arg1[%c0_1, %c0_2] : memref<768x1024xbf16, #tpu.memory_space<vmem>>, vector<768x1024xbf16>
    %cst = arith.constant dense<0.000000e+00> : vector<8x1024xf32>
    %2 = tpu.matmul %0, %1, %cst {dimension_numbers = #tpu.dot_dimension_numbers<[1], [0], [0], [1], [0, 0, 1, 1], [], []>} : vector<8x768xbf16>, vector<768x1024xbf16>, vector<8x1024xf32> -> vector<8x1024xf32>
    %c0_3 = arith.constant 0 : index
    %c0_4 = arith.constant 0 : index
    %3 = vector.load %arg2[%c0_3, %c0_4] : memref<1x1024xf32, #tpu.memory_space<vmem>>, vector<1x1024xf32>
    %4 = vector.broadcast %3 : vector<1x1024xf32> to vector<8x1024xf32>
    %5 = arith.addf %2, %4 : vector<8x1024xf32>
    %cst_5 = arith.constant 0.000000e+00 : f32
    %6 = vector.broadcast %cst_5 : f32 to vector<8x1024xf32>
    %7 = arith.cmpf ogt, %5, %6 : vector<8x1024xf32>
    %cst_6 = arith.constant 0.00999999977 : f32
    %8 = vector.broadcast %cst_6 : f32 to vector<8x1024xf32>
    %9 = arith.mulf %8, %5 : vector<8x1024xf32>
    %10 = arith.select %7, %5, %9 : vector<8x1024xi1>, vector<8x1024xf32>
    %11 = arith.truncf %10 : vector<8x1024xf32> to vector<8x1024xbf16>
    %c0_7 = arith.constant 0 : index
    %c0_8 = arith.constant 0 : index
    %12 = vector.load %arg3[%c0_7, %c0_8] : memref<1024x1024xbf16, #tpu.memory_space<vmem>>, vector<1024x1024xbf16>
    %cst_9 = arith.constant dense<0.000000e+00> : vector<8x1024xf32>
    %13 = tpu.matmul %11, %12, %cst_9 {dimension_numbers = #tpu.dot_dimension_numbers<[1], [0], [0], [1], [0, 0, 1, 1], [], []>} : vector<8x1024xbf16>, vector<1024x1024xbf16>, vector<8x1024xf32> -> vector<8x1024xf32>
    %c0_10 = arith.constant 0 : index
    %c0_11 = arith.constant 0 : index
    %14 = vector.load %arg4[%c0_10, %c0_11] : memref<1x1024xf32, #tpu.memory_space<vmem>>, vector<1x1024xf32>
    %15 = vector.broadcast %14 : vector<1x1024xf32> to vector<8x1024xf32>
    %16 = arith.addf %13, %15 : vector<8x1024xf32>
    %cst_12 = arith.constant 0.000000e+00 : f32
    %17 = vector.broadcast %cst_12 : f32 to vector<8x1024xf32>
    %18 = arith.cmpf ogt, %16, %17 : vector<8x1024xf32>
    %cst_13 = arith.constant 0.00999999977 : f32
    %19 = vector.broadcast %cst_13 : f32 to vector<8x1024xf32>
    %20 = arith.mulf %19, %16 : vector<8x1024xf32>
    %21 = arith.select %18, %16, %20 : vector<8x1024xi1>, vector<8x1024xf32>
    %22 = arith.truncf %21 : vector<8x1024xf32> to vector<8x1024xbf16>
    %c0_14 = arith.constant 0 : index
    %c0_15 = arith.constant 0 : index
    %23 = vector.load %arg5[%c0_14, %c0_15] : memref<1024x512xbf16, #tpu.memory_space<vmem>>, vector<1024x512xbf16>
    %cst_16 = arith.constant dense<0.000000e+00> : vector<8x512xf32>
    %24 = tpu.matmul %22, %23, %cst_16 {dimension_numbers = #tpu.dot_dimension_numbers<[1], [0], [0], [1], [0, 0, 1, 1], [], []>} : vector<8x1024xbf16>, vector<1024x512xbf16>, vector<8x512xf32> -> vector<8x512xf32>
    %c0_17 = arith.constant 0 : index
    %c0_18 = arith.constant 0 : index
    %25 = vector.load %arg6[%c0_17, %c0_18] : memref<1x512xf32, #tpu.memory_space<vmem>>, vector<1x512xf32>
    %26 = vector.broadcast %25 : vector<1x512xf32> to vector<8x512xf32>
    %27 = arith.addf %24, %26 : vector<8x512xf32>
    %cst_19 = arith.constant 0.000000e+00 : f32
    %28 = vector.broadcast %cst_19 : f32 to vector<8x512xf32>
    %29 = arith.cmpf ogt, %27, %28 : vector<8x512xf32>
    %cst_20 = arith.constant 0.00999999977 : f32
    %30 = vector.broadcast %cst_20 : f32 to vector<8x512xf32>
    %31 = arith.mulf %30, %27 : vector<8x512xf32>
    %32 = arith.select %29, %27, %31 : vector<8x512xi1>, vector<8x512xf32>
    %33 = arith.truncf %32 : vector<8x512xf32> to vector<8x512xbf16>
    %c0_21 = arith.constant 0 : index
    %c0_22 = arith.constant 0 : index
    %34 = vector.load %arg7[%c0_21, %c0_22] : memref<512x128xbf16, #tpu.memory_space<vmem>>, vector<512x128xbf16>
    %cst_23 = arith.constant dense<0.000000e+00> : vector<8x128xf32>
    %35 = tpu.matmul %33, %34, %cst_23 {dimension_numbers = #tpu.dot_dimension_numbers<[1], [0], [0], [1], [0, 0, 1, 1], [], []>} : vector<8x512xbf16>, vector<512x128xbf16>, vector<8x128xf32> -> vector<8x128xf32>
    %c0_24 = arith.constant 0 : index
    %c0_25 = arith.constant 0 : index
    %36 = vector.load %arg8[%c0_24, %c0_25] : memref<1x128xf32, #tpu.memory_space<vmem>>, vector<1x128xf32>
    %37 = vector.broadcast %36 : vector<1x128xf32> to vector<8x128xf32>
    %38 = arith.addf %35, %37 : vector<8x128xf32>
    %cst_26 = arith.constant 0.000000e+00 : f32
    %39 = vector.broadcast %cst_26 : f32 to vector<8x128xf32>
    %40 = arith.cmpf ogt, %38, %39 : vector<8x128xf32>
    %cst_27 = arith.constant 0.00999999977 : f32
    %41 = vector.broadcast %cst_27 : f32 to vector<8x128xf32>
    %42 = arith.mulf %41, %38 : vector<8x128xf32>
    %43 = arith.select %40, %38, %42 : vector<8x128xi1>, vector<8x128xf32>
    %44 = arith.truncf %43 : vector<8x128xf32> to vector<8x128xbf16>
    %c0_28 = arith.constant 0 : index
    %c0_29 = arith.constant 0 : index
    %45 = vector.load %arg9[%c0_28, %c0_29] : memref<128x128xbf16, #tpu.memory_space<vmem>>, vector<128x128xbf16>
    %cst_30 = arith.constant dense<0.000000e+00> : vector<8x128xf32>
    %46 = tpu.matmul %44, %45, %cst_30 {dimension_numbers = #tpu.dot_dimension_numbers<[1], [0], [0], [1], [0, 0, 1, 1], [], []>} : vector<8x128xbf16>, vector<128x128xbf16>, vector<8x128xf32> -> vector<8x128xf32>
    %c0_31 = arith.constant 0 : index
    %c0_32 = arith.constant 0 : index
    %47 = vector.load %arg10[%c0_31, %c0_32] : memref<1x128xf32, #tpu.memory_space<vmem>>, vector<1x128xf32>
    %48 = vector.broadcast %47 : vector<1x128xf32> to vector<8x128xf32>
    %49 = arith.addf %46, %48 : vector<8x128xf32>
    %c0_33 = arith.constant 0 : index
    %c0_34 = arith.constant 0 : index
    %50 = vector.load %arg11[%c0_33, %c0_34] : memref<8x128xf32, #tpu.memory_space<vmem>>, vector<8x128xf32>
    tpu.vector_store %arg11[%c0_33, %c0_34], %49 {strides = array<i32>} : memref<8x128xf32, #tpu.memory_space<vmem>>, vector<8x128xf32>,
    return
  }
}

</mosaic_0001>

<bundles_post_ra>
// kernel: nn_linear_forward.1
= control target key start
LH: loop header
LB: loop body
LE: loop exit
PB: predicated region body
PF: predicated region fallthrough
CT: control target
= control target key end

     0   :  { %16 = vsyncpa [#allocation3], 0  ;;  %s11666_s0 = inlined_call_operand.vmem [shape: bf16[8,768], index: 0, kind: input, shape index: {}]   ;;  %s11667_s1 = inlined_call_operand.hbm [shape: bf16[768,1024], index: 1, kind: input, shape index: {}]   ;;  %s11668_s2 = inlined_call_operand.hbm [shape: f32[1,1024], index: 2, kind: input, shape index: {}]   ;;  %s11669_s3 = inlined_call_operand.hbm [shape: bf16[1024,1024], index: 3, kind: input, shape index: {}]   ;;  %s11670_s4 = inlined_call_operand.hbm [shape: f32[1,1024], index: 4, kind: input, shape index: {}]   ;;  %s11671_s5 = inlined_call_operand.hbm [shape: bf16[1024,512], index: 5, kind: input, shape index: {}]   ;;  %s11672_s6 = inlined_call_operand.hbm [shape: f32[1,512], index: 6, kind: input, shape index: {}]   ;;  %s11673_s7 = inlined_call_operand.hbm [shape: bf16[512,128], index: 7, kind: input, shape index: {}]   ;;  %s11674_s8 = inlined_call_operand.hbm [shape: f32[1,128], index: 8, kind: input, shape index: {}]   ;;  %s11675_s9 = inlined_call_operand.hbm [shape: bf16[128,128], index: 9, kind: input, shape index: {}]   ;;  %s11676_s10 = inlined_call_operand.hbm [shape: f32[1,128], index: 10, kind: input, shape index: {}]   ;;  %s11677_s11 = inlined_call_operand.hbm [shape: f32[8,128], index: 11, kind: output, shape index: {}]  }
   0x1   :  { %17 = vsyncpa [#allocation6], 0 }
   0x2   :  { %18 = vsyncpa [#allocation9], 0 }
   0x3   :  { %19 = vsyncpa [#allocation12], 0 }
   0x4   :  { %20 = vsyncpa [#allocation15], 0 }
   0x5   :  { %21 = vsyncpa [#allocation18], 0 }
   0x6   :  { %22 = vsyncpa [#allocation4], 0  ;;  %s11202_s17 = smov [#allocation5]   ;;  %s11203_s19 = smov [#allocation8]  }
   0x7   :  { %s43_s18 = sshll.u32 %s11202_s17, 4  ;;  %s65_s20 = sshll.u32 %s11203_s19, 4  ;;  %s44_s18 = int_to_ptr.vmem [resolvable:$true] %s43_s18  ;;  %s66_s20 = int_to_ptr.vmem [resolvable:$true] %s65_s20 }
   0x8   :  { %s10976_s21 = scalar_lea.vmem %s44_s18, 128  ;;  %p10981_p1 = scmp.lt.s32.totalorder %s44_s18, %s44_s18 }
   0x9   :  { %p10977_p0 = scmp.ne.s32.totalorder %s44_s18, %s10976_s21  ;;  %p10982_p2 = scmp.lt.s32.totalorder %s10976_s21, %s10976_s21 }
   0xb   :  { %p10983_p3 = por %p10982_p2, %p10981_p1 }
   0xd   :  { %p10984_p4 = pnand %p10983_p3, %p10977_p0 }
   0xf   :  { %10987 = shalt.err (!%p10984_p4)
}
  0x10   :  { %46 = dma.hbm_to_vmem [thread:$0]  %s11668_s2, 128, %s44_s18, [#allocation6]  }
  0x11   :  { %s10996_s24 = scalar_lea.vmem %s66_s20, 128  ;;  %p11001_p6 = scmp.lt.s32.totalorder %s66_s20, %s66_s20 }
  0x12   :  { %p10997_p5 = scmp.ne.s32.totalorder %s66_s20, %s10996_s24  ;;  %p11002_p7 = scmp.lt.s32.totalorder %s10996_s24, %s10996_s24 }
  0x14   :  { %p11003_p8 = por %p11002_p7, %p11001_p6 }
  0x16   :  { %p11004_p9 = pnand %p11003_p8, %p10997_p5 }
  0x18   :  { %11007 = shalt.err (!%p11004_p9)
}
  0x19   :  { %68 = dma.hbm_to_vmem [thread:$0]  %s11670_s4, 128, %s66_s20, [#allocation9]  }
  0x1a   :  { %s11204_s27 = smov [#allocation11]   ;;  %s11205_s29 = smov [#allocation14]  }
  0x1b   :  { %s87_s28 = sshll.u32 %s11204_s27, 4  ;;  %s109_s30 = sshll.u32 %s11205_s29, 4  ;;  %s88_s28 = int_to_ptr.vmem [resolvable:$true] %s87_s28  ;;  %s110_s30 = int_to_ptr.vmem [resolvable:$true] %s109_s30 }
  0x1c   :  { %s11016_s12 = scalar_lea.vmem %s88_s28, 64  ;;  %p11021_p11 = scmp.lt.s32.totalorder %s88_s28, %s88_s28 }
  0x1d   :  { %p11017_p10 = scmp.ne.s32.totalorder %s88_s28, %s11016_s12  ;;  %p11022_p12 = scmp.lt.s32.totalorder %s11016_s12, %s11016_s12 }
  0x1f   :  { %p11023_p13 = por %p11022_p12, %p11021_p11 }
  0x21   :  { %p11024_p0 = pnand %p11023_p13, %p11017_p10 }
  0x23   :  { %11027 = shalt.err (!%p11024_p0)
}
  0x24   :  { %90 = dma.hbm_to_vmem [thread:$0]  %s11672_s6, 64, %s88_s28, [#allocation12]  }
  0x25   :  { %s11036_s14 = scalar_lea.vmem %s110_s30, 16  ;;  %s11040_s4 = scalar_lea.vmem %s110_s30, 32 }
  0x26   :  { %p11037_p1 = scmp.ne.s32.totalorder %s110_s30, %s11036_s14  ;;  %p11041_p2 = scmp.lt.s32.totalorder %s110_s30, %s110_s30 }
  0x27   :  { %p11042_p3 = scmp.lt.s32.totalorder %s11040_s4, %s11036_s14 }
  0x29   :  { %p11043_p4 = por %p11042_p3, %p11041_p2 }
  0x2b   :  { %p11044_p5 = pnand %p11043_p4, %p11037_p1 }
  0x2d   :  { %11047 = shalt.err (!%p11044_p5)
}
  0x2e   :  { %112 = dma.hbm_to_vmem [thread:$0]  %s11674_s8, 16, %s110_s30, [#allocation15]  }
  0x2f   :  { %s11206_s17 = smov [#allocation2]  }
  0x30   :  { %s30_s18 = sshll.u32 %s11206_s17, 4  ;;  %s31_s18 = int_to_ptr.vmem [resolvable:$true] %s30_s18 }
  0x31   :  { %s11056_s19 = scalar_lea.vmem %s31_s18, 49152  ;;  %p11061_p7 = scmp.lt.s32.totalorder %s31_s18, %s31_s18 }
  0x32   :  { %p11057_p6 = scmp.ne.s32.totalorder %s31_s18, %s11056_s19  ;;  %p11062_p8 = scmp.lt.s32.totalorder %s11056_s19, %s11056_s19 }
  0x34   :  { %p11063_p9 = por %p11062_p8, %p11061_p7 }
  0x36   :  { %p11064_p10 = pnand %p11063_p9, %p11057_p6 }
  0x38   :  { %11067 = shalt.err (!%p11064_p10)
}
  0x39   :  { %s11207_s6 = smov 512   ;;  %s11208_s20 = smov 32  }
  0x3a   :  { %36 = dma.hbm_to_vmem [thread:$0]  %s11667_s1, 49152, %s31_s18, [#allocation3], %s11207_s6, %s11207_s6, %s11208_s20  }
  0x3b   :  { %s11209_s23 = smov [#allocation7]   ;;  %s11210_s8 = smov [#allocation10]  }
  0x3c   :  { %s52_s24 = sshll.u32 %s11209_s23, 4  ;;  %s74_s25 = sshll.u32 %s11210_s8, 4  ;;  %s53_s24 = int_to_ptr.vmem [resolvable:$true] %s52_s24  ;;  %s75_s25 = int_to_ptr.vmem [resolvable:$true] %s74_s25 }
  0x3d   :  { %s11076_s26 = scalar_lea.vmem %s53_s24, 65536  ;;  %p11081_p12 = scmp.lt.s32.totalorder %s53_s24, %s53_s24 }
  0x3e   :  { %p11077_p11 = scmp.ne.s32.totalorder %s53_s24, %s11076_s26  ;;  %p11082_p13 = scmp.lt.s32.totalorder %s11076_s26, %s11076_s26 }
  0x40   :  { %p11083_p0 = por %p11082_p13, %p11081_p12 }
  0x42   :  { %p11084_p1 = pnand %p11083_p0, %p11077_p11 }
  0x44   :  { %11087 = shalt.err (!%p11084_p1)
}
  0x45   :  { %58 = dma.hbm_to_vmem [thread:$0]  %s11669_s3, 65536, %s53_s24, [#allocation6], %s11207_s6, %s11207_s6, %s11208_s20  }
  0x46   :  { %s11096_s29 = scalar_lea.vmem %s75_s25, 32768  ;;  %p11101_p3 = scmp.lt.s32.totalorder %s75_s25, %s75_s25 }
  0x47   :  { %p11097_p2 = scmp.ne.s32.totalorder %s75_s25, %s11096_s29  ;;  %p11102_p4 = scmp.lt.s32.totalorder %s11096_s29, %s11096_s29 }
  0x49   :  { %p11103_p5 = por %p11102_p4, %p11101_p3 }
  0x4b   :  { %p11104_p6 = pnand %p11103_p5, %p11097_p2 }
  0x4d   :  { %11107 = shalt.err (!%p11104_p6)
}
  0x4e   :  { %s11211_s1 = smov 256   ;;  %s11212_s30 = smov 16  }
  0x4f   :  { %80 = dma.hbm_to_vmem [thread:$0]  %s11671_s5, 32768, %s75_s25, [#allocation9], %s11211_s1, %s11211_s1, %s11212_s30  }
  0x50   :  { %s11213_s13 = smov [#allocation13]  }
  0x51   :  { %s96_s14 = sshll.u32 %s11213_s13, 4  ;;  %s97_s14 = int_to_ptr.vmem [resolvable:$true] %s96_s14 }
  0x52   :  { %s11116_s4 = scalar_lea.vmem %s97_s14, 4096  ;;  %p11121_p8 = scmp.lt.s32.totalorder %s97_s14, %s97_s14 }
  0x53   :  { %p11117_p7 = scmp.ne.s32.totalorder %s97_s14, %s11116_s4  ;;  %p11122_p9 = scmp.lt.s32.totalorder %s11116_s4, %s11116_s4 }
  0x55   :  { %p11123_p10 = por %p11122_p9, %p11121_p8 }
  0x57   :  { %p11124_p11 = pnand %p11123_p10, %p11117_p7 }
  0x59   :  { %11127 = shalt.err (!%p11124_p11)
}
  0x5a   :  { %s11214_s3 = smov 64   ;;  %s11215_s15 = smov 4  }
  0x5b   :  { %102 = dma.hbm_to_vmem [thread:$0]  %s11673_s7, 4096, %s97_s14, [#allocation12], %s11214_s3, %s11214_s3, %s11215_s15  }
  0x5c   :  { %s11216_s18 = smov [#allocation16]   ;;  %s11217_s6 = smov [#allocation17]  }
  0x5d   :  { %s118_s19 = sshll.u32 %s11216_s18, 4  ;;  %s131_s5 = sshll.u32 %s11217_s6, 4  ;;  %s119_s19 = int_to_ptr.vmem [resolvable:$true] %s118_s19  ;;  %s132_s5 = int_to_ptr.vmem [resolvable:$true] %s131_s5 }
  0x5e   :  { %s11136_s20 = scalar_lea.vmem %s119_s19, 1024  ;;  %p11141_p13 = scmp.lt.s32.totalorder %s119_s19, %s119_s19 }
  0x5f   :  { %p11137_p12 = scmp.ne.s32.totalorder %s119_s19, %s11136_s20  ;;  %p11142_p0 = scmp.lt.s32.totalorder %s11136_s20, %s11136_s20 }
  0x61   :  { %p11143_p1 = por %p11142_p0, %p11141_p13 }
  0x63   :  { %p11144_p2 = pnand %p11143_p1, %p11137_p12 }
  0x65   :  { %11147 = shalt.err (!%p11144_p2)
}
  0x66   :  { %124 = dma.hbm_to_vmem [thread:$0]  %s11675_s9, 1024, %s119_s19, [#allocation15], %s11214_s3, %s11214_s3, %s11215_s15  }
  0x67   :  { %s11156_s23 = scalar_lea.vmem %s132_s5, 16  ;;  %s11160_s7 = scalar_lea.vmem %s132_s5, 32 }
  0x68   :  { %p11157_p3 = scmp.ne.s32.totalorder %s132_s5, %s11156_s23  ;;  %p11161_p4 = scmp.lt.s32.totalorder %s132_s5, %s132_s5 }
  0x69   :  { %p11162_p5 = scmp.lt.s32.totalorder %s11160_s7, %s11156_s23 }
  0x6b   :  { %p11163_p6 = por %p11162_p5, %p11161_p4 }
  0x6d   :  { %p11164_p7 = pnand %p11163_p6, %p11157_p3 }
  0x6f   :  { %11167 = shalt.err (!%p11164_p7)
}
  0x70   :  { %134 = dma.hbm_to_vmem [thread:$0]  %s11676_s10, 16, %s132_s5, [#allocation18]  }
  0x71   :  { %11188 = dma.done.wait [#allocation3], 49152  }
  0x72   :  { %11189 = vsyncadd [#allocation3], 4294918144 }
  0x73   :  { %11190 = dma.done.wait [#allocation6], 65664  }
  0x74   :  { %11191 = vsyncadd [#allocation6], 4294901632 }
  0x75   :  { %11192 = dma.done.wait [#allocation9], 32896  }
  0x76   :  { %11193 = vsyncadd [#allocation9], 4294934400 }
  0x77   :  { %11194 = dma.done.wait [#allocation12], 4160  }
  0x78   :  { %11195 = vsyncadd [#allocation12], 4294963136 }
  0x79   :  { %11196 = dma.done.wait [#allocation15], 1040  }
  0x7a   :  { %11197 = vsyncadd [#allocation15], 4294966256 }
  0x7b   :  { %11198 = dma.done.wait [#allocation18], 16  }
  0x7c   :  { %11199 = vsyncadd [#allocation18], 4294967280  ;;  %v225_v0 = vld [vmem:[#allocation2 + $0x1c0] sm:$0xff]  ;;  %v11319_v54 = vld [vmem:[%s11666_s0 + $0x8] sm:$0xff] }
  0x7d   :  { %v229_v1 = vld [vmem:[#allocation2 + $0x1e0] sm:$0xff]  ;;  %v11327_v59 = vcombine.high %v11319_v54, %v11319_v54 }
  0x7e   :  { %v353_v2 = vld [vmem:[#allocation2 + $0x5c0] sm:$0xff]  ;;  %v9306_v3 = vcombine.high %v225_v0, %v229_v1  ;;  %v9305_v5 = vcombine.low %v225_v0, %v229_v1 }
  0x7f   :  { %v357_v4 = vld [vmem:[#allocation2 + $0x5e0] sm:$0xff]  ;;  %2609 = vmatprep.mubr.bf16.mxu1 %v11327_v59 }
  0x80   :  { %v217_v6 = vld [vmem:[#allocation2 + $0x180] sm:$0xff]  ;;  %v9434_v8 = vcombine.high %v353_v2, %v357_v4  ;;  %v9433_v9 = vcombine.low %v353_v2, %v357_v4  ;;  %2536 = vmatprep.subr.bf16.mxu0 %v9306_v3 }
  0x81   :  { %v221_v7 = vld [vmem:[#allocation2 + $0x1a0] sm:$0xff]  ;;  %2537 = vmatpush1.bf16.msra.mxu0 %v9305_v5 }
  0x82   :  { %v9298_v10 = vcombine.high %v217_v6, %v221_v7  ;;  %v345_v11 = vld [vmem:[#allocation2 + $0x580] sm:$0xff]  ;;  %2577 = vmatprep.subr.bf16.mxu1 %v9434_v8  ;;  %v9297_v18 = vcombine.low %v217_v6, %v221_v7 }
  0x83   :  { %v349_v12 = vld [vmem:[#allocation2 + $0x5a0] sm:$0xff]  ;;  %2578 = vmatpush1.bf16.msra.mxu1 %v9433_v9 }
  0x84   :  { %v209_v13 = vld [vmem:[#allocation2 + $0x140] sm:$0xff]  ;;  %v9426_v14 = vcombine.high %v345_v11, %v349_v12  ;;  %2538 = vmatprep.subr.bf16.mxu0 %v9298_v10  ;;  %v9425_v19 = vcombine.low %v345_v11, %v349_v12 }
  0x85   :  { %v213_v15 = vld [vmem:[#allocation2 + $0x160] sm:$0xff]  ;;  %2539 = vmatpush1.bf16.msra.mxu0 %v9297_v18 }
  0x86   :  { %v337_v16 = vld [vmem:[#allocation2 + $0x540] sm:$0xff]  ;;  %v9290_v20 = vcombine.high %v209_v13, %v213_v15  ;;  %2579 = vmatprep.subr.bf16.mxu1 %v9426_v14  ;;  %v9289_v26 = vcombine.low %v209_v13, %v213_v15 }
  0x87   :  { %v341_v17 = vld [vmem:[#allocation2 + $0x560] sm:$0xff]  ;;  %2580 = vmatpush1.bf16.msra.mxu1 %v9425_v19 }
  0x88   :  { %v9418_v21 = vcombine.high %v337_v16, %v341_v17  ;;  %v201_v22 = vld [vmem:[#allocation2 + $0x100] sm:$0xff]  ;;  %2540 = vmatprep.subr.bf16.mxu0 %v9290_v20  ;;  %v9417_v27 = vcombine.low %v337_v16, %v341_v17 }
  0x89   :  { %v205_v23 = vld [vmem:[#allocation2 + $0x120] sm:$0xff]  ;;  %2541 = vmatpush1.bf16.msra.mxu0 %v9289_v26 }
  0x8a   :  { %v329_v24 = vld [vmem:[#allocation2 + $0x500] sm:$0xff]  ;;  %v9282_v28 = vcombine.high %v201_v22, %v205_v23  ;;  %2581 = vmatprep.subr.bf16.mxu1 %v9418_v21  ;;  %v9281_v34 = vcombine.low %v201_v22, %v205_v23 }
  0x8b   :  { %v333_v25 = vld [vmem:[#allocation2 + $0x520] sm:$0xff]  ;;  %2582 = vmatpush1.bf16.msra.mxu1 %v9417_v27 }
  0x8c   :  { %v9410_v29 = vcombine.high %v329_v24, %v333_v25  ;;  %v193_v30 = vld [vmem:[#allocation2 + $0xc0] sm:$0xff]  ;;  %2542 = vmatprep.subr.bf16.mxu0 %v9282_v28  ;;  %v9409_v35 = vcombine.low %v329_v24, %v333_v25 }
  0x8d   :  { %v197_v31 = vld [vmem:[#allocation2 + $0xe0] sm:$0xff]  ;;  %2543 = vmatpush1.bf16.msra.mxu0 %v9281_v34 }
  0x8e   :  { %v321_v32 = vld [vmem:[#allocation2 + $0x4c0] sm:$0xff]  ;;  %v9274_v36 = vcombine.high %v193_v30, %v197_v31  ;;  %2583 = vmatprep.subr.bf16.mxu1 %v9410_v29  ;;  %v9273_v42 = vcombine.low %v193_v30, %v197_v31 }
  0x8f   :  { %v325_v33 = vld [vmem:[#allocation2 + $0x4e0] sm:$0xff]  ;;  %2584 = vmatpush1.bf16.msra.mxu1 %v9409_v35 }
  0x90   :  { %v9402_v37 = vcombine.high %v321_v32, %v325_v33  ;;  %v185_v38 = vld [vmem:[#allocation2 + $0x80] sm:$0xff]  ;;  %2544 = vmatprep.subr.bf16.mxu0 %v9274_v36  ;;  %v9401_v43 = vcombine.low %v321_v32, %v325_v33 }
  0x91   :  { %v189_v39 = vld [vmem:[#allocation2 + $0xa0] sm:$0xff]  ;;  %2545 = vmatpush1.bf16.msra.mxu0 %v9273_v42 }
  0x92   :  { %v313_v40 = vld [vmem:[#allocation2 + $0x480] sm:$0xff]  ;;  %v9266_v44 = vcombine.high %v185_v38, %v189_v39  ;;  %2585 = vmatprep.subr.bf16.mxu1 %v9402_v37  ;;  %v9265_v50 = vcombine.low %v185_v38, %v189_v39 }
  0x93   :  { %v317_v41 = vld [vmem:[#allocation2 + $0x4a0] sm:$0xff]  ;;  %2586 = vmatpush1.bf16.msra.mxu1 %v9401_v43 }
  0x94   :  { %v9394_v45 = vcombine.high %v313_v40, %v317_v41  ;;  %v177_v46 = vld [vmem:[#allocation2 + $0x40] sm:$0xff]  ;;  %2546 = vmatprep.subr.bf16.mxu0 %v9266_v44  ;;  %v9393_v51 = vcombine.low %v313_v40, %v317_v41 }
  0x95   :  { %v181_v47 = vld [vmem:[#allocation2 + $0x60] sm:$0xff]  ;;  %2547 = vmatpush1.bf16.msra.mxu0 %v9265_v50 }
  0x96   :  { %v305_v48 = vld [vmem:[#allocation2 + $0x440] sm:$0xff]  ;;  %v9258_v52 = vcombine.high %v177_v46, %v181_v47  ;;  %2587 = vmatprep.subr.bf16.mxu1 %v9394_v45  ;;  %v9257_v62 = vcombine.low %v177_v46, %v181_v47 }
  0x97   :  { %v309_v49 = vld [vmem:[#allocation2 + $0x460] sm:$0xff]  ;;  %2588 = vmatpush1.bf16.msra.mxu1 %v9393_v51 }
  0x98   :  { %v11314_v53 = vld [vmem:[%s11666_s0] sm:$0xff]  ;;  %v9386_v55 = vcombine.high %v305_v48, %v309_v49  ;;  %2548 = vmatprep.subr.bf16.mxu0 %v9258_v52  ;;  %v9385_v63 = vcombine.low %v305_v48, %v309_v49 }
  0x99   :  { %v169_v56 = vld [vmem:[#allocation2] sm:$0xff]  ;;  %v11323_v58 = vcombine.high %v11314_v53, %v11314_v53  ;;  %2549 = vmatpush1.bf16.msra.mxu0 %v9257_v62 }
  0x9a   :  { %v173_v57 = vld [vmem:[#allocation2 + $0x20] sm:$0xff]  ;;  %2589 = vmatprep.subr.bf16.mxu1 %v9386_v55 }
  0x9b   :  { %v297_v60 = vld [vmem:[#allocation2 + $0x400] sm:$0xff]  ;;  %2568 = vmatprep.mubr.bf16.mxu0 %v11323_v58  ;;  %v9250_v0 = vcombine.high %v169_v56, %v173_v57  ;;  %v9249_v6 = vcombine.low %v169_v56, %v173_v57  ;;  %2590 = vmatpush1.bf16.msra.mxu1 %v9385_v63 }
  0x9c   :  { %v301_v61 = vld [vmem:[#allocation2 + $0x420] sm:$0xff] }
  0x9d   :  { %v9378_v1 = vcombine.high %v297_v60, %v301_v61  ;;  %v289_v2 = vld [vmem:[#allocation2 + $0x3c0] sm:$0xff]  ;;  %2550 = vmatprep.subr.bf16.mxu0 %v9250_v0  ;;  %v9377_v7 = vcombine.low %v297_v60, %v301_v61 }
  0x9e   :  { %v293_v3 = vld [vmem:[#allocation2 + $0x3e0] sm:$0xff]  ;;  %2551 = vmatpush1.bf16.msra.mxu0 %v9249_v6 }
  0x9f   :  { %v417_v4 = vld [vmem:[#allocation2 + $0x7c0] sm:$0xff]  ;;  %v9370_v8 = vcombine.high %v289_v2, %v293_v3  ;;  %2591 = vmatprep.subr.bf16.mxu1 %v9378_v1  ;;  %v9369_v14 = vcombine.low %v289_v2, %v293_v3 }
  0xa0   :  { %v421_v5 = vld [vmem:[#allocation2 + $0x7e0] sm:$0xff]  ;;  %2592 = vmatpush1.bf16.msra.mxu1 %v9377_v7 }
  0xa1   :  { %v9498_v9 = vcombine.high %v417_v4, %v421_v5  ;;  %v281_v10 = vld [vmem:[#allocation2 + $0x380] sm:$0xff]  ;;  %2552 = vmatprep.subr.bf16.mxu0 %v9370_v8  ;;  %v9497_v15 = vcombine.low %v417_v4, %v421_v5  ;;  %v226_v8 = vld [vmem:[#allocation2 + $0x1c8] sm:$0xff] }
  0xa2   :  { %v285_v11 = vld [vmem:[#allocation2 + $0x3a0] sm:$0xff]  ;;  %2553 = vmatpush2.bf16.msra.mxu0 %v9369_v14 }
  0xa3   :  { %v409_v12 = vld [vmem:[#allocation2 + $0x780] sm:$0xff]  ;;  %v9362_v16 = vcombine.high %v281_v10, %v285_v11  ;;  %2593 = vmatprep.subr.bf16.mxu1 %v9498_v9  ;;  %v9361_v22 = vcombine.low %v281_v10, %v285_v11  ;;  %v230_v9 = vld [vmem:[#allocation2 + $0x1e8] sm:$0xff] }
  0xa4   :  { %v413_v13 = vld [vmem:[#allocation2 + $0x7a0] sm:$0xff]  ;;  %2594 = vmatpush2.bf16.msra.mxu1 %v9497_v15 }
  0xa5   :  { %v9490_v17 = vcombine.high %v409_v12, %v413_v13  ;;  %v273_v18 = vld [vmem:[#allocation2 + $0x340] sm:$0xff]  ;;  %2554 = vmatprep.subr.bf16.mxu0 %v9362_v16  ;;  %v9489_v23 = vcombine.low %v409_v12, %v413_v13  ;;  %v9308_v13 = vcombine.high %v226_v8, %v230_v9  ;;  %v11333_v16 = vcombine.low %v11314_v53, %v11314_v53 }
  0xa6   :  { %v277_v19 = vld [vmem:[#allocation2 + $0x360] sm:$0xff]  ;;  %2555 = vmatpush2.bf16.msra.mxu0 %v9361_v22  ;;  %v9307_v22 = vcombine.low %v226_v8, %v230_v9 }
  0xa7   :  { %v401_v20 = vld [vmem:[#allocation2 + $0x740] sm:$0xff]  ;;  %v9354_v24 = vcombine.high %v273_v18, %v277_v19  ;;  %2595 = vmatprep.subr.bf16.mxu1 %v9490_v17  ;;  %v9353_v30 = vcombine.low %v273_v18, %v277_v19  ;;  %v218_v17 = vld [vmem:[#allocation2 + $0x188] sm:$0xff]  ;;  %v11338_v19 = vld [vmem:[%s11666_s0 + $0x10] sm:$0xff]  ;;  %s11220_s0 = smov [#allocation19]  }
  0xa8   :  { %v405_v21 = vld [vmem:[#allocation2 + $0x760] sm:$0xff]  ;;  %2596 = vmatpush2.bf16.msra.mxu1 %v9489_v23  ;;  %v222_v18 = vld [vmem:[#allocation2 + $0x1a8] sm:$0xff]  ;;  %s9229_s29 = sshll.u32 %s11220_s0, 4  ;;  %s9230_s29 = int_to_ptr.vmem [resolvable:$true] %s9229_s29 }
  0xa9   :  { %v9482_v25 = vcombine.high %v401_v20, %v405_v21  ;;  %v265_v26 = vld [vmem:[#allocation2 + $0x300] sm:$0xff]  ;;  %2556 = vmatprep.subr.bf16.mxu0 %v9354_v24  ;;  %v9481_v31 = vcombine.low %v401_v20, %v405_v21  ;;  %v11342_v20 = vcombine.low %v11319_v54, %v11319_v54  ;;  %s11168_s1 = scalar_lea.vmem %s9230_s29, 128  ;;  %p11173_p9 = scmp.lt.s32.totalorder %s9230_s29, %s9230_s29 }
  0xaa   :  { %v269_v27 = vld [vmem:[#allocation2 + $0x320] sm:$0xff]  ;;  %2557 = vmatpush2.bf16.msra.mxu0 %v9353_v30  ;;  %p11169_p8 = scmp.ne.s32.totalorder %s9230_s29, %s11168_s1  ;;  %p11174_p10 = scmp.lt.s32.totalorder %s11168_s1, %s11168_s1 }
  0xab   :  { %v393_v28 = vld [vmem:[#allocation2 + $0x700] sm:$0xff]  ;;  %v9346_v32 = vcombine.high %v265_v26, %v269_v27  ;;  %2597 = vmatprep.subr.bf16.mxu1 %v9482_v25  ;;  %v9345_v38 = vcombine.low %v265_v26, %v269_v27  ;;  %v210_v25 = vld [vmem:[#allocation2 + $0x148] sm:$0xff]  ;;  %v9300_v26 = vcombine.high %v218_v17, %v222_v18 }
  0xac   :  { %v397_v29 = vld [vmem:[#allocation2 + $0x720] sm:$0xff]  ;;  %2598 = vmatpush2.bf16.msra.mxu1 %v9481_v31  ;;  %v214_v27 = vld [vmem:[#allocation2 + $0x168] sm:$0xff]  ;;  %p11175_p11 = por %p11174_p10, %p11173_p9 }
  0xad   :  { %v9474_v33 = vcombine.high %v393_v28, %v397_v29  ;;  %v257_v34 = vld [vmem:[#allocation2 + $0x2c0] sm:$0xff]  ;;  %2558 = vmatprep.subr.bf16.mxu0 %v9346_v32  ;;  %v9473_v39 = vcombine.low %v393_v28, %v397_v29  ;;  %v11346_v28 = vcombine.high %v11338_v19, %v11338_v19  ;;  %v9299_v29 = vcombine.low %v218_v17, %v222_v18 }
  0xae   :  { %v261_v35 = vld [vmem:[#allocation2 + $0x2e0] sm:$0xff]  ;;  %2559 = vmatpush2.bf16.msra.mxu0 %v9345_v38  ;;  %p11176_p12 = pnand %p11175_p11, %p11169_p8 }
  0xaf   :  { %v385_v36 = vld [vmem:[#allocation2 + $0x6c0] sm:$0xff]  ;;  %v9338_v40 = vcombine.high %v257_v34, %v261_v35  ;;  %2599 = vmatprep.subr.bf16.mxu1 %v9474_v33  ;;  %v9337_v46 = vcombine.low %v257_v34, %v261_v35  ;;  %v202_v33 = vld [vmem:[#allocation2 + $0x108] sm:$0xff]  ;;  %v9292_v34 = vcombine.high %v210_v25, %v214_v27 }
  0xb0   :  { %v389_v37 = vld [vmem:[#allocation2 + $0x6e0] sm:$0xff]  ;;  %2600 = vmatpush2.bf16.msra.mxu1 %v9473_v39  ;;  %v206_v35 = vld [vmem:[#allocation2 + $0x128] sm:$0xff] }
  0xb1   :  { %v9466_v41 = vcombine.high %v385_v36, %v389_v37  ;;  %v249_v42 = vld [vmem:[#allocation2 + $0x280] sm:$0xff]  ;;  %2560 = vmatprep.subr.bf16.mxu0 %v9338_v40  ;;  %v9465_v47 = vcombine.low %v385_v36, %v389_v37  ;;  %v9291_v37 = vcombine.low %v210_v25, %v214_v27  ;;  %v286_v25 = vld [vmem:[#allocation2 + $0x3a8] sm:$0xff] }
  0xb2   :  { %v253_v43 = vld [vmem:[#allocation2 + $0x2a0] sm:$0xff]  ;;  %2561 = vmatpush2.bf16.msra.mxu0 %v9337_v46 }
  0xb3   :  { %v377_v44 = vld [vmem:[#allocation2 + $0x680] sm:$0xff]  ;;  %v9330_v48 = vcombine.high %v249_v42, %v253_v43  ;;  %2601 = vmatprep.subr.bf16.mxu1 %v9466_v41  ;;  %v9329_v56 = vcombine.low %v249_v42, %v253_v43  ;;  %v194_v41 = vld [vmem:[#allocation2 + $0xc8] sm:$0xff]  ;;  %v9284_v42 = vcombine.high %v202_v33, %v206_v35 }
  0xb4   :  { %v381_v45 = vld [vmem:[#allocation2 + $0x6a0] sm:$0xff]  ;;  %2602 = vmatpush2.bf16.msra.mxu1 %v9465_v47  ;;  %v198_v43 = vld [vmem:[#allocation2 + $0xe8] sm:$0xff] }
  0xb5   :  { %v9458_v49 = vcombine.high %v377_v44, %v381_v45  ;;  %v241_v50 = vld [vmem:[#allocation2 + $0x240] sm:$0xff]  ;;  %2562 = vmatprep.subr.bf16.mxu0 %v9330_v48  ;;  %v9457_v57 = vcombine.low %v377_v44, %v381_v45  ;;  %v9283_v45 = vcombine.low %v202_v33, %v206_v35  ;;  %v278_v33 = vld [vmem:[#allocation2 + $0x368] sm:$0xff] }
  0xb6   :  { %v245_v51 = vld [vmem:[#allocation2 + $0x260] sm:$0xff]  ;;  %2563 = vmatpush2.bf16.msra.mxu0 %v9329_v56 }
  0xb7   :  { %v369_v52 = vld [vmem:[#allocation2 + $0x640] sm:$0xff]  ;;  %v9322_v60 = vcombine.high %v241_v50, %v245_v51  ;;  %2603 = vmatprep.subr.bf16.mxu1 %v9458_v49  ;;  %v9321_v2 = vcombine.low %v241_v50, %v245_v51  ;;  %v186_v49 = vld [vmem:[#allocation2 + $0x88] sm:$0xff]  ;;  %v9276_v50 = vcombine.high %v194_v41, %v198_v43 }
  0xb8   :  { %v373_v55 = vld [vmem:[#allocation2 + $0x660] sm:$0xff]  ;;  %2604 = vmatpush2.bf16.msra.mxu1 %v9457_v57  ;;  %v190_v51 = vld [vmem:[#allocation2 + $0xa8] sm:$0xff] }
  0xb9   :  { %v9450_v61 = vcombine.high %v369_v52, %v373_v55  ;;  %v233_v62 = vld [vmem:[#allocation2 + $0x200] sm:$0xff]  ;;  %2564 = vmatprep.subr.bf16.mxu0 %v9322_v60  ;;  %v9449_v3 = vcombine.low %v369_v52, %v373_v55  ;;  %v9275_v55 = vcombine.low %v194_v41, %v198_v43  ;;  %v270_v41 = vld [vmem:[#allocation2 + $0x328] sm:$0xff] }
  0xba   :  { %v237_v63 = vld [vmem:[#allocation2 + $0x220] sm:$0xff]  ;;  %2565 = vmatpush2.bf16.msra.mxu0 %v9321_v2 }
  0xbb   :  { %v361_v0 = vld [vmem:[#allocation2 + $0x600] sm:$0xff]  ;;  %v9314_v4 = vcombine.high %v233_v62, %v237_v63  ;;  %2605 = vmatprep.subr.bf16.mxu1 %v9450_v61  ;;  %v9313_v10 = vcombine.low %v233_v62, %v237_v63  ;;  %v178_v61 = vld [vmem:[#allocation2 + $0x48] sm:$0xff]  ;;  %v9268_v62 = vcombine.high %v186_v49, %v190_v51 }
  0xbc   :  { %v365_v1 = vld [vmem:[#allocation2 + $0x620] sm:$0xff]  ;;  %2606 = vmatpush2.bf16.msra.mxu1 %v9449_v3  ;;  %v182_v63 = vld [vmem:[#allocation2 + $0x68] sm:$0xff] }
  0xbd   :  { %v9442_v5 = vcombine.high %v361_v0, %v365_v1  ;;  %v481_v6 = vld [vmem:[#allocation2 + $0x9c0] sm:$0xff]  ;;  %2566 = vmatprep.subr.bf16.mxu0 %v9314_v4  ;;  %v9441_v11 = vcombine.low %v361_v0, %v365_v1  ;;  %v9267_v1 = vcombine.low %v186_v49, %v190_v51  ;;  %v9259_v9 = vcombine.low %v178_v61, %v182_v63  ;;  %v262_v49 = vld [vmem:[#allocation2 + $0x2e8] sm:$0xff] }
  0xbe   :  { %v485_v7 = vld [vmem:[#allocation2 + $0x9e0] sm:$0xff]  ;;  %2567 = vmatpush2.bf16.msra.mxu0 %v9313_v10 }
  0xbf   :  { %v9562_v12 = vcombine.high %v481_v6, %v485_v7  ;;  %2607 = vmatprep.subr.bf16.mxu1 %v9442_v5  ;;  %v473_v14 = vld [vmem:[#allocation2 + $0x980] sm:$0xff]  ;;  %v9561_v21 = vcombine.low %v481_v6, %v485_v7  ;;  %v170_v5 = vld [vmem:[#allocation2 + $0x8] sm:$0xff]  ;;  %v9260_v6 = vcombine.high %v178_v61, %v182_v63 }
  0xc0   :  { %v477_v15 = vld [vmem:[#allocation2 + $0x9a0] sm:$0xff]  ;;  %2608 = vmatpush2.bf16.msra.mxu1 %v9441_v11  ;;  %v174_v7 = vld [vmem:[#allocation2 + $0x28] sm:$0xff] }
  0xc1   :  { %2618 = vmatprep.subr.bf16.mxu0 %v9562_v12  ;;  %v9554_v23 = vcombine.high %v473_v14, %v477_v15  ;;  %v465_v24 = vld [vmem:[#allocation2 + $0x940] sm:$0xff]  ;;  %2659 = vmatprep.subr.bf16.mxu1 %v9308_v13  ;;  %v9553_v54 = vcombine.low %v473_v14, %v477_v15  ;;  %v290_v13 = vld [vmem:[#allocation2 + $0x3c8] sm:$0xff]  ;;  %v9252_v14 = vcombine.high %v170_v5, %v174_v7 }
  0xc2   :  { %v469_v53 = vld [vmem:[#allocation2 + $0x960] sm:$0xff]  ;;  %2569 = vmatmul.mubr.bf16.vlgmr.msra.gmra.mxu0 %v11333_v16  ;;  %v294_v15 = vld [vmem:[#allocation2 + $0x3e8] sm:$0xff]  ;;  %v9251_v18 = vcombine.low %v170_v5, %v174_v7 }
  0xc3   :  { %2610 = vmatmul.mubr.bf16.vlgmr.msra.gmra.mxu1 %v11342_v20  ;;  %2619 = vmatpush1.bf16.msra.mxu0 %v9561_v21  ;;  %v9546_v30 = vcombine.high %v465_v24, %v469_v53  ;;  %v457_v31 = vld [vmem:[#allocation2 + $0x900] sm:$0xff]  ;;  %v9545_v36 = vcombine.low %v465_v24, %v469_v53  ;;  %v282_v24 = vld [vmem:[#allocation2 + $0x388] sm:$0xff]  ;;  %v9372_v53 = vcombine.high %v290_v13, %v294_v15 }
  0xc4   :  { %2660 = vmatpush1.bf16.msra.mxu1 %v9307_v22  ;;  %2620 = vmatprep.subr.bf16.mxu0 %v9554_v23  ;;  %v461_v32 = vld [vmem:[#allocation2 + $0x920] sm:$0xff]  ;;  %v9371_v27 = vcombine.low %v290_v13, %v294_v15  ;;  %v9363_v35 = vcombine.low %v282_v24, %v286_v25  ;;  %v254_v61 = vld [vmem:[#allocation2 + $0x2a8] sm:$0xff] }
  0xc5   :  { %2661 = vmatprep.subr.bf16.mxu1 %v9300_v26  ;;  %2650 = vmatprep.mubr.bf16.mxu0 %v11346_v28  ;;  %v9538_v38 = vcombine.high %v457_v31, %v461_v32  ;;  %v449_v39 = vld [vmem:[#allocation2 + $0x8c0] sm:$0xff]  ;;  %v9537_v44 = vcombine.low %v457_v31, %v461_v32  ;;  %v274_v31 = vld [vmem:[#allocation2 + $0x348] sm:$0xff]  ;;  %v9364_v32 = vcombine.high %v282_v24, %v286_v25 }
  0xc6   :  { %2691 = vmatprep.mubr.bf16.mxu1 %v11323_v58  ;;  %v453_v40 = vld [vmem:[#allocation2 + $0x8e0] sm:$0xff]  ;;  %v9355_v43 = vcombine.low %v274_v31, %v278_v33  ;;  %v246_v5 = vld [vmem:[#allocation2 + $0x268] sm:$0xff] }
  0xc7   :  { %2621 = vmatpush1.bf16.msra.mxu0 %v9553_v54  ;;  %v9530_v46 = vcombine.high %v449_v39, %v453_v40  ;;  %v441_v47 = vld [vmem:[#allocation2 + $0x880] sm:$0xff]  ;;  %v9529_v52 = vcombine.low %v449_v39, %v453_v40  ;;  %v266_v39 = vld [vmem:[#allocation2 + $0x308] sm:$0xff]  ;;  %v9356_v40 = vcombine.high %v274_v31, %v278_v33 }
  0xc8   :  { %2662 = vmatpush1.bf16.msra.mxu1 %v9299_v29  ;;  %2622 = vmatprep.subr.bf16.mxu0 %v9546_v30  ;;  %v445_v48 = vld [vmem:[#allocation2 + $0x8a0] sm:$0xff]  ;;  %v9347_v51 = vcombine.low %v266_v39, %v270_v41  ;;  %v238_v13 = vld [vmem:[#allocation2 + $0x228] sm:$0xff] }
  0xc9   :  { %2663 = vmatprep.subr.bf16.mxu1 %v9292_v34  ;;  %v9522_v56 = vcombine.high %v441_v47, %v445_v48  ;;  %v433_v57 = vld [vmem:[#allocation2 + $0x840] sm:$0xff]  ;;  %v9521_v0 = vcombine.low %v441_v47, %v445_v48  ;;  %v258_v47 = vld [vmem:[#allocation2 + $0x2c8] sm:$0xff]  ;;  %v9348_v48 = vcombine.high %v266_v39, %v270_v41 }
  0xca   :  { %v437_v60 = vld [vmem:[#allocation2 + $0x860] sm:$0xff]  ;;  %v9339_v63 = vcombine.low %v258_v47, %v262_v49  ;;  %v486_v24 = vld [vmem:[#allocation2 + $0x9e8] sm:$0xff] }
  0xcb   :  { %2623 = vmatpush1.bf16.msra.mxu0 %v9545_v36  ;;  %v9514_v2 = vcombine.high %v433_v57, %v437_v60  ;;  %v425_v3 = vld [vmem:[#allocation2 + $0x800] sm:$0xff]  ;;  %v9513_v8 = vcombine.low %v433_v57, %v437_v60  ;;  %v250_v57 = vld [vmem:[#allocation2 + $0x288] sm:$0xff]  ;;  %v9340_v60 = vcombine.high %v258_v47, %v262_v49 }
  0xcc   :  { %2664 = vmatpush1.bf16.msra.mxu1 %v9291_v37  ;;  %2624 = vmatprep.subr.bf16.mxu0 %v9538_v38  ;;  %v429_v4 = vld [vmem:[#allocation2 + $0x820] sm:$0xff]  ;;  %v9331_v7 = vcombine.low %v250_v57, %v254_v61  ;;  %v478_v31 = vld [vmem:[#allocation2 + $0x9a8] sm:$0xff] }
  0xcd   :  { %2665 = vmatprep.subr.bf16.mxu1 %v9284_v42  ;;  %v9506_v10 = vcombine.high %v425_v3, %v429_v4  ;;  %v545_v11 = vld [vmem:[#allocation2 + $0xbc0] sm:$0xff]  ;;  %v9505_v17 = vcombine.low %v425_v3, %v429_v4  ;;  %v242_v3 = vld [vmem:[#allocation2 + $0x248] sm:$0xff]  ;;  %v9332_v4 = vcombine.high %v250_v57, %v254_v61 }
  0xce   :  { %v549_v12 = vld [vmem:[#allocation2 + $0xbe0] sm:$0xff]  ;;  %v9323_v15 = vcombine.low %v242_v3, %v246_v5  ;;  %v466_v39 = vld [vmem:[#allocation2 + $0x948] sm:$0xff] }
  0xcf   :  { %2625 = vmatpush1.bf16.msra.mxu0 %v9537_v44  ;;  %v9626_v21 = vcombine.high %v545_v11, %v549_v12  ;;  %v537_v22 = vld [vmem:[#allocation2 + $0xb80] sm:$0xff]  ;;  %v9625_v26 = vcombine.low %v545_v11, %v549_v12  ;;  %v234_v11 = vld [vmem:[#allocation2 + $0x208] sm:$0xff]  ;;  %v9324_v12 = vcombine.high %v242_v3, %v246_v5 }
  0xd0   :  { %2666 = vmatpush1.bf16.msra.mxu1 %v9283_v45  ;;  %2626 = vmatprep.subr.bf16.mxu0 %v9530_v46  ;;  %v541_v23 = vld [vmem:[#allocation2 + $0xba0] sm:$0xff]  ;;  %v9315_v25 = vcombine.low %v234_v11, %v238_v13  ;;  %v462_v47 = vld [vmem:[#allocation2 + $0x928] sm:$0xff] }
  0xd1   :  { %2667 = vmatprep.subr.bf16.mxu1 %v9276_v50  ;;  %v9618_v54 = vcombine.high %v537_v22, %v541_v23  ;;  %v529_v29 = vld [vmem:[#allocation2 + $0xb40] sm:$0xff]  ;;  %v9617_v34 = vcombine.low %v537_v22, %v541_v23  ;;  %v482_v22 = vld [vmem:[#allocation2 + $0x9c8] sm:$0xff]  ;;  %v9316_v23 = vcombine.high %v234_v11, %v238_v13 }
  0xd2   :  { %v533_v30 = vld [vmem:[#allocation2 + $0xb60] sm:$0xff]  ;;  %v454_v57 = vld [vmem:[#allocation2 + $0x8e8] sm:$0xff] }
  0xd3   :  { %2627 = vmatpush1.bf16.msra.mxu0 %v9529_v52  ;;  %v9610_v36 = vcombine.high %v529_v29, %v533_v30  ;;  %v521_v37 = vld [vmem:[#allocation2 + $0xb00] sm:$0xff]  ;;  %v9609_v42 = vcombine.low %v529_v29, %v533_v30  ;;  %v474_v29 = vld [vmem:[#allocation2 + $0x988] sm:$0xff]  ;;  %v9564_v30 = vcombine.high %v482_v22, %v486_v24 }
  0xd4   :  { %2668 = vmatpush1.bf16.msra.mxu1 %v9275_v55  ;;  %2628 = vmatprep.subr.bf16.mxu0 %v9522_v56  ;;  %v525_v38 = vld [vmem:[#allocation2 + $0xb20] sm:$0xff]  ;;  %v446_v3 = vld [vmem:[#allocation2 + $0x8a8] sm:$0xff] }
  0xd5   :  { %2669 = vmatprep.subr.bf16.mxu1 %v9268_v62  ;;  %v9602_v44 = vcombine.high %v521_v37, %v525_v38  ;;  %v513_v45 = vld [vmem:[#allocation2 + $0xac0] sm:$0xff]  ;;  %v9601_v50 = vcombine.low %v521_v37, %v525_v38  ;;  %v342_v37 = vld [vmem:[#allocation2 + $0x568] sm:$0xff]  ;;  %v9556_v38 = vcombine.high %v474_v29, %v478_v31 }
  0xd6   :  { %v517_v46 = vld [vmem:[#allocation2 + $0xae0] sm:$0xff]  ;;  %v438_v11 = vld [vmem:[#allocation2 + $0x868] sm:$0xff] }
  0xd7   :  { %2629 = vmatpush1.bf16.msra.mxu0 %v9521_v0  ;;  %v9594_v52 = vcombine.high %v513_v45, %v517_v46  ;;  %v505_v55 = vld [vmem:[#allocation2 + $0xa80] sm:$0xff]  ;;  %v9593_v62 = vcombine.low %v513_v45, %v517_v46  ;;  %v458_v45 = vld [vmem:[#allocation2 + $0x908] sm:$0xff] }
  0xd8   :  { %2670 = vmatpush1.bf16.msra.mxu1 %v9267_v1  ;;  %2630 = vmatprep.subr.bf16.mxu0 %v9514_v2  ;;  %v509_v56 = vld [vmem:[#allocation2 + $0xaa0] sm:$0xff]  ;;  %v9539_v61 = vcombine.low %v458_v45, %v462_v47 }
  0xd9   :  { %2671 = vmatprep.subr.bf16.mxu1 %v9260_v6  ;;  %v9586_v0 = vcombine.high %v505_v55, %v509_v56  ;;  %v497_v1 = vld [vmem:[#allocation2 + $0xa40] sm:$0xff]  ;;  %v9585_v6 = vcombine.low %v505_v55, %v509_v56  ;;  %v450_v55 = vld [vmem:[#allocation2 + $0x8c8] sm:$0xff]  ;;  %v9540_v56 = vcombine.high %v458_v45, %v462_v47 }
  0xda   :  { %v501_v2 = vld [vmem:[#allocation2 + $0xa60] sm:$0xff]  ;;  %v9531_v5 = vcombine.low %v450_v55, %v454_v57  ;;  %v534_v45 = vld [vmem:[#allocation2 + $0xb68] sm:$0xff] }
  0xdb   :  { %2631 = vmatpush1.bf16.msra.mxu0 %v9513_v8  ;;  %v9578_v8 = vcombine.high %v497_v1, %v501_v2 }
  0xdc   :  { %2672 = vmatpush1.bf16.msra.mxu1 %v9259_v9  ;;  %2632 = vmatprep.subr.bf16.mxu0 %v9506_v10  ;;  %v489_v9 = vld [vmem:[#allocation2 + $0xa00] sm:$0xff] }
  0xdd   :  { %2673 = vmatprep.subr.bf16.mxu1 %v9252_v14  ;;  %v493_v10 = vld [vmem:[#allocation2 + $0xa20] sm:$0xff]  ;;  %v9577_v14 = vcombine.low %v497_v1, %v501_v2  ;;  %v442_v1 = vld [vmem:[#allocation2 + $0x888] sm:$0xff]  ;;  %v9532_v2 = vcombine.high %v450_v55, %v454_v57 }
  0xde   :  { %v9523_v13 = vcombine.low %v442_v1, %v446_v3  ;;  %v526_v55 = vld [vmem:[#allocation2 + $0xb28] sm:$0xff] }
  0xdf   :  { %2633 = vmatpush1.bf16.msra.mxu0 %v9505_v17  ;;  %v9570_v17 = vcombine.high %v489_v9, %v493_v10 }
  0xe0   :  { %2674 = vmatpush1.bf16.msra.mxu1 %v9251_v18  ;;  %2634 = vmatprep.subr.bf16.mxu0 %v9626_v21  ;;  %v354_v18 = vld [vmem:[#allocation2 + $0x5c8] sm:$0xff] }
  0xe1   :  { %2675 = vmatprep.subr.bf16.mxu1 %v9372_v53  ;;  %v358_v21 = vld [vmem:[#allocation2 + $0x5e8] sm:$0xff]  ;;  %v9569_v53 = vcombine.low %v489_v9, %v493_v10  ;;  %v9524_v10 = vcombine.high %v442_v1, %v446_v3 }
  0xe2   :  { %v9435_v33 = vcombine.low %v354_v18, %v358_v21  ;;  %v434_v9 = vld [vmem:[#allocation2 + $0x848] sm:$0xff] }
  0xe3   :  { %2635 = vmatpush2.bf16.msra.mxu0 %v9625_v26  ;;  %v9436_v26 = vcombine.high %v354_v18, %v358_v21  ;;  %v426_v18 = vld [vmem:[#allocation2 + $0x808] sm:$0xff]  ;;  %v9516_v21 = vcombine.high %v434_v9, %v438_v11 }
  0xe4   :  { %2676 = vmatpush2.bf16.msra.mxu1 %v9371_v27  ;;  %2636 = vmatprep.subr.bf16.mxu0 %v9618_v54  ;;  %v346_v27 = vld [vmem:[#allocation2 + $0x588] sm:$0xff] }
  0xe5   :  { %2677 = vmatprep.subr.bf16.mxu1 %v9364_v32  ;;  %v350_v54 = vld [vmem:[#allocation2 + $0x5a8] sm:$0xff]  ;;  %v11354_v32 = vcombine.low %v11338_v19, %v11338_v19  ;;  %v9555_v19 = vcombine.low %v474_v29, %v478_v31 }
  0xe6   :  { %v9427_v41 = vcombine.low %v346_v27, %v350_v54  ;;  %v550_v29 = vld [vmem:[#allocation2 + $0xbe8] sm:$0xff] }
  0xe7   :  { %2637 = vmatpush2.bf16.msra.mxu0 %v9617_v34  ;;  %v9563_v34 = vcombine.low %v482_v22, %v486_v24  ;;  %v430_v22 = vld [vmem:[#allocation2 + $0x828] sm:$0xff]  ;;  %v9515_v24 = vcombine.low %v434_v9, %v438_v11 }
  0xe8   :  { %2678 = vmatpush2.bf16.msra.mxu1 %v9363_v35  ;;  %2638 = vmatprep.subr.bf16.mxu0 %v9610_v36  ;;  %v9428_v35 = vcombine.high %v346_v27, %v350_v54  ;;  %v338_v36 = vld [vmem:[#allocation2 + $0x548] sm:$0xff]  ;;  %v9508_v54 = vcombine.high %v426_v18, %v430_v22  ;;  %v9507_v31 = vcombine.low %v426_v18, %v430_v22 }
  0xe9   :  { %2679 = vmatprep.subr.bf16.mxu1 %v9356_v40  ;;  %v470_v40 = vld [vmem:[#allocation2 + $0x968] sm:$0xff] }
  0xea   :  { %v9548_v46 = vcombine.high %v466_v39, %v470_v40  ;;  %v9547_v49 = vcombine.low %v466_v39, %v470_v40  ;;  %v546_v27 = vld [vmem:[#allocation2 + $0xbc8] sm:$0xff] }
  0xeb   :  { %2639 = vmatpush2.bf16.msra.mxu0 %v9609_v42  ;;  %v9420_v42 = vcombine.high %v338_v36, %v342_v37  ;;  %v9627_v40 = vcombine.low %v546_v27, %v550_v29  ;;  %v518_v1 = vld [vmem:[#allocation2 + $0xae8] sm:$0xff] }
  0xec   :  { %2680 = vmatpush2.bf16.msra.mxu1 %v9355_v43  ;;  %2640 = vmatprep.subr.bf16.mxu0 %v9602_v44  ;;  %v330_v43 = vld [vmem:[#allocation2 + $0x508] sm:$0xff] }
  0xed   :  { %2681 = vmatprep.subr.bf16.mxu1 %v9348_v48  ;;  %v334_v44 = vld [vmem:[#allocation2 + $0x528] sm:$0xff]  ;;  %v9419_v48 = vcombine.low %v338_v36, %v342_v37  ;;  %v9628_v37 = vcombine.high %v546_v27, %v550_v29 }
  0xee   :  { %v538_v36 = vld [vmem:[#allocation2 + $0xb88] sm:$0xff] }
  0xef   :  { %2641 = vmatpush2.bf16.msra.mxu0 %v9601_v50  ;;  %v9412_v50 = vcombine.high %v330_v43, %v334_v44  ;;  %v510_v9 = vld [vmem:[#allocation2 + $0xaa8] sm:$0xff] }
  0xf0   :  { %2682 = vmatpush2.bf16.msra.mxu1 %v9347_v51  ;;  %2642 = vmatprep.subr.bf16.mxu0 %v9594_v52  ;;  %v322_v51 = vld [vmem:[#allocation2 + $0x4c8] sm:$0xff] }
  0xf1   :  { %2683 = vmatprep.subr.bf16.mxu1 %v9340_v60  ;;  %v326_v52 = vld [vmem:[#allocation2 + $0x4e8] sm:$0xff]  ;;  %v9411_v60 = vcombine.low %v330_v43, %v334_v44 }
  0xf2   :  { %v530_v43 = vld [vmem:[#allocation2 + $0xb48] sm:$0xff] }
  0xf3   :  { %2643 = vmatpush2.bf16.msra.mxu0 %v9593_v62  ;;  %v9404_v62 = vcombine.high %v322_v51, %v326_v52  ;;  %v9611_v57 = vcombine.low %v530_v43, %v534_v45  ;;  %v502_v18 = vld [vmem:[#allocation2 + $0xa68] sm:$0xff] }
  0xf4   :  { %2684 = vmatpush2.bf16.msra.mxu1 %v9339_v63  ;;  %2644 = vmatprep.subr.bf16.mxu0 %v9586_v0  ;;  %v314_v63 = vld [vmem:[#allocation2 + $0x488] sm:$0xff] }
  0xf5   :  { %2685 = vmatprep.subr.bf16.mxu1 %v9332_v4  ;;  %v318_v0 = vld [vmem:[#allocation2 + $0x4a8] sm:$0xff]  ;;  %v9403_v4 = vcombine.low %v322_v51, %v326_v52  ;;  %v9612_v52 = vcombine.high %v530_v43, %v534_v45  ;;  %v351_v43 = vld [vmem:[#allocation2 + $0x5b0] sm:$0xff] }
  0xf6   :  { %v522_v51 = vld [vmem:[#allocation2 + $0xb08] sm:$0xff] }
  0xf7   :  { %2645 = vmatpush2.bf16.msra.mxu0 %v9585_v6  ;;  %v9396_v6 = vcombine.high %v314_v63, %v318_v0  ;;  %v9603_v3 = vcombine.low %v522_v51, %v526_v55  ;;  %v494_v27 = vld [vmem:[#allocation2 + $0xa28] sm:$0xff] }
  0xf8   :  { %2686 = vmatpush2.bf16.msra.mxu1 %v9331_v7  ;;  %2646 = vmatprep.subr.bf16.mxu0 %v9578_v8  ;;  %v306_v7 = vld [vmem:[#allocation2 + $0x448] sm:$0xff] }
  0xf9   :  { %2687 = vmatprep.subr.bf16.mxu1 %v9324_v12  ;;  %v310_v8 = vld [vmem:[#allocation2 + $0x468] sm:$0xff]  ;;  %v9395_v12 = vcombine.low %v314_v63, %v318_v0  ;;  %v9604_v0 = vcombine.high %v522_v51, %v526_v55  ;;  %v343_v51 = vld [vmem:[#allocation2 + $0x570] sm:$0xff] }
  0xfa   :  { %v514_v63 = vld [vmem:[#allocation2 + $0xac8] sm:$0xff] }
  0xfb   :  { %2647 = vmatpush2.bf16.msra.mxu0 %v9577_v14  ;;  %v9388_v14 = vcombine.high %v306_v7, %v310_v8  ;;  %v9595_v11 = vcombine.low %v514_v63, %v518_v1 }
  0xfc   :  { %2688 = vmatpush2.bf16.msra.mxu1 %v9323_v15  ;;  %2648 = vmatprep.subr.bf16.mxu0 %v9570_v17  ;;  %v298_v15 = vld [vmem:[#allocation2 + $0x408] sm:$0xff] }
  0xfd   :  { %2689 = vmatprep.subr.bf16.mxu1 %v9316_v23  ;;  %v302_v17 = vld [vmem:[#allocation2 + $0x428] sm:$0xff]  ;;  %v9387_v23 = vcombine.low %v306_v7, %v310_v8  ;;  %v9596_v8 = vcombine.high %v514_v63, %v518_v1  ;;  %v335_v63 = vld [vmem:[#allocation2 + $0x530] sm:$0xff] }
  0xfe   :  { %v506_v7 = vld [vmem:[#allocation2 + $0xa88] sm:$0xff] }
  0xff   :  { %2649 = vmatpush2.bf16.msra.mxu0 %v9569_v53  ;;  %v9380_v53 = vcombine.high %v298_v15, %v302_v17  ;;  %v9587_v22 = vcombine.low %v506_v7, %v510_v9 }
 0x100   :  { %2690 = vmatpush2.bf16.msra.mxu1 %v9315_v25  ;;  %2700 = vmatprep.subr.bf16.mxu0 %v9436_v26  ;;  %v418_v25 = vld [vmem:[#allocation2 + $0x7c8] sm:$0xff] }
 0x101   :  { %2741 = vmatprep.subr.bf16.mxu1 %v9564_v30  ;;  %v422_v26 = vld [vmem:[#allocation2 + $0x7e8] sm:$0xff]  ;;  %v9379_v30 = vcombine.low %v298_v15, %v302_v17  ;;  %v9588_v17 = vcombine.high %v506_v7, %v510_v9  ;;  %v327_v7 = vld [vmem:[#allocation2 + $0x4f0] sm:$0xff] }
 0x102   :  { %2651 = vmatmul.mubr.bf16.vlgmr.msra.gmra.mxu0 %v11354_v32  ;;  %v9499_v39 = vcombine.low %v418_v25, %v422_v26  ;;  %v498_v15 = vld [vmem:[#allocation2 + $0xa48] sm:$0xff] }
 0x103   :  { %2692 = vmatmul.mubr.bf16.vlgmr.msra.gmra.mxu1 %v11333_v16  ;;  %2701 = vmatpush1.bf16.msra.mxu0 %v9435_v33  ;;  %v9500_v33 = vcombine.high %v418_v25, %v422_v26  ;;  %v490_v25 = vld [vmem:[#allocation2 + $0xa08] sm:$0xff]  ;;  %v9580_v26 = vcombine.high %v498_v15, %v502_v18  ;;  %v9579_v29 = vcombine.low %v498_v15, %v502_v18  ;;  %v319_v15 = vld [vmem:[#allocation2 + $0x4b0] sm:$0xff] }
 0x104   :  { %2742 = vmatpush1.bf16.msra.mxu1 %v9563_v34  ;;  %2702 = vmatprep.subr.bf16.mxu0 %v9428_v35  ;;  %v410_v34 = vld [vmem:[#allocation2 + $0x788] sm:$0xff] }
 0x105   :  { %2743 = vmatprep.subr.bf16.mxu1 %v9556_v38  ;;  %2732 = vmatprep.mubr.bf16.mxu0 %v11327_v59  ;;  %v414_v35 = vld [vmem:[#allocation2 + $0x7a8] sm:$0xff] }
 0x106   :  { %2773 = vmatprep.mubr.bf16.mxu1 %v11346_v28  ;;  %v542_v38 = vld [vmem:[#allocation2 + $0xba8] sm:$0xff] }
 0x107   :  { %2703 = vmatpush1.bf16.msra.mxu0 %v9427_v41  ;;  %v9492_v41 = vcombine.high %v410_v34, %v414_v35  ;;  %v9620_v44 = vcombine.high %v538_v36, %v542_v38  ;;  %v9619_v47 = vcombine.low %v538_v36, %v542_v38  ;;  %v359_v36 = vld [vmem:[#allocation2 + $0x5f0] sm:$0xff]  ;;  %v9571_v38 = vcombine.low %v490_v25, %v494_v27 }
 0x108   :  { %2744 = vmatpush1.bf16.msra.mxu1 %v9555_v19  ;;  %2704 = vmatprep.subr.bf16.mxu0 %v9420_v42  ;;  %v402_v19 = vld [vmem:[#allocation2 + $0x748] sm:$0xff] }
 0x109   :  { %2745 = vmatprep.subr.bf16.mxu1 %v9548_v46  ;;  %v406_v42 = vld [vmem:[#allocation2 + $0x768] sm:$0xff]  ;;  %v9491_v46 = vcombine.low %v410_v34, %v414_v35  ;;  %v355_v34 = vld [vmem:[#allocation2 + $0x5d0] sm:$0xff]  ;;  %v9572_v35 = vcombine.high %v490_v25, %v494_v27 }
 0x10a   :  { %v9437_v45 = vcombine.low %v355_v34, %v359_v36  ;;  %v311_v25 = vld [vmem:[#allocation2 + $0x470] sm:$0xff] }
 0x10b   :  { %2705 = vmatpush1.bf16.msra.mxu0 %v9419_v48  ;;  %v9484_v48 = vcombine.high %v402_v19, %v406_v42 }
 0x10c   :  { %2746 = vmatpush1.bf16.msra.mxu1 %v9547_v49  ;;  %2706 = vmatprep.subr.bf16.mxu0 %v9412_v50  ;;  %v394_v49 = vld [vmem:[#allocation2 + $0x708] sm:$0xff] }
 0x10d   :  { %2747 = vmatprep.subr.bf16.mxu1 %v9540_v56  ;;  %v398_v50 = vld [vmem:[#allocation2 + $0x728] sm:$0xff]  ;;  %v9483_v56 = vcombine.low %v402_v19, %v406_v42  ;;  %v347_v19 = vld [vmem:[#allocation2 + $0x590] sm:$0xff]  ;;  %v9438_v42 = vcombine.high %v355_v34, %v359_v36 }
 0x10e   :  { %v9429_v55 = vcombine.low %v347_v19, %v351_v43  ;;  %v303_v34 = vld [vmem:[#allocation2 + $0x430] sm:$0xff] }
 0x10f   :  { %2707 = vmatpush1.bf16.msra.mxu0 %v9411_v60  ;;  %v9476_v60 = vcombine.high %v394_v49, %v398_v50 }
 0x110   :  { %2748 = vmatpush1.bf16.msra.mxu1 %v9539_v61  ;;  %2708 = vmatprep.subr.bf16.mxu0 %v9404_v62  ;;  %v386_v61 = vld [vmem:[#allocation2 + $0x6c8] sm:$0xff] }
 0x111   :  { %2749 = vmatprep.subr.bf16.mxu1 %v9532_v2  ;;  %v390_v62 = vld [vmem:[#allocation2 + $0x6e8] sm:$0xff]  ;;  %v9475_v2 = vcombine.low %v394_v49, %v398_v50  ;;  %v339_v49 = vld [vmem:[#allocation2 + $0x550] sm:$0xff]  ;;  %v9430_v50 = vcombine.high %v347_v19, %v351_v43 }
 0x112   :  { %v9421_v1 = vcombine.low %v339_v49, %v343_v51  ;;  %v423_v19 = vld [vmem:[#allocation2 + $0x7f0] sm:$0xff] }
 0x113   :  { %2709 = vmatpush1.bf16.msra.mxu0 %v9403_v4  ;;  %v9468_v4 = vcombine.high %v386_v61, %v390_v62 }
 0x114   :  { %2750 = vmatpush1.bf16.msra.mxu1 %v9531_v5  ;;  %2710 = vmatprep.subr.bf16.mxu0 %v9396_v6  ;;  %v378_v5 = vld [vmem:[#allocation2 + $0x688] sm:$0xff] }
 0x115   :  { %2751 = vmatprep.subr.bf16.mxu1 %v9524_v10  ;;  %v382_v6 = vld [vmem:[#allocation2 + $0x6a8] sm:$0xff]  ;;  %v9467_v10 = vcombine.low %v386_v61, %v390_v62  ;;  %v331_v61 = vld [vmem:[#allocation2 + $0x510] sm:$0xff]  ;;  %v9422_v62 = vcombine.high %v339_v49, %v343_v51 }
 0x116   :  { %v9413_v9 = vcombine.low %v331_v61, %v335_v63  ;;  %v415_v49 = vld [vmem:[#allocation2 + $0x7b0] sm:$0xff] }
 0x117   :  { %2711 = vmatpush1.bf16.msra.mxu0 %v9395_v12  ;;  %v9460_v12 = vcombine.high %v378_v5, %v382_v6 }
 0x118   :  { %2752 = vmatpush1.bf16.msra.mxu1 %v9523_v13  ;;  %2712 = vmatprep.subr.bf16.mxu0 %v9388_v14  ;;  %v370_v13 = vld [vmem:[#allocation2 + $0x648] sm:$0xff] }
 0x119   :  { %2753 = vmatprep.subr.bf16.mxu1 %v9516_v21  ;;  %v374_v14 = vld [vmem:[#allocation2 + $0x668] sm:$0xff]  ;;  %v9459_v21 = vcombine.low %v378_v5, %v382_v6  ;;  %v323_v5 = vld [vmem:[#allocation2 + $0x4d0] sm:$0xff]  ;;  %v9414_v6 = vcombine.high %v331_v61, %v335_v63 }
 0x11a   :  { %v9405_v18 = vcombine.low %v323_v5, %v327_v7  ;;  %v407_v61 = vld [vmem:[#allocation2 + $0x770] sm:$0xff] }
 0x11b   :  { %2713 = vmatpush1.bf16.msra.mxu0 %v9387_v23  ;;  %v9452_v23 = vcombine.high %v370_v13, %v374_v14 }
 0x11c   :  { %2754 = vmatpush1.bf16.msra.mxu1 %v9515_v24  ;;  %2714 = vmatprep.subr.bf16.mxu0 %v9380_v53  ;;  %v362_v24 = vld [vmem:[#allocation2 + $0x608] sm:$0xff] }
 0x11d   :  { %2755 = vmatprep.subr.bf16.mxu1 %v9508_v54  ;;  %v366_v53 = vld [vmem:[#allocation2 + $0x628] sm:$0xff]  ;;  %v9451_v54 = vcombine.low %v370_v13, %v374_v14  ;;  %v315_v13 = vld [vmem:[#allocation2 + $0x490] sm:$0xff]  ;;  %v9406_v14 = vcombine.high %v323_v5, %v327_v7 }
 0x11e   :  { %v9397_v27 = vcombine.low %v315_v13, %v319_v15  ;;  %v399_v5 = vld [vmem:[#allocation2 + $0x730] sm:$0xff] }
 0x11f   :  { %2715 = vmatpush1.bf16.msra.mxu0 %v9379_v30  ;;  %v9444_v30 = vcombine.high %v362_v24, %v366_v53 }
 0x120   :  { %2756 = vmatpush1.bf16.msra.mxu1 %v9507_v31  ;;  %2716 = vmatprep.subr.bf16.mxu0 %v9500_v33  ;;  %v227_v31 = vld [vmem:[#allocation2 + $0x1d0] sm:$0xff] }
 0x121   :  { %2757 = vmatprep.subr.bf16.mxu1 %v9628_v37  ;;  %v231_v33 = vld [vmem:[#allocation2 + $0x1f0] sm:$0xff]  ;;  %v9443_v37 = vcombine.low %v362_v24, %v366_v53  ;;  %v9398_v53 = vcombine.high %v315_v13, %v319_v15 }
 0x122   :  { %v307_v24 = vld [vmem:[#allocation2 + $0x450] sm:$0xff] }
 0x123   :  { %2717 = vmatpush2.bf16.msra.mxu0 %v9499_v39  ;;  %v9310_v39 = vcombine.high %v227_v31, %v231_v33  ;;  %v9389_v36 = vcombine.low %v307_v24, %v311_v25  ;;  %v391_v13 = vld [vmem:[#allocation2 + $0x6f0] sm:$0xff] }
 0x124   :  { %2758 = vmatpush2.bf16.msra.mxu1 %v9627_v40  ;;  %2718 = vmatprep.subr.bf16.mxu0 %v9492_v41  ;;  %v219_v40 = vld [vmem:[#allocation2 + $0x190] sm:$0xff] }
 0x125   :  { %2759 = vmatprep.subr.bf16.mxu1 %v9620_v44  ;;  %v223_v41 = vld [vmem:[#allocation2 + $0x1b0] sm:$0xff]  ;;  %v9309_v44 = vcombine.low %v227_v31, %v231_v33  ;;  %v9390_v33 = vcombine.high %v307_v24, %v311_v25 }
 0x126   :  { %v299_v31 = vld [vmem:[#allocation2 + $0x410] sm:$0xff] }
 0x127   :  { %2719 = vmatpush2.bf16.msra.mxu0 %v9491_v46  ;;  %v9302_v46 = vcombine.high %v219_v40, %v223_v41  ;;  %v9381_v43 = vcombine.low %v299_v31, %v303_v34  ;;  %v383_v24 = vld [vmem:[#allocation2 + $0x6b0] sm:$0xff] }
 0x128   :  { %2760 = vmatpush2.bf16.msra.mxu1 %v9619_v47  ;;  %2720 = vmatprep.subr.bf16.mxu0 %v9484_v48  ;;  %v211_v47 = vld [vmem:[#allocation2 + $0x150] sm:$0xff] }
 0x129   :  { %2761 = vmatprep.subr.bf16.mxu1 %v9612_v52  ;;  %v215_v48 = vld [vmem:[#allocation2 + $0x170] sm:$0xff]  ;;  %v9301_v52 = vcombine.low %v219_v40, %v223_v41  ;;  %v9382_v41 = vcombine.high %v299_v31, %v303_v34  ;;  %v555_v34 = vlaneseq }
 0x12a   :  { %v419_v40 = vld [vmem:[#allocation2 + $0x7d0] sm:$0xff] }
 0x12b   :  { %2721 = vmatpush2.bf16.msra.mxu0 %v9483_v56  ;;  %v9294_v56 = vcombine.high %v211_v47, %v215_v48  ;;  %v9501_v51 = vcombine.low %v419_v40, %v423_v19  ;;  %v375_v31 = vld [vmem:[#allocation2 + $0x670] sm:$0xff] }
 0x12c   :  { %2762 = vmatpush2.bf16.msra.mxu1 %v9611_v57  ;;  %2722 = vmatprep.subr.bf16.mxu0 %v9476_v60  ;;  %v203_v57 = vld [vmem:[#allocation2 + $0x110] sm:$0xff] }
 0x12d   :  { %2763 = vmatprep.subr.bf16.mxu1 %v9604_v0  ;;  %v207_v60 = vld [vmem:[#allocation2 + $0x130] sm:$0xff]  ;;  %v9293_v0 = vcombine.low %v211_v47, %v215_v48  ;;  %v9502_v48 = vcombine.high %v419_v40, %v423_v19 }
 0x12e   :  { %v411_v47 = vld [vmem:[#allocation2 + $0x790] sm:$0xff] }
 0x12f   :  { %2723 = vmatpush2.bf16.msra.mxu0 %v9475_v2  ;;  %v9286_v2 = vcombine.high %v203_v57, %v207_v60  ;;  %v9493_v63 = vcombine.low %v411_v47, %v415_v49  ;;  %v363_v40 = vld [vmem:[#allocation2 + $0x610] sm:$0xff] }
 0x130   :  { %2764 = vmatpush2.bf16.msra.mxu1 %v9603_v3  ;;  %2724 = vmatprep.subr.bf16.mxu0 %v9468_v4  ;;  %v195_v3 = vld [vmem:[#allocation2 + $0xd0] sm:$0xff] }
 0x131   :  { %2765 = vmatprep.subr.bf16.mxu1 %v9596_v8  ;;  %v199_v4 = vld [vmem:[#allocation2 + $0xf0] sm:$0xff]  ;;  %v9285_v8 = vcombine.low %v203_v57, %v207_v60  ;;  %v9494_v60 = vcombine.high %v411_v47, %v415_v49  ;;  %v232_v49 = vld [vmem:[#allocation2 + $0x1f8] sm:$0xff] }
 0x132   :  { %v403_v57 = vld [vmem:[#allocation2 + $0x750] sm:$0xff] }
 0x133   :  { %2725 = vmatpush2.bf16.msra.mxu0 %v9467_v10  ;;  %v9278_v10 = vcombine.high %v195_v3, %v199_v4  ;;  %v9485_v7 = vcombine.low %v403_v57, %v407_v61  ;;  %v487_v47 = vld [vmem:[#allocation2 + $0x9f0] sm:$0xff] }
 0x134   :  { %2766 = vmatpush2.bf16.msra.mxu1 %v9595_v11  ;;  %2726 = vmatprep.subr.bf16.mxu0 %v9460_v12  ;;  %v187_v11 = vld [vmem:[#allocation2 + $0x90] sm:$0xff] }
 0x135   :  { %2767 = vmatprep.subr.bf16.mxu1 %v9588_v17  ;;  %v191_v12 = vld [vmem:[#allocation2 + $0xb0] sm:$0xff]  ;;  %v9277_v17 = vcombine.low %v195_v3, %v199_v4  ;;  %v9486_v4 = vcombine.high %v403_v57, %v407_v61 }
 0x136   :  { %v395_v3 = vld [vmem:[#allocation2 + $0x710] sm:$0xff] }
 0x137   :  { %2727 = vmatpush2.bf16.msra.mxu0 %v9459_v21  ;;  %v9270_v21 = vcombine.high %v187_v11, %v191_v12  ;;  %v9477_v15 = vcombine.low %v395_v3, %v399_v5  ;;  %v475_v61 = vld [vmem:[#allocation2 + $0x990] sm:$0xff] }
 0x138   :  { %2768 = vmatpush2.bf16.msra.mxu1 %v9587_v22  ;;  %2728 = vmatprep.subr.bf16.mxu0 %v9452_v23  ;;  %v179_v22 = vld [vmem:[#allocation2 + $0x50] sm:$0xff] }
 0x139   :  { %2769 = vmatprep.subr.bf16.mxu1 %v9580_v26  ;;  %v183_v23 = vld [vmem:[#allocation2 + $0x70] sm:$0xff]  ;;  %v9269_v26 = vcombine.low %v187_v11, %v191_v12 }
 0x13a   :  { %v263_v11 = vld [vmem:[#allocation2 + $0x2f0] sm:$0xff] }
 0x13b   :  { %2729 = vmatpush2.bf16.msra.mxu0 %v9451_v54  ;;  %v9262_v54 = vcombine.high %v179_v22, %v183_v23  ;;  %v387_v12 = vld [vmem:[#allocation2 + $0x6d0] sm:$0xff] }
 0x13c   :  { %2770 = vmatpush2.bf16.msra.mxu1 %v9579_v29  ;;  %2730 = vmatprep.subr.bf16.mxu0 %v9444_v30  ;;  %v171_v29 = vld [vmem:[#allocation2 + $0x10] sm:$0xff]  ;;  %v9469_v25 = vcombine.low %v387_v12, %v391_v13 }
 0x13d   :  { %2771 = vmatprep.subr.bf16.mxu1 %v9572_v35  ;;  %v175_v30 = vld [vmem:[#allocation2 + $0x30] sm:$0xff]  ;;  %v9261_v35 = vcombine.low %v179_v22, %v183_v23 }
 0x13e   :  { %v255_v22 = vld [vmem:[#allocation2 + $0x2b0] sm:$0xff] }
 0x13f   :  { %2731 = vmatpush2.bf16.msra.mxu0 %v9443_v37  ;;  %v9254_v37 = vcombine.high %v171_v29, %v175_v30  ;;  %v379_v23 = vld [vmem:[#allocation2 + $0x690] sm:$0xff] }
 0x140   :  { %2772 = vmatpush2.bf16.msra.mxu1 %v9571_v38  ;;  %2782 = vmatprep.subr.bf16.mxu0 %v9310_v39  ;;  %v291_v38 = vld [vmem:[#allocation2 + $0x3d0] sm:$0xff] }
 0x141   :  { %2823 = vmatprep.subr.bf16.mxu1 %v9438_v42  ;;  %v295_v39 = vld [vmem:[#allocation2 + $0x3f0] sm:$0xff]  ;;  %v9253_v42 = vcombine.low %v171_v29, %v175_v30 }
 0x142   :  { %2733 = vmatmul.mubr.bf16.vlgmr.msra.gmra.mxu0 %v11342_v20  ;;  %v247_v29 = vld [vmem:[#allocation2 + $0x270] sm:$0xff] }
 0x143   :  { %2774 = vmatmul.mubr.bf16.vlgmr.msra.gmra.mxu1 %v11354_v32  ;;  %2783 = vmatpush1.bf16.msra.mxu0 %v9309_v44  ;;  %v9374_v44 = vcombine.high %v291_v38, %v295_v39  ;;  %v371_v30 = vld [vmem:[#allocation2 + $0x650] sm:$0xff] }
 0x144   :  { %2824 = vmatpush1.bf16.msra.mxu1 %v9437_v45  ;;  %2784 = vmatprep.subr.bf16.mxu0 %v9302_v46  ;;  %v283_v45 = vld [vmem:[#allocation2 + $0x390] sm:$0xff] }
 0x145   :  { %2825 = vmatprep.subr.bf16.mxu1 %v9430_v50  ;;  %2814 = vmatprep.mubr.bf16.mxu0 %v11323_v58  ;;  %v287_v46 = vld [vmem:[#allocation2 + $0x3b0] sm:$0xff]  ;;  %v9373_v50 = vcombine.low %v291_v38, %v295_v39 }
 0x146   :  { %2855 = vmatprep.mubr.bf16.mxu1 %v11327_v59  ;;  %v235_v38 = vld [vmem:[#allocation2 + $0x210] sm:$0xff] }
 0x147   :  { %2785 = vmatpush1.bf16.msra.mxu0 %v9301_v52  ;;  %v9366_v52 = vcombine.high %v283_v45, %v287_v46  ;;  %v239_v39 = vld [vmem:[#allocation2 + $0x230] sm:$0xff] }
 0x148   :  { %2826 = vmatpush1.bf16.msra.mxu1 %v9429_v55  ;;  %2786 = vmatprep.subr.bf16.mxu0 %v9294_v56  ;;  %v275_v55 = vld [vmem:[#allocation2 + $0x350] sm:$0xff] }
 0x149   :  { %2827 = vmatprep.subr.bf16.mxu1 %v9422_v62  ;;  %v279_v56 = vld [vmem:[#allocation2 + $0x370] sm:$0xff]  ;;  %v9365_v62 = vcombine.low %v283_v45, %v287_v46 }
 0x14a   :  { %v483_v46 = vld [vmem:[#allocation2 + $0x9d0] sm:$0xff] }
 0x14b   :  { %2787 = vmatpush1.bf16.msra.mxu0 %v9293_v0  ;;  %v9358_v0 = vcombine.high %v275_v55, %v279_v56 }
 0x14c   :  { %2828 = vmatpush1.bf16.msra.mxu1 %v9421_v1  ;;  %2788 = vmatprep.subr.bf16.mxu0 %v9286_v2  ;;  %v267_v1 = vld [vmem:[#allocation2 + $0x310] sm:$0xff] }
 0x14d   :  { %2829 = vmatprep.subr.bf16.mxu1 %v9414_v6  ;;  %v271_v2 = vld [vmem:[#allocation2 + $0x330] sm:$0xff]  ;;  %v9357_v6 = vcombine.low %v275_v55, %v279_v56  ;;  %v11369_v55 = vld [vmem:[#allocation5] sm:$0xff]  ;;  %v9566_v56 = vcombine.high %v483_v46, %v487_v47 }
 0x14f   :  { %2789 = vmatpush1.bf16.msra.mxu0 %v9285_v8  ;;  %v9350_v8 = vcombine.high %v267_v1, %v271_v2 }
 0x150   :  { %2830 = vmatpush1.bf16.msra.mxu1 %v9413_v9  ;;  %2790 = vmatprep.subr.bf16.mxu0 %v9278_v10  ;;  %v259_v9 = vld [vmem:[#allocation2 + $0x2d0] sm:$0xff]  ;;  %v9478_v10 = vcombine.high %v395_v3, %v399_v5 }
 0x151   :  { %2831 = vmatprep.subr.bf16.mxu1 %v9406_v14  ;;  %v9349_v14 = vcombine.low %v267_v1, %v271_v2  ;;  %v9565_v2 = vcombine.low %v483_v46, %v487_v47  ;;  %v447_v46 = vld [vmem:[#allocation2 + $0x8b0] sm:$0xff]  ;;  %v188_v47 = vld [vmem:[#allocation2 + $0x98] sm:$0xff] }
 0x153   :  { %2791 = vmatpush1.bf16.msra.mxu0 %v9277_v17  ;;  %v9342_v17 = vcombine.high %v259_v9, %v263_v11 }
 0x154   :  { %2832 = vmatpush1.bf16.msra.mxu1 %v9405_v18  ;;  %2792 = vmatprep.subr.bf16.mxu0 %v9270_v21  ;;  %v9470_v18 = vcombine.high %v387_v12, %v391_v13  ;;  %v251_v21 = vld [vmem:[#allocation2 + $0x290] sm:$0xff] }
 0x155   :  { %2833 = vmatprep.subr.bf16.mxu1 %v9398_v53  ;;  %v9341_v53 = vcombine.low %v259_v9, %v263_v11  ;;  %v216_v11 = vld [vmem:[#allocation2 + $0x178] sm:$0xff] }
 0x157   :  { %2793 = vmatpush1.bf16.msra.mxu0 %v9269_v26  ;;  %v9334_v26 = vcombine.high %v251_v21, %v255_v22 }
 0x158   :  { %2834 = vmatpush1.bf16.msra.mxu1 %v9397_v27  ;;  %2794 = vmatprep.subr.bf16.mxu0 %v9262_v54  ;;  %v9462_v27 = vcombine.high %v379_v23, %v383_v24  ;;  %v243_v54 = vld [vmem:[#allocation2 + $0x250] sm:$0xff] }
 0x159   :  { %2835 = vmatprep.subr.bf16.mxu1 %v9390_v33  ;;  %v9333_v33 = vcombine.low %v251_v21, %v255_v22  ;;  %v9325_v19 = vcombine.low %v243_v54, %v247_v29 }
 0x15b   :  { %2795 = vmatpush1.bf16.msra.mxu0 %v9261_v35  ;;  %v9461_v35 = vcombine.low %v379_v23, %v383_v24 }
 0x15c   :  { %2836 = vmatpush1.bf16.msra.mxu1 %v9389_v36  ;;  %2796 = vmatprep.subr.bf16.mxu0 %v9254_v37  ;;  %v9326_v36 = vcombine.high %v243_v54, %v247_v29  ;;  %v9454_v37 = vcombine.high %v371_v30, %v375_v31  ;;  %v208_v54 = vld [vmem:[#allocation2 + $0x138] sm:$0xff] }
 0x15d   :  { %2837 = vmatprep.subr.bf16.mxu1 %v9382_v41  ;;  %v367_v41 = vld [vmem:[#allocation2 + $0x630] sm:$0xff] }
 0x15e   :  { %v9446_v45 = vcombine.high %v363_v40, %v367_v41 }
 0x15f   :  { %2797 = vmatpush1.bf16.msra.mxu0 %v9253_v42  ;;  %v11364_v42 = vshrl.u32 %v555_v34, 7 }
 0x160   :  { %2838 = vmatpush1.bf16.msra.mxu1 %v9381_v43  ;;  %2798 = vmatprep.subr.bf16.mxu0 %v9374_v44  ;;  %v9453_v43 = vcombine.low %v371_v30, %v375_v31  ;;  %v9318_v44 = vcombine.high %v235_v38, %v239_v39 }
 0x161   :  { %2839 = vmatprep.subr.bf16.mxu1 %v9502_v48  ;;  %v228_v48 = vld [vmem:[#allocation2 + $0x1d8] sm:$0xff] }
 0x162   :  { %v9312_v57 = vcombine.high %v228_v48, %v232_v49  ;;  %v9311_v3 = vcombine.low %v228_v48, %v232_v49  ;;  %v192_v48 = vld [vmem:[#allocation2 + $0xb8] sm:$0xff] }
 0x163   :  { %2799 = vmatpush2.bf16.msra.mxu0 %v9373_v50  ;;  %v9317_v50 = vcombine.low %v235_v38, %v239_v39  ;;  %v451_v38 = vld [vmem:[#allocation2 + $0x8d0] sm:$0xff] }
 0x164   :  { %2840 = vmatpush2.bf16.msra.mxu1 %v9501_v51  ;;  %2800 = vmatprep.subr.bf16.mxu0 %v9366_v52  ;;  %v11367_v51 = vsub.s32 0, %v11364_v42  ;;  %v9445_v52 = vcombine.low %v363_v40, %v367_v41  ;;  %v455_v39 = vld [vmem:[#allocation2 + $0x8f0] sm:$0xff]  ;;  %v196_v40 = vld [vmem:[#allocation2 + $0xd8] sm:$0xff] }
 0x165   :  { %2841 = vmatprep.subr.bf16.mxu1 %v9494_v60  ;;  %v11372_v60 = vsub.s32 1, %v11364_v42  ;;  %v200_v41 = vld [vmem:[#allocation2 + $0xf8] sm:$0xff]  ;;  %v9533_v49 = vcombine.low %v451_v38, %v455_v39 }
 0x166   :  { %v558_v1 = vrot.slane %v11369_v55, %v11367_v51 }
 0x167   :  { %2801 = vmatpush2.bf16.msra.mxu0 %v9365_v62  ;;  %v479_v62 = vld [vmem:[#allocation2 + $0x9b0] sm:$0xff]  ;;  %v562_v5 = vrot.slane %v11369_v55, %v11372_v60 }
 0x168   :  { %2842 = vmatpush2.bf16.msra.mxu1 %v9493_v63  ;;  %2802 = vmatprep.subr.bf16.mxu0 %v9358_v0  ;;  %v220_v63 = vld [vmem:[#allocation2 + $0x198] sm:$0xff] }
 0x169   :  { %2843 = vmatprep.subr.bf16.mxu1 %v9486_v4  ;;  %v224_v0 = vld [vmem:[#allocation2 + $0x1b8] sm:$0xff]  ;;  %v9558_v4 = vcombine.high %v475_v61, %v479_v62 }
 0x16b   :  { %2803 = vmatpush2.bf16.msra.mxu0 %v9357_v6  ;;  %v9304_v6 = vcombine.high %v220_v63, %v224_v0 }
 0x16c   :  { %2844 = vmatpush2.bf16.msra.mxu1 %v9485_v7  ;;  %2804 = vmatprep.subr.bf16.mxu0 %v9350_v8  ;;  %v467_v7 = vld [vmem:[#allocation2 + $0x950] sm:$0xff] }
 0x16d   :  { %2845 = vmatprep.subr.bf16.mxu1 %v9478_v10  ;;  %v471_v8 = vld [vmem:[#allocation2 + $0x970] sm:$0xff]  ;;  %v212_v10 = vld [vmem:[#allocation2 + $0x158] sm:$0xff] }
 0x16e   :  { %v9296_v24 = vcombine.high %v212_v10, %v216_v11  ;;  %v9549_v31 = vcombine.low %v467_v7, %v471_v8  ;;  %v9295_v34 = vcombine.low %v212_v10, %v216_v11 }
 0x16f   :  { %2805 = vmatpush2.bf16.msra.mxu0 %v9349_v14  ;;  %v9557_v14 = vcombine.low %v475_v61, %v479_v62  ;;  %v439_v61 = vld [vmem:[#allocation2 + $0x870] sm:$0xff]  ;;  %v180_v62 = vld [vmem:[#allocation2 + $0x58] sm:$0xff] }
 0x170   :  { %2846 = vmatpush2.bf16.msra.mxu1 %v9477_v15  ;;  %2806 = vmatprep.subr.bf16.mxu0 %v9342_v17  ;;  %v9303_v17 = vcombine.low %v220_v63, %v224_v0  ;;  %v184_v63 = vld [vmem:[#allocation2 + $0x78] sm:$0xff] }
 0x171   :  { %2847 = vmatprep.subr.bf16.mxu1 %v9470_v18  ;;  %v9550_v18 = vcombine.high %v467_v7, %v471_v8  ;;  %v176_v7 = vld [vmem:[#allocation2 + $0x38] sm:$0xff] }
 0x173   :  { %2807 = vmatpush2.bf16.msra.mxu0 %v9341_v53  ;;  %v459_v53 = vld [vmem:[#allocation2 + $0x910] sm:$0xff] }
 0x174   :  { %2848 = vmatpush2.bf16.msra.mxu1 %v9469_v25  ;;  %2808 = vmatprep.subr.bf16.mxu0 %v9334_v26  ;;  %v463_v25 = vld [vmem:[#allocation2 + $0x930] sm:$0xff] }
 0x175   :  { %2849 = vmatprep.subr.bf16.mxu1 %v9462_v27  ;;  %v204_v27 = vld [vmem:[#allocation2 + $0x118] sm:$0xff] }
 0x177   :  { %2809 = vmatpush2.bf16.msra.mxu0 %v9333_v33 }
 0x178   :  { %2850 = vmatpush2.bf16.msra.mxu1 %v9461_v35  ;;  %2810 = vmatprep.subr.bf16.mxu0 %v9326_v36  ;;  %v9542_v35 = vcombine.high %v459_v53, %v463_v25 }
 0x179   :  { %2851 = vmatprep.subr.bf16.mxu1 %v9454_v37  ;;  %v9288_v37 = vcombine.high %v204_v27, %v208_v54 }
 0x17b   :  { %2811 = vmatpush2.bf16.msra.mxu0 %v9325_v19  ;;  %v9541_v19 = vcombine.low %v459_v53, %v463_v25  ;;  %v543_v53 = vld [vmem:[#allocation2 + $0xbb0] sm:$0xff]  ;;  %v284_v25 = vld [vmem:[#allocation2 + $0x398] sm:$0xff] }
 0x17c   :  { %2852 = vmatpush2.bf16.msra.mxu1 %v9453_v43  ;;  %2812 = vmatprep.subr.bf16.mxu0 %v9318_v44  ;;  %v9534_v43 = vcombine.high %v451_v38, %v455_v39  ;;  %v9280_v44 = vcombine.high %v196_v40, %v200_v41 }
 0x17d   :  { %2853 = vmatprep.subr.bf16.mxu1 %v9446_v45  ;;  %v443_v45 = vld [vmem:[#allocation2 + $0x890] sm:$0xff] }
 0x17e   :  { %v9525_v0 = vcombine.low %v443_v45, %v447_v46 }
 0x17f   :  { %2813 = vmatpush2.bf16.msra.mxu0 %v9317_v50  ;;  %v9279_v50 = vcombine.low %v196_v40, %v200_v41  ;;  %v523_v41 = vld [vmem:[#allocation2 + $0xb10] sm:$0xff] }
 0x180   :  { %2854 = vmatpush2.bf16.msra.mxu1 %v9445_v52  ;;  %2864 = vmatprep.subr.bf16.mxu0 %v9566_v56  ;;  %v9526_v52 = vcombine.high %v443_v45, %v447_v46  ;;  %v9272_v56 = vcombine.high %v188_v47, %v192_v48 }
 0x181   :  { %2905 = vmatprep.subr.bf16.mxu1 %v9312_v57  ;;  %v435_v57 = vld [vmem:[#allocation2 + $0x850] sm:$0xff] }
 0x182   :  { %v2570_v9 = vpop.f32.mrf.mxu0  ;;  %2815 = vmatmul.mubr.bf16.vlgmr.msra.gmra.mxu0 %v11333_v16  ;;  %v9517_v8 = vcombine.low %v435_v57, %v439_v61 }
 0x183   :  { %v2571_v12 = vadd.f32 %v2570_v9, %v558_v1  ;;  %v2611_v13 = vpop.f32.mrf.mxu1  ;;  %2856 = vmatmul.mubr.bf16.vlgmr.msra.gmra.mxu1 %v11342_v20  ;;  %2865 = vmatpush1.bf16.msra.mxu0 %v9565_v2  ;;  %v9271_v1 = vcombine.low %v188_v47, %v192_v48  ;;  %v9518_v2 = vcombine.high %v435_v57, %v439_v61  ;;  %v515_v48 = vld [vmem:[#allocation2 + $0xad0] sm:$0xff] }
 0x184   :  { %2906 = vmatpush1.bf16.msra.mxu1 %v9311_v3  ;;  %v2572_v15 = vpop.f32.mrf.mxu0  ;;  %2866 = vmatprep.subr.bf16.mxu0 %v9558_v4  ;;  %v9264_v3 = vcombine.high %v180_v62, %v184_v63  ;;  %v427_v4 = vld [vmem:[#allocation2 + $0x810] sm:$0xff]  ;;  %v9263_v9 = vcombine.low %v180_v62, %v184_v63 }
 0x185   :  { %v11380_v21 = vadd.f32 %v2611_v13, %v2571_v12  ;;  %v2573_v22 = vadd.f32 %v2572_v15, %v562_v5  ;;  %v2613_v23 = vpop.f32.mrf.mxu1  ;;  %2907 = vmatprep.subr.bf16.mxu1 %v9304_v6  ;;  %2896 = vmatprep.mubr.bf16.mxu0 %v11346_v28  ;;  %v431_v5 = vld [vmem:[#allocation2 + $0x830] sm:$0xff]  ;;  %v172_v6 = vld [vmem:[#allocation2 + $0x18] sm:$0xff] }
 0x186   :  { %v2574_v26 = vpop.f32.mrf.mxu0  ;;  %2937 = vmatprep.mubr.bf16.mxu1 %v11323_v58  ;;  %v9287_v58 = vcombine.low %v204_v27, %v208_v54  ;;  %v9510_v10 = vcombine.high %v427_v4, %v431_v5  ;;  %v9256_v11 = vcombine.high %v172_v6, %v176_v7  ;;  %v547_v12 = vld [vmem:[#allocation2 + $0xbd0] sm:$0xff]  ;;  %v296_v15 = vld [vmem:[#allocation2 + $0x3f8] sm:$0xff] }
 0x187   :  { %v11384_v29 = vadd.f32 %v2613_v23, %v2573_v22  ;;  %v2615_v30 = vpop.f32.mrf.mxu1  ;;  %2867 = vmatpush1.bf16.msra.mxu0 %v9557_v14  ;;  %v551_v13 = vld [vmem:[#allocation2 + $0xbf0] sm:$0xff]  ;;  %v292_v14 = vld [vmem:[#allocation2 + $0x3d8] sm:$0xff] }
 0x188   :  { %2908 = vmatpush1.bf16.msra.mxu1 %v9303_v17  ;;  %v2575_v33 = vpop.f32.mrf.mxu0  ;;  %2868 = vmatprep.subr.bf16.mxu0 %v9550_v18  ;;  %v9509_v17 = vcombine.low %v427_v4, %v431_v5  ;;  %v9255_v18 = vcombine.low %v172_v6, %v176_v7  ;;  %v9630_v22 = vcombine.high %v547_v12, %v551_v13  ;;  %v288_v26 = vld [vmem:[#allocation2 + $0x3b8] sm:$0xff]  ;;  %v507_v63 = vld [vmem:[#allocation2 + $0xa90] sm:$0xff] }
 0x189   :  { %v2616_v36 = vpop.f32.mrf.mxu1  ;;  %2909 = vmatprep.subr.bf16.mxu1 %v9296_v24  ;;  %v9376_v23 = vcombine.high %v292_v14, %v296_v15  ;;  %v539_v24 = vld [vmem:[#allocation2 + $0xb90] sm:$0xff]  ;;  %v9629_v27 = vcombine.low %v547_v12, %v551_v13  ;;  %v9375_v54 = vcombine.low %v292_v14, %v296_v15  ;;  %v9367_v38 = vcombine.low %v284_v25, %v288_v26 }
 0x18a   :  { %v9622_v30 = vcombine.high %v539_v24, %v543_v53  ;;  %v531_v33 = vld [vmem:[#allocation2 + $0xb50] sm:$0xff]  ;;  %v280_v36 = vld [vmem:[#allocation2 + $0x378] sm:$0xff] }
 0x18b   :  { %2869 = vmatpush1.bf16.msra.mxu0 %v9549_v31  ;;  %v9368_v31 = vcombine.high %v284_v25, %v288_v26  ;;  %v499_v7 = vld [vmem:[#allocation2 + $0xa50] sm:$0xff]  ;;  %v356_v26 = vld [vmem:[#allocation2 + $0x5d8] sm:$0xff] }
 0x18c   :  { %2910 = vmatpush1.bf16.msra.mxu1 %v9295_v34  ;;  %2870 = vmatprep.subr.bf16.mxu0 %v9542_v35  ;;  %v535_v34 = vld [vmem:[#allocation2 + $0xb70] sm:$0xff]  ;;  %v276_v35 = vld [vmem:[#allocation2 + $0x358] sm:$0xff] }
 0x18d   :  { %2911 = vmatprep.subr.bf16.mxu1 %v9288_v37  ;;  %v9621_v37 = vcombine.low %v539_v24, %v543_v53  ;;  %v9614_v39 = vcombine.high %v531_v33, %v535_v34  ;;  %v9360_v40 = vcombine.high %v276_v35, %v280_v36  ;;  %v9359_v45 = vcombine.low %v276_v35, %v280_v36  ;;  %v491_v15 = vld [vmem:[#allocation2 + $0xa10] sm:$0xff]  ;;  %v348_v36 = vld [vmem:[#allocation2 + $0x598] sm:$0xff] }
 0x18f   :  { %2871 = vmatpush1.bf16.msra.mxu0 %v9541_v19  ;;  %v527_v19 = vld [vmem:[#allocation2 + $0xb30] sm:$0xff] }
 0x190   :  { %2912 = vmatpush1.bf16.msra.mxu1 %v9287_v58  ;;  %2872 = vmatprep.subr.bf16.mxu0 %v9534_v43  ;;  %v268_v58 = vld [vmem:[#allocation2 + $0x318] sm:$0xff]  ;;  %v9606_v46 = vcombine.high %v523_v41, %v527_v19 }
 0x191   :  { %2913 = vmatprep.subr.bf16.mxu1 %v9280_v44  ;;  %v272_v43 = vld [vmem:[#allocation2 + $0x338] sm:$0xff]  ;;  %v9613_v44 = vcombine.low %v531_v33, %v535_v34 }
 0x192   :  { %v9352_v47 = vcombine.high %v268_v58, %v272_v43  ;;  %v9351_v57 = vcombine.low %v268_v58, %v272_v43  ;;  %v340_v43 = vld [vmem:[#allocation2 + $0x558] sm:$0xff] }
 0x193   :  { %2873 = vmatpush1.bf16.msra.mxu0 %v9533_v49  ;;  %v519_v49 = vld [vmem:[#allocation2 + $0xaf0] sm:$0xff] }
 0x194   :  { %2914 = vmatpush1.bf16.msra.mxu1 %v9279_v50  ;;  %2874 = vmatprep.subr.bf16.mxu0 %v9526_v52  ;;  %v260_v50 = vld [vmem:[#allocation2 + $0x2d8] sm:$0xff]  ;;  %v9598_v61 = vcombine.high %v515_v48, %v519_v49 }
 0x195   :  { %2915 = vmatprep.subr.bf16.mxu1 %v9272_v56  ;;  %v264_v52 = vld [vmem:[#allocation2 + $0x2f8] sm:$0xff]  ;;  %v9605_v56 = vcombine.low %v523_v41, %v527_v19 }
 0x196   :  { %v9344_v62 = vcombine.high %v260_v50, %v264_v52  ;;  %v9343_v4 = vcombine.low %v260_v50, %v264_v52 }
 0x197   :  { %2875 = vmatpush1.bf16.msra.mxu0 %v9525_v0  ;;  %v511_v0 = vld [vmem:[#allocation2 + $0xab0] sm:$0xff] }
 0x198   :  { %2916 = vmatpush1.bf16.msra.mxu1 %v9271_v1  ;;  %2876 = vmatprep.subr.bf16.mxu0 %v9518_v2  ;;  %v252_v1 = vld [vmem:[#allocation2 + $0x298] sm:$0xff]  ;;  %v9590_v5 = vcombine.high %v507_v63, %v511_v0 }
 0x199   :  { %2917 = vmatprep.subr.bf16.mxu1 %v9264_v3  ;;  %v256_v2 = vld [vmem:[#allocation2 + $0x2b8] sm:$0xff]  ;;  %v9597_v3 = vcombine.low %v515_v48, %v519_v49 }
 0x19a   :  { %v9336_v6 = vcombine.high %v252_v1, %v256_v2  ;;  %v9335_v12 = vcombine.low %v252_v1, %v256_v2  ;;  %v460_v1 = vld [vmem:[#allocation2 + $0x918] sm:$0xff] }
 0x19b   :  { %2877 = vmatpush1.bf16.msra.mxu0 %v9517_v8  ;;  %v503_v8 = vld [vmem:[#allocation2 + $0xa70] sm:$0xff]  ;;  %v464_v2 = vld [vmem:[#allocation2 + $0x938] sm:$0xff] }
 0x19c   :  { %2918 = vmatpush1.bf16.msra.mxu1 %v9263_v9  ;;  %2878 = vmatprep.subr.bf16.mxu0 %v9510_v10  ;;  %v244_v9 = vld [vmem:[#allocation2 + $0x258] sm:$0xff]  ;;  %v9582_v13 = vcombine.high %v499_v7, %v503_v8 }
 0x19d   :  { %2919 = vmatprep.subr.bf16.mxu1 %v9256_v11  ;;  %v248_v10 = vld [vmem:[#allocation2 + $0x278] sm:$0xff]  ;;  %v9589_v11 = vcombine.low %v507_v63, %v511_v0 }
 0x19e   :  { %v9328_v14 = vcombine.high %v244_v9, %v248_v10  ;;  %v9327_v24 = vcombine.low %v244_v9, %v248_v10  ;;  %v332_v63 = vld [vmem:[#allocation2 + $0x518] sm:$0xff] }
 0x19f   :  { %2879 = vmatpush1.bf16.msra.mxu0 %v9509_v17  ;;  %v495_v17 = vld [vmem:[#allocation2 + $0xa30] sm:$0xff]  ;;  %v336_v0 = vld [vmem:[#allocation2 + $0x538] sm:$0xff] }
 0x1a0   :  { %2920 = vmatpush1.bf16.msra.mxu1 %v9255_v18  ;;  %2880 = vmatprep.subr.bf16.mxu0 %v9630_v22  ;;  %v236_v18 = vld [vmem:[#allocation2 + $0x218] sm:$0xff]  ;;  %v9574_v53 = vcombine.high %v491_v15, %v495_v17 }
 0x1a1   :  { %2921 = vmatprep.subr.bf16.mxu1 %v9376_v23  ;;  %v240_v22 = vld [vmem:[#allocation2 + $0x238] sm:$0xff]  ;;  %v9581_v23 = vcombine.low %v499_v7, %v503_v8  ;;  %v9544_v8 = vcombine.high %v460_v1, %v464_v2 }
 0x1a2   :  { %v9320_v25 = vcombine.high %v236_v18, %v240_v22  ;;  %v9319_v33 = vcombine.low %v236_v18, %v240_v22  ;;  %v324_v9 = vld [vmem:[#allocation2 + $0x4d8] sm:$0xff] }
 0x1a3   :  { %2881 = vmatpush2.bf16.msra.mxu0 %v9629_v27  ;;  %v360_v27 = vld [vmem:[#allocation2 + $0x5f8] sm:$0xff] }
 0x1a4   :  { %2922 = vmatpush2.bf16.msra.mxu1 %v9375_v54  ;;  %2882 = vmatprep.subr.bf16.mxu0 %v9622_v30  ;;  %v484_v54 = vld [vmem:[#allocation2 + $0x9d8] sm:$0xff]  ;;  %v9440_v34 = vcombine.high %v356_v26, %v360_v27 }
 0x1a5   :  { %2923 = vmatprep.subr.bf16.mxu1 %v9368_v31  ;;  %v488_v30 = vld [vmem:[#allocation2 + $0x9f8] sm:$0xff]  ;;  %v9573_v31 = vcombine.low %v491_v15, %v495_v17 }
 0x1a6   :  { %v9568_v35 = vcombine.high %v484_v54, %v488_v30  ;;  %v9567_v41 = vcombine.low %v484_v54, %v488_v30  ;;  %v328_v10 = vld [vmem:[#allocation2 + $0x4f8] sm:$0xff] }
 0x1a7   :  { %2883 = vmatpush2.bf16.msra.mxu0 %v9621_v37  ;;  %v352_v37 = vld [vmem:[#allocation2 + $0x5b8] sm:$0xff] }
 0x1a8   :  { %2924 = vmatpush2.bf16.msra.mxu1 %v9367_v38  ;;  %2884 = vmatprep.subr.bf16.mxu0 %v9614_v39  ;;  %v476_v38 = vld [vmem:[#allocation2 + $0x998] sm:$0xff]  ;;  %v9432_v19 = vcombine.high %v348_v36, %v352_v37  ;;  %v9431_v50 = vcombine.low %v348_v36, %v352_v37 }
 0x1a9   :  { %2925 = vmatprep.subr.bf16.mxu1 %v9360_v40  ;;  %v480_v39 = vld [vmem:[#allocation2 + $0x9b8] sm:$0xff]  ;;  %v9439_v40 = vcombine.low %v356_v26, %v360_v27 }
 0x1aa   :  { %v9560_v58 = vcombine.high %v476_v38, %v480_v39  ;;  %v316_v15 = vld [vmem:[#allocation2 + $0x498] sm:$0xff] }
 0x1ab   :  { %2885 = vmatpush2.bf16.msra.mxu0 %v9613_v44  ;;  %v344_v44 = vld [vmem:[#allocation2 + $0x578] sm:$0xff] }
 0x1ac   :  { %2926 = vmatpush2.bf16.msra.mxu1 %v9359_v45  ;;  %2886 = vmatprep.subr.bf16.mxu0 %v9606_v46  ;;  %v468_v46 = vld [vmem:[#allocation2 + $0x958] sm:$0xff] }
 0x1ad   :  { %2927 = vmatprep.subr.bf16.mxu1 %v9352_v47  ;;  %v472_v47 = vld [vmem:[#allocation2 + $0x978] sm:$0xff] }
 0x1ae   :  { %v320_v17 = vld [vmem:[#allocation2 + $0x4b8] sm:$0xff] }
 0x1af   :  { %2887 = vmatpush2.bf16.msra.mxu0 %v9605_v56  ;;  %v9559_v56 = vcombine.low %v476_v38, %v480_v39  ;;  %v444_v18 = vld [vmem:[#allocation2 + $0x898] sm:$0xff] }
 0x1b0   :  { %2928 = vmatpush2.bf16.msra.mxu1 %v9351_v57  ;;  %2888 = vmatprep.subr.bf16.mxu0 %v9598_v61  ;;  %v9424_v57 = vcombine.high %v340_v43, %v344_v44  ;;  %v448_v22 = vld [vmem:[#allocation2 + $0x8b8] sm:$0xff] }
 0x1b1   :  { %2929 = vmatprep.subr.bf16.mxu1 %v9344_v62  ;;  %v9552_v62 = vcombine.high %v468_v46, %v472_v47  ;;  %v308_v26 = vld [vmem:[#allocation2 + $0x458] sm:$0xff] }
 0x1b2   :  { %v312_v27 = vld [vmem:[#allocation2 + $0x478] sm:$0xff] }
 0x1b3   :  { %2889 = vmatpush2.bf16.msra.mxu0 %v9597_v3  ;;  %v9423_v3 = vcombine.low %v340_v43, %v344_v44  ;;  %v436_v54 = vld [vmem:[#allocation2 + $0x858] sm:$0xff] }
 0x1b4   :  { %2930 = vmatpush2.bf16.msra.mxu1 %v9343_v4  ;;  %2890 = vmatprep.subr.bf16.mxu0 %v9590_v5  ;;  %v9551_v5 = vcombine.low %v468_v46, %v472_v47  ;;  %v440_v30 = vld [vmem:[#allocation2 + $0x878] sm:$0xff] }
 0x1b5   :  { %2931 = vmatprep.subr.bf16.mxu1 %v9336_v6  ;;  %v9416_v6 = vcombine.high %v332_v63, %v336_v0  ;;  %v300_v36 = vld [vmem:[#allocation2 + $0x418] sm:$0xff] }
 0x1b6   :  { %v304_v37 = vld [vmem:[#allocation2 + $0x438] sm:$0xff] }
 0x1b7   :  { %2891 = vmatpush2.bf16.msra.mxu0 %v9589_v11  ;;  %v452_v11 = vld [vmem:[#allocation2 + $0x8d8] sm:$0xff]  ;;  %v9383_v47 = vcombine.low %v300_v36, %v304_v37 }
 0x1b8   :  { %2932 = vmatpush2.bf16.msra.mxu1 %v9335_v12  ;;  %2892 = vmatprep.subr.bf16.mxu0 %v9582_v13  ;;  %v9415_v12 = vcombine.low %v332_v63, %v336_v0  ;;  %v9408_v13 = vcombine.high %v324_v9, %v328_v10  ;;  %v428_v38 = vld [vmem:[#allocation2 + $0x818] sm:$0xff] }
 0x1b9   :  { %2933 = vmatprep.subr.bf16.mxu1 %v9328_v14  ;;  %v432_v39 = vld [vmem:[#allocation2 + $0x838] sm:$0xff] }
 0x1ba   :  { %v420_v43 = vld [vmem:[#allocation2 + $0x7d8] sm:$0xff] }
 0x1bb   :  { %2893 = vmatpush2.bf16.msra.mxu0 %v9581_v23  ;;  %v9407_v23 = vcombine.low %v324_v9, %v328_v10  ;;  %v424_v44 = vld [vmem:[#allocation2 + $0x7f8] sm:$0xff] }
 0x1bc   :  { %2934 = vmatpush2.bf16.msra.mxu1 %v9327_v24  ;;  %2894 = vmatprep.subr.bf16.mxu0 %v9574_v53  ;;  %v9400_v53 = vcombine.high %v316_v15, %v320_v17  ;;  %v552_v46 = vld [vmem:[#allocation2 + $0xbf8] sm:$0xff] }
 0x1bd   :  { %2935 = vmatprep.subr.bf16.mxu1 %v9320_v25  ;;  %v9528_v25 = vcombine.high %v444_v18, %v448_v22  ;;  %v416_v63 = vld [vmem:[#allocation2 + $0x7b8] sm:$0xff] }
 0x1be   :  { %v540_v0 = vld [vmem:[#allocation2 + $0xb98] sm:$0xff] }
 0x1bf   :  { %2895 = vmatpush2.bf16.msra.mxu0 %v9573_v31  ;;  %v9399_v31 = vcombine.low %v316_v15, %v320_v17 }
 0x1c0   :  { %2936 = vmatpush2.bf16.msra.mxu1 %v9319_v33  ;;  %2946 = vmatprep.subr.bf16.mxu0 %v9440_v34  ;;  %v9527_v33 = vcombine.low %v444_v18, %v448_v22  ;;  %v9392_v34 = vcombine.high %v308_v26, %v312_v27  ;;  %v388_v22 = vld [vmem:[#allocation2 + $0x6d8] sm:$0xff] }
 0x1c1   :  { %2987 = vmatprep.subr.bf16.mxu1 %v9568_v35  ;;  %v9520_v35 = vcombine.high %v436_v54, %v440_v30 }
 0x1c2   :  { %v2652_v45 = vpop.f32.mrf.mxu0  ;;  %2897 = vmatmul.mubr.bf16.vlgmr.msra.gmra.mxu0 %v11354_v32 }
 0x1c3   :  { %v11388_v48 = vadd.f32 %v2652_v45, %v11380_v21  ;;  %v11390_v49 = vpop.f32.mrf.mxu1  ;;  %2938 = vmatmul.mubr.bf16.vlgmr.msra.gmra.mxu1 %v11333_v16  ;;  %2947 = vmatpush1.bf16.msra.mxu0 %v9439_v40  ;;  %v9391_v40 = vcombine.low %v308_v26, %v312_v27  ;;  %v548_v45 = vld [vmem:[#allocation2 + $0xbd8] sm:$0xff] }
 0x1c4   :  { %2988 = vmatpush1.bf16.msra.mxu1 %v9567_v41  ;;  %v11393_v52 = vpop.f32.mrf.mxu0  ;;  %2948 = vmatprep.subr.bf16.mxu0 %v9432_v19  ;;  %v9519_v41 = vcombine.low %v436_v54, %v440_v30  ;;  %v9384_v19 = vcombine.high %v300_v36, %v304_v37  ;;  %v380_v30 = vld [vmem:[#allocation2 + $0x698] sm:$0xff] }
 0x1c5   :  { %v11395_v61 = vpop.f32.mrf.mxu1  ;;  %2989 = vmatprep.subr.bf16.mxu1 %v9560_v58  ;;  %2978 = vmatprep.mubr.bf16.mxu0 %v11327_v59  ;;  %v456_v59 = vld [vmem:[#allocation2 + $0x8f8] sm:$0xff]  ;;  %v9512_v58 = vcombine.high %v428_v38, %v432_v39  ;;  %vm3028_vm2 = vcmp.gt.f32.partialorder %v11388_v48, 0.0 }
 0x1c6   :  { %v2656_v21 = vpop.f32.mrf.mxu0  ;;  %3019 = vmatprep.mubr.bf16.mxu1 %v11346_v28  ;;  %v9543_v28 = vcombine.low %v460_v1, %v464_v2  ;;  %v9536_v14 = vcombine.high %v452_v11, %v456_v59  ;;  %v9535_v24 = vcombine.low %v452_v11, %v456_v59  ;;  %v9503_v1 = vcombine.low %v420_v43, %v424_v44  ;;  %v396_v59 = vld [vmem:[#allocation2 + $0x718] sm:$0xff] }
 0x1c7   :  { %v2697_v16 = vpop.f32.mrf.mxu1  ;;  %2949 = vmatpush1.bf16.msra.mxu0 %v9431_v50  ;;  %v9511_v50 = vcombine.low %v428_v38, %v432_v39  ;;  %v544_v21 = vld [vmem:[#allocation2 + $0xbb8] sm:$0xff]  ;;  %v9631_v2 = vcombine.low %v548_v45, %v552_v46 }
 0x1c8   :  { %2990 = vmatpush1.bf16.msra.mxu1 %v9559_v56  ;;  %v2657_v4 = vpop.f32.mrf.mxu0  ;;  %2950 = vmatprep.subr.bf16.mxu0 %v9424_v57  ;;  %v9504_v56 = vcombine.high %v420_v43, %v424_v44  ;;  %v9632_v57 = vcombine.high %v548_v45, %v552_v46  ;;  %v9623_v9 = vcombine.low %v540_v0, %v544_v21  ;;  %v372_v39 = vld [vmem:[#allocation2 + $0x658] sm:$0xff] }
 0x1c9   :  { %v2698_v7 = vpop.f32.mrf.mxu1  ;;  %2991 = vmatprep.subr.bf16.mxu1 %v9552_v62  ;;  %v412_v62 = vld [vmem:[#allocation2 + $0x798] sm:$0xff] }
 0x1ca   :  { %v9496_v16 = vcombine.high %v412_v62, %v416_v63  ;;  %v404_v4 = vld [vmem:[#allocation2 + $0x758] sm:$0xff] }
 0x1cb   :  { %2951 = vmatpush1.bf16.msra.mxu0 %v9423_v3  ;;  %v9624_v3 = vcombine.high %v540_v0, %v544_v21  ;;  %v536_v7 = vld [vmem:[#allocation2 + $0xb78] sm:$0xff] }
 0x1cc   :  { %2992 = vmatpush1.bf16.msra.mxu1 %v9551_v5  ;;  %2952 = vmatprep.subr.bf16.mxu0 %v9416_v6  ;;  %v408_v5 = vld [vmem:[#allocation2 + $0x778] sm:$0xff] }
 0x1cd   :  { %2993 = vmatprep.subr.bf16.mxu1 %v9544_v8  ;;  %v532_v6 = vld [vmem:[#allocation2 + $0xb58] sm:$0xff]  ;;  %v9495_v8 = vcombine.low %v412_v62, %v416_v63  ;;  %v9488_v10 = vcombine.high %v404_v4, %v408_v5 }
 0x1ce   :  { %v9616_v11 = vcombine.high %v532_v6, %v536_v7  ;;  %v9615_v15 = vcombine.low %v532_v6, %v536_v7  ;;  %v364_v46 = vld [vmem:[#allocation2 + $0x618] sm:$0xff] }
 0x1cf   :  { %2953 = vmatpush1.bf16.msra.mxu0 %v9415_v12  ;;  %v400_v12 = vld [vmem:[#allocation2 + $0x738] sm:$0xff] }
 0x1d0   :  { %2994 = vmatpush1.bf16.msra.mxu1 %v9543_v28  ;;  %2954 = vmatprep.subr.bf16.mxu0 %v9408_v13  ;;  %v524_v28 = vld [vmem:[#allocation2 + $0xb18] sm:$0xff]  ;;  %v9480_v17 = vcombine.high %v396_v59, %v400_v12 }
 0x1d1   :  { %2995 = vmatprep.subr.bf16.mxu1 %v9536_v14  ;;  %v528_v13 = vld [vmem:[#allocation2 + $0xb38] sm:$0xff]  ;;  %v9487_v14 = vcombine.low %v404_v4, %v408_v5  ;;  %v11402_v5 = vsub.s32 3, %v11364_v42 }
 0x1d2   :  { %v9608_v18 = vcombine.high %v524_v28, %v528_v13  ;;  %v9607_v26 = vcombine.low %v524_v28, %v528_v13 }
 0x1d3   :  { %2955 = vmatpush1.bf16.msra.mxu0 %v9407_v23  ;;  %v392_v23 = vld [vmem:[#allocation2 + $0x6f8] sm:$0xff] }
 0x1d4   :  { %2996 = vmatpush1.bf16.msra.mxu1 %v9535_v24  ;;  %2956 = vmatprep.subr.bf16.mxu0 %v9400_v53  ;;  %v516_v24 = vld [vmem:[#allocation2 + $0xad8] sm:$0xff]  ;;  %v9472_v27 = vcombine.high %v388_v22, %v392_v23 }
 0x1d5   :  { %2997 = vmatprep.subr.bf16.mxu1 %v9528_v25  ;;  %v520_v53 = vld [vmem:[#allocation2 + $0xaf8] sm:$0xff]  ;;  %v9479_v25 = vcombine.low %v396_v59, %v400_v12  ;;  %v570_v12 = vrot.slane %v11369_v55, %v11402_v5 }
 0x1d6   :  { %v9600_v54 = vcombine.high %v516_v24, %v520_v53  ;;  %v9599_v36 = vcombine.low %v516_v24, %v520_v53  ;;  %v3228_v24 = vld [vmem:[#allocation7 + $0x540] sm:$0xff] }
 0x1d7   :  { %2957 = vmatpush1.bf16.msra.mxu0 %v9399_v31  ;;  %v384_v31 = vld [vmem:[#allocation2 + $0x6b8] sm:$0xff]  ;;  %v3232_v53 = vld [vmem:[#allocation7 + $0x560] sm:$0xff]  ;;  %v2696_v55 = vadd.f32 %v11395_v61, %v570_v12 }
 0x1d8   :  { %2998 = vmatpush1.bf16.msra.mxu1 %v9527_v33  ;;  %2958 = vmatprep.subr.bf16.mxu0 %v9392_v34  ;;  %v508_v33 = vld [vmem:[#allocation2 + $0xa98] sm:$0xff]  ;;  %v9464_v37 = vcombine.high %v380_v30, %v384_v31 }
 0x1d9   :  { %2999 = vmatprep.subr.bf16.mxu1 %v9520_v35  ;;  %v512_v34 = vld [vmem:[#allocation2 + $0xab8] sm:$0xff]  ;;  %v9471_v35 = vcombine.low %v388_v22, %v392_v23 }
 0x1da   :  { %v9592_v38 = vcombine.high %v508_v33, %v512_v34  ;;  %v9591_v43 = vcombine.low %v508_v33, %v512_v34  ;;  %v3092_v34 = vld [vmem:[#allocation7 + $0x100] sm:$0xff] }
 0x1db   :  { %2959 = vmatpush1.bf16.msra.mxu0 %v9391_v40  ;;  %v376_v40 = vld [vmem:[#allocation2 + $0x678] sm:$0xff] }
 0x1dc   :  { %3000 = vmatpush1.bf16.msra.mxu1 %v9519_v41  ;;  %2960 = vmatprep.subr.bf16.mxu0 %v9384_v19  ;;  %v500_v41 = vld [vmem:[#allocation2 + $0xa58] sm:$0xff]  ;;  %v9456_v44 = vcombine.high %v372_v39, %v376_v40  ;;  %v9455_v62 = vcombine.low %v372_v39, %v376_v40 }
 0x1dd   :  { %3001 = vmatprep.subr.bf16.mxu1 %v9512_v58  ;;  %v504_v19 = vld [vmem:[#allocation2 + $0xa78] sm:$0xff]  ;;  %v9463_v58 = vcombine.low %v380_v30, %v384_v31 }
 0x1de   :  { %v9584_v45 = vcombine.high %v500_v41, %v504_v19  ;;  %v9583_v63 = vcombine.low %v500_v41, %v504_v19  ;;  %v9801_v41 = vcombine.low %v3228_v24, %v3232_v53 }
 0x1df   :  { %2961 = vmatpush1.bf16.msra.mxu0 %v9383_v47  ;;  %v368_v47 = vld [vmem:[#allocation2 + $0x638] sm:$0xff] }
 0x1e0   :  { %3002 = vmatpush1.bf16.msra.mxu1 %v9511_v50  ;;  %2962 = vmatprep.subr.bf16.mxu0 %v9504_v56  ;;  %v492_v50 = vld [vmem:[#allocation2 + $0xa18] sm:$0xff]  ;;  %v9448_v0 = vcombine.high %v364_v46, %v368_v47  ;;  %v9447_v6 = vcombine.low %v364_v46, %v368_v47  ;;  %v3088_v46 = vld [vmem:[#allocation7 + $0xe0] sm:$0xff] }
 0x1e1   :  { %3003 = vmatprep.subr.bf16.mxu1 %v9632_v57  ;;  %v496_v56 = vld [vmem:[#allocation2 + $0xa38] sm:$0xff]  ;;  %v2655_v57 = vadd.f32 %v11393_v52, %v11384_v29  ;;  %v3212_v47 = vld [vmem:[#allocation7 + $0x4c0] sm:$0xff] }
 0x1e2   :  { %v9576_v21 = vcombine.high %v492_v50, %v496_v56  ;;  %v9575_v29 = vcombine.low %v492_v50, %v496_v56  ;;  %v3216_v50 = vld [vmem:[#allocation7 + $0x4e0] sm:$0xff] }
 0x1e3   :  { %2963 = vmatpush2.bf16.msra.mxu0 %v9503_v1  ;;  %v3116_v1 = vld [vmem:[#allocation7 + $0x1c0] sm:$0xff]  ;;  %v3037_v4 = vmul.f32 0.01, %v2655_v57  ;;  %vm3029_vm0 = vcmp.gt.f32.partialorder %v2655_v57, 0.0 }
 0x1e4   :  { %3004 = vmatpush2.bf16.msra.mxu1 %v9631_v2  ;;  %2964 = vmatprep.subr.bf16.mxu0 %v9496_v16  ;;  %v3120_v2 = vld [vmem:[#allocation7 + $0x1e0] sm:$0xff] }
 0x1e5   :  { %3005 = vmatprep.subr.bf16.mxu1 %v9624_v3  ;;  %v3244_v16 = vld [vmem:[#allocation7 + $0x5c0] sm:$0xff]  ;;  %v9690_v52 = vcombine.high %v3116_v1, %v3120_v2  ;;  %v3045_v59 = vsel %vm3029_vm0, %v2655_v57, %v3037_v4  ;;  %v9689_v28 = vcombine.low %v3116_v1, %v3120_v2 }
 0x1e6   :  { %v3248_v3 = vld [vmem:[#allocation7 + $0x5e0] sm:$0xff]  ;;  %v11406_v22 = vpack.c.bf16 %v3045_v59, %v3045_v59 }
 0x1e7   :  { %2965 = vmatpush2.bf16.msra.mxu0 %v9495_v8  ;;  %v9818_v7 = vcombine.high %v3244_v16, %v3248_v3  ;;  %v3108_v8 = vld [vmem:[#allocation7 + $0x180] sm:$0xff]  ;;  %v9817_v13 = vcombine.low %v3244_v16, %v3248_v3 }
 0x1e8   :  { %3006 = vmatpush2.bf16.msra.mxu1 %v9623_v9  ;;  %2966 = vmatprep.subr.bf16.mxu0 %v9488_v10  ;;  %v3112_v9 = vld [vmem:[#allocation7 + $0x1a0] sm:$0xff] }
 0x1e9   :  { %3007 = vmatprep.subr.bf16.mxu1 %v9616_v11  ;;  %v3236_v10 = vld [vmem:[#allocation7 + $0x580] sm:$0xff] }
 0x1ea   :  { %v3240_v11 = vld [vmem:[#allocation7 + $0x5a0] sm:$0xff] }
 0x1eb   :  { %2967 = vmatpush2.bf16.msra.mxu0 %v9487_v14  ;;  %v9682_v14 = vcombine.high %v3108_v8, %v3112_v9  ;;  %v3076_v1 = vld [vmem:[#allocation7 + $0x80] sm:$0xff] }
 0x1ec   :  { %3008 = vmatpush2.bf16.msra.mxu1 %v9615_v15  ;;  %2968 = vmatprep.subr.bf16.mxu0 %v9480_v17  ;;  %v9810_v15 = vcombine.high %v3236_v10, %v3240_v11  ;;  %v3100_v17 = vld [vmem:[#allocation7 + $0x140] sm:$0xff] }
 0x1ed   :  { %3009 = vmatprep.subr.bf16.mxu1 %v9608_v18  ;;  %v3104_v18 = vld [vmem:[#allocation7 + $0x160] sm:$0xff] }
 0x1ee   :  { %v9674_v30 = vcombine.high %v3100_v17, %v3104_v18  ;;  %v9673_v39 = vcombine.low %v3100_v17, %v3104_v18  ;;  %v3080_v2 = vld [vmem:[#allocation7 + $0xa0] sm:$0xff] }
 0x1ef   :  { %2969 = vmatpush2.bf16.msra.mxu0 %v9479_v25  ;;  %v3204_v16 = vld [vmem:[#allocation7 + $0x480] sm:$0xff] }
 0x1f0   :  { %3010 = vmatpush2.bf16.msra.mxu1 %v9607_v26  ;;  %2970 = vmatprep.subr.bf16.mxu0 %v9472_v27  ;;  %v9681_v26 = vcombine.low %v3108_v8, %v3112_v9  ;;  %v3208_v3 = vld [vmem:[#allocation7 + $0x4a0] sm:$0xff] }
 0x1f1   :  { %3011 = vmatprep.subr.bf16.mxu1 %v9600_v54  ;;  %v9809_v54 = vcombine.low %v3236_v10, %v3240_v11  ;;  %v3072_v8 = vld [vmem:[#allocation7 + $0x60] sm:$0xff]  ;;  %v9649_v11 = vcombine.low %v3076_v1, %v3080_v2  ;;  %v9777_v59 = vcombine.low %v3204_v16, %v3208_v3 }
 0x1f2   :  { %v3196_v9 = vld [vmem:[#allocation7 + $0x440] sm:$0xff] }
 0x1f3   :  { %2971 = vmatpush2.bf16.msra.mxu0 %v9471_v35  ;;  %v3096_v35 = vld [vmem:[#allocation7 + $0x120] sm:$0xff] }
 0x1f4   :  { %3012 = vmatpush2.bf16.msra.mxu1 %v9599_v36  ;;  %2972 = vmatprep.subr.bf16.mxu0 %v9464_v37  ;;  %v3220_v36 = vld [vmem:[#allocation7 + $0x500] sm:$0xff]  ;;  %v9666_v19 = vcombine.high %v3092_v34, %v3096_v35  ;;  %v9665_v57 = vcombine.low %v3092_v34, %v3096_v35 }
 0x1f5   :  { %3013 = vmatprep.subr.bf16.mxu1 %v9592_v38  ;;  %v3224_v37 = vld [vmem:[#allocation7 + $0x520] sm:$0xff] }
 0x1f6   :  { %v3200_v10 = vld [vmem:[#allocation7 + $0x460] sm:$0xff] }
 0x1f7   :  { %2973 = vmatpush2.bf16.msra.mxu0 %v9463_v58  ;;  %v3192_v17 = vld [vmem:[#allocation7 + $0x420] sm:$0xff] }
 0x1f8   :  { %3014 = vmatpush2.bf16.msra.mxu1 %v9591_v43  ;;  %2974 = vmatprep.subr.bf16.mxu0 %v9456_v44  ;;  %v9794_v44 = vcombine.high %v3220_v36, %v3224_v37  ;;  %v3172_v35 = vld [vmem:[#allocation7 + $0x380] sm:$0xff] }
 0x1f9   :  { %3015 = vmatprep.subr.bf16.mxu1 %v9584_v45  ;;  %v3084_v45 = vld [vmem:[#allocation7 + $0xc0] sm:$0xff] }
 0x1fa   :  { %v9657_v4 = vcombine.low %v3084_v45, %v3088_v46 }
 0x1fb   :  { %2975 = vmatpush2.bf16.msra.mxu0 %v9455_v62 }
 0x1fc   :  { %3016 = vmatpush2.bf16.msra.mxu1 %v9583_v63  ;;  %2976 = vmatprep.subr.bf16.mxu0 %v9448_v0  ;;  %v9793_v63 = vcombine.low %v3220_v36, %v3224_v37  ;;  %v9658_v0 = vcombine.high %v3084_v45, %v3088_v46  ;;  %v3300_v36 = vld [vmem:[#allocation7 + $0x780] sm:$0xff] }
 0x1fd   :  { %3017 = vmatprep.subr.bf16.mxu1 %v9576_v21  ;;  %v9786_v21 = vcombine.high %v3212_v47, %v3216_v50  ;;  %v3304_v37 = vld [vmem:[#allocation7 + $0x7a0] sm:$0xff] }
 0x1fe   :  { %v9873_v45 = vcombine.low %v3300_v36, %v3304_v37 }
 0x1ff   :  { %2977 = vmatpush2.bf16.msra.mxu0 %v9447_v6  ;;  %v9785_v6 = vcombine.low %v3212_v47, %v3216_v50  ;;  %v3156_v50 = vld [vmem:[#allocation7 + $0x300] sm:$0xff] }
 0x200   :  { %3018 = vmatpush2.bf16.msra.mxu1 %v9575_v29  ;;  %6174 = vmatprep.subr.bf16.mxu0 %v9690_v52  ;;  %v9650_v29 = vcombine.high %v3076_v1, %v3080_v2  ;;  %v9778_v52 = vcombine.high %v3204_v16, %v3208_v3  ;;  %v3148_v3 = vld [vmem:[#allocation7 + $0x2c0] sm:$0xff] }
 0x201   :  { %6215 = vmatprep.subr.bf16.mxu1 %v9818_v7  ;;  %v3068_v7 = vld [vmem:[#allocation7 + $0x40] sm:$0xff] }
 0x202   :  { %v11408_v23 = vpop.f32.mrf.mxu0  ;;  %2979 = vmatmul.mubr.bf16.vlgmr.msra.gmra.mxu0 %v11342_v20  ;;  %v9802_v20 = vcombine.high %v3228_v24, %v3232_v53  ;;  %v9642_v12 = vcombine.high %v3068_v7, %v3072_v8  ;;  %v9641_v18 = vcombine.low %v3068_v7, %v3072_v8  ;;  %v9769_v24 = vcombine.low %v3196_v9, %v3200_v10  ;;  %v11422_v7 = vld [vmem:[#allocation5] sm:$0xff] }
 0x203   :  { %v11412_v25 = vpop.f32.mrf.mxu1  ;;  %3020 = vmatmul.mubr.bf16.vlgmr.msra.gmra.mxu1 %v11354_v32  ;;  %6175 = vmatpush1.bf16.msra.mxu0 %v9689_v28  ;;  %v9770_v28 = vcombine.high %v3196_v9, %v3200_v10 }
 0x204   :  { %6206 = vmatprep.mubr.bf16.mxu0 %v11406_v22  ;;  %6216 = vmatpush1.bf16.msra.mxu1 %v9817_v13  ;;  %v2736_v27 = vpop.f32.mrf.mxu0  ;;  %v3060_v13 = vld [vmem:[#allocation7] sm:$0xff] }
 0x205   :  { %v2737_v31 = vadd.f32 %v2736_v27, %v2696_v55  ;;  %v2777_v33 = vpop.f32.mrf.mxu1  ;;  %6176 = vmatprep.subr.bf16.mxu0 %v9682_v14  ;;  %6217 = vmatprep.subr.bf16.mxu1 %v9810_v15  ;;  %v3064_v14 = vld [vmem:[#allocation7 + $0x20] sm:$0xff] }
 0x206   :  { %v2738_v61 = vpop.f32.mrf.mxu0  ;;  %v3188_v15 = vld [vmem:[#allocation7 + $0x400] sm:$0xff]  ;;  %v9634_v53 = vcombine.high %v3060_v13, %v3064_v14 }
 0x207   :  { %v2778_v38 = vadd.f32 %v2777_v33, %v2737_v31  ;;  %v2779_v32 = vpop.f32.mrf.mxu1  ;;  %6177 = vmatpush1.bf16.msra.mxu0 %v9681_v26  ;;  %v9762_v55 = vcombine.high %v3188_v15, %v3192_v17  ;;  %v3180_v26 = vld [vmem:[#allocation7 + $0x3c0] sm:$0xff]  ;;  %v9633_v31 = vcombine.low %v3060_v13, %v3064_v14  ;;  %v9761_v33 = vcombine.low %v3188_v15, %v3192_v17 }
 0x208   :  { %6218 = vmatpush1.bf16.msra.mxu1 %v9809_v54  ;;  %v2739_v40 = vpop.f32.mrf.mxu0  ;;  %6178 = vmatprep.subr.bf16.mxu0 %v9674_v30  ;;  %v3184_v27 = vld [vmem:[#allocation7 + $0x3e0] sm:$0xff] }
 0x209   :  { %vm3031_vm1 = vcmp.gt.f32.partialorder %v2778_v38, 0.0  ;;  %v3039_v58 = vmul.f32 0.01, %v2778_v38  ;;  %v2780_v43 = vpop.f32.mrf.mxu1  ;;  %6219 = vmatprep.subr.bf16.mxu1 %v9802_v20  ;;  %v3308_v54 = vld [vmem:[#allocation7 + $0x7c0] sm:$0xff]  ;;  %v9754_v20 = vcombine.high %v3180_v26, %v3184_v27  ;;  %v9874_v40 = vcombine.high %v3300_v36, %v3304_v37 }
 0x20a   :  { %v3312_v30 = vld [vmem:[#allocation7 + $0x7e0] sm:$0xff] }
 0x20b   :  { %v3047_v56 = vsel %vm3031_vm1, %v2778_v38, %v3039_v58  ;;  %6179 = vmatpush1.bf16.msra.mxu0 %v9673_v39  ;;  %v9882_v34 = vcombine.high %v3308_v54, %v3312_v30  ;;  %v3176_v61 = vld [vmem:[#allocation7 + $0x3a0] sm:$0xff]  ;;  %v9753_v38 = vcombine.low %v3180_v26, %v3184_v27  ;;  %v9881_v32 = vcombine.low %v3308_v54, %v3312_v30 }
 0x20c   :  { %v11416_v62 = vpack.c.bf16 %v3047_v56, %v3047_v56  ;;  %6220 = vmatpush1.bf16.msra.mxu1 %v9801_v41  ;;  %6180 = vmatprep.subr.bf16.mxu0 %v9666_v19  ;;  %v9746_v39 = vcombine.high %v3172_v35, %v3176_v61  ;;  %v3164_v41 = vld [vmem:[#allocation7 + $0x340] sm:$0xff] }
 0x20d   :  { %6221 = vmatprep.subr.bf16.mxu1 %v9794_v44  ;;  %v3168_v19 = vld [vmem:[#allocation7 + $0x360] sm:$0xff]  ;;  %v9745_v44 = vcombine.low %v3172_v35, %v3176_v61 }
 0x20e   :  { %6247 = vmatprep.mubr.bf16.mxu1 %v11416_v62  ;;  %v3292_v58 = vld [vmem:[#allocation7 + $0x740] sm:$0xff]  ;;  %v9738_v46 = vcombine.high %v3164_v41, %v3168_v19 }
 0x20f   :  { %6181 = vmatpush1.bf16.msra.mxu0 %v9665_v57  ;;  %v3296_v43 = vld [vmem:[#allocation7 + $0x760] sm:$0xff] }
 0x210   :  { %6222 = vmatpush1.bf16.msra.mxu1 %v9793_v63  ;;  %6182 = vmatprep.subr.bf16.mxu0 %v9658_v0  ;;  %v9866_v47 = vcombine.high %v3292_v58, %v3296_v43  ;;  %v3160_v56 = vld [vmem:[#allocation7 + $0x320] sm:$0xff]  ;;  %v9737_v0 = vcombine.low %v3164_v41, %v3168_v19  ;;  %v9865_v1 = vcombine.low %v3292_v58, %v3296_v43 }
 0x211   :  { %6223 = vmatprep.subr.bf16.mxu1 %v9786_v21  ;;  %v3284_v57 = vld [vmem:[#allocation7 + $0x700] sm:$0xff]  ;;  %v11420_v21 = vsub.s32 2, %v11364_v42  ;;  %v9730_v2 = vcombine.high %v3156_v50, %v3160_v56 }
 0x212   :  { %v3288_v63 = vld [vmem:[#allocation7 + $0x720] sm:$0xff] }
 0x213   :  { %6183 = vmatpush1.bf16.msra.mxu0 %v9657_v4  ;;  %v9858_v16 = vcombine.high %v3284_v57, %v3288_v63  ;;  %v3152_v4 = vld [vmem:[#allocation7 + $0x2e0] sm:$0xff]  ;;  %v566_v8 = vrot.slane %v11422_v7, %v11420_v21  ;;  %v9857_v9 = vcombine.low %v3284_v57, %v3288_v63 }
 0x214   :  { %6224 = vmatpush1.bf16.msra.mxu1 %v9785_v6  ;;  %6184 = vmatprep.subr.bf16.mxu0 %v9650_v29  ;;  %v3276_v6 = vld [vmem:[#allocation7 + $0x6c0] sm:$0xff]  ;;  %v9722_v10 = vcombine.high %v3148_v3, %v3152_v4  ;;  %v9721_v14 = vcombine.low %v3148_v3, %v3152_v4 }
 0x215   :  { %6225 = vmatprep.subr.bf16.mxu1 %v9778_v52  ;;  %v3280_v29 = vld [vmem:[#allocation7 + $0x6e0] sm:$0xff]  ;;  %v9729_v52 = vcombine.low %v3156_v50, %v3160_v56  ;;  %v2694_v15 = vadd.f32 %v11390_v49, %v566_v8 }
 0x216   :  { %v3272_v13 = vld [vmem:[#allocation7 + $0x6a0] sm:$0xff]  ;;  %v9849_v17 = vcombine.low %v3276_v6, %v3280_v29 }
 0x217   :  { %6185 = vmatpush1.bf16.msra.mxu0 %v9649_v11  ;;  %v9850_v11 = vcombine.high %v3276_v6, %v3280_v29  ;;  %v2735_v26 = vadd.f32 %v11408_v23, %v2694_v15  ;;  %v3260_v27 = vld [vmem:[#allocation7 + $0x640] sm:$0xff] }
 0x218   :  { %6226 = vmatpush1.bf16.msra.mxu1 %v9777_v59  ;;  %6186 = vmatprep.subr.bf16.mxu0 %v9642_v12  ;;  %v3140_v59 = vld [vmem:[#allocation7 + $0x280] sm:$0xff] }
 0x219   :  { %6227 = vmatprep.subr.bf16.mxu1 %v9770_v28  ;;  %v3144_v12 = vld [vmem:[#allocation7 + $0x2a0] sm:$0xff]  ;;  %v2776_v35 = vadd.f32 %v11412_v25, %v2735_v26 }
 0x21a   :  { %v3268_v28 = vld [vmem:[#allocation7 + $0x680] sm:$0xff]  ;;  %v9713_v30 = vcombine.low %v3140_v59, %v3144_v12 }
 0x21b   :  { %6187 = vmatpush1.bf16.msra.mxu0 %v9641_v18  ;;  %v9714_v18 = vcombine.high %v3140_v59, %v3144_v12  ;;  %v3264_v54 = vld [vmem:[#allocation7 + $0x660] sm:$0xff]  ;;  %v3038_v19 = vmul.f32 0.01, %v2776_v35  ;;  %vm3030_vm3 = vcmp.gt.f32.partialorder %v2776_v35, 0.0 }
 0x21c   :  { %6228 = vmatpush1.bf16.msra.mxu1 %v9769_v24  ;;  %6188 = vmatprep.subr.bf16.mxu0 %v9634_v53  ;;  %v9842_v24 = vcombine.high %v3268_v28, %v3272_v13  ;;  %v3132_v53 = vld [vmem:[#allocation7 + $0x240] sm:$0xff]  ;;  %v9834_v49 = vcombine.high %v3260_v27, %v3264_v54  ;;  %v9833_v23 = vcombine.low %v3260_v27, %v3264_v54 }
 0x21d   :  { %6229 = vmatprep.subr.bf16.mxu1 %v9762_v55  ;;  %v3136_v55 = vld [vmem:[#allocation7 + $0x260] sm:$0xff]  ;;  %v3046_v57 = vsel %vm3030_vm3, %v2776_v35, %v3038_v19 }
 0x21e   :  { %v3252_v61 = vld [vmem:[#allocation7 + $0x600] sm:$0xff]  ;;  %v9705_v37 = vcombine.low %v3132_v53, %v3136_v55  ;;  %v11434_v4 = vpack.c.bf16 %v3046_v57, %v3046_v57 }
 0x21f   :  { %6189 = vmatpush1.bf16.msra.mxu0 %v9633_v31  ;;  %v9841_v31 = vcombine.low %v3268_v28, %v3272_v13  ;;  %v3256_v36 = vld [vmem:[#allocation7 + $0x620] sm:$0xff] }
 0x220   :  { %6230 = vmatpush1.bf16.msra.mxu1 %v9761_v33  ;;  %6190 = vmatprep.subr.bf16.mxu0 %v9754_v20  ;;  %v9706_v33 = vcombine.high %v3132_v53, %v3136_v55  ;;  %v3124_v20 = vld [vmem:[#allocation7 + $0x200] sm:$0xff] }
 0x221   :  { %6231 = vmatprep.subr.bf16.mxu1 %v9882_v34  ;;  %v3128_v34 = vld [vmem:[#allocation7 + $0x220] sm:$0xff] }
 0x222   :  { %v3376_v41 = vld [vmem:[#allocation7 + $0x9e0] sm:$0xff]  ;;  %v9697_v25 = vcombine.low %v3124_v20, %v3128_v34 }
 0x223   :  { %6191 = vmatpush2.bf16.msra.mxu0 %v9753_v38  ;;  %v9698_v38 = vcombine.high %v3124_v20, %v3128_v34  ;;  %v3500_v58 = vld [vmem:[#allocation7 + $0xdc0] sm:$0xff] }
 0x224   :  { %6232 = vmatpush2.bf16.msra.mxu1 %v9881_v32  ;;  %6192 = vmatprep.subr.bf16.mxu0 %v9746_v39  ;;  %v3036_v32 = vmul.f32 0.01, %v11388_v48  ;;  %v9826_v39 = vcombine.high %v3252_v61, %v3256_v36  ;;  %v3504_v43 = vld [vmem:[#allocation7 + $0xde0] sm:$0xff] }
 0x225   :  { %6233 = vmatprep.subr.bf16.mxu1 %v9874_v40  ;;  %v3372_v40 = vld [vmem:[#allocation7 + $0x9c0] sm:$0xff]  ;;  %v10074_v56 = vcombine.high %v3500_v58, %v3504_v43  ;;  %v10073_v3 = vcombine.low %v3500_v58, %v3504_v43 }
 0x226   :  { %v3368_v50 = vld [vmem:[#allocation7 + $0x9a0] sm:$0xff] }
 0x227   :  { %6193 = vmatpush2.bf16.msra.mxu0 %v9745_v44  ;;  %v9825_v44 = vcombine.low %v3252_v61, %v3256_v36  ;;  %v3492_v63 = vld [vmem:[#allocation7 + $0xd80] sm:$0xff] }
 0x228   :  { %6234 = vmatpush2.bf16.msra.mxu1 %v9873_v45  ;;  %6194 = vmatprep.subr.bf16.mxu0 %v9738_v46  ;;  %v9946_v45 = vcombine.high %v3372_v40, %v3376_v41  ;;  %v3044_v46 = vsel %vm3028_vm2, %v11388_v48, %v3036_v32  ;;  %v3356_v6 = vld [vmem:[#allocation7 + $0x940] sm:$0xff] }
 0x229   :  { %6235 = vmatprep.subr.bf16.mxu1 %v9866_v47  ;;  %v3364_v47 = vld [vmem:[#allocation7 + $0x980] sm:$0xff] }
 0x22a   :  { %v3360_v29 = vld [vmem:[#allocation7 + $0x960] sm:$0xff] }
 0x22b   :  { %6195 = vmatpush2.bf16.msra.mxu0 %v9737_v0  ;;  %v3496_v0 = vld [vmem:[#allocation7 + $0xda0] sm:$0xff]  ;;  %v9930_v12 = vcombine.high %v3356_v6, %v3360_v29  ;;  %v9929_v26 = vcombine.low %v3356_v6, %v3360_v29 }
 0x22c   :  { %6236 = vmatpush2.bf16.msra.mxu1 %v9865_v1  ;;  %6196 = vmatprep.subr.bf16.mxu0 %v9730_v2  ;;  %v9945_v1 = vcombine.low %v3372_v40, %v3376_v41  ;;  %v11432_v2 = vpack.c.bf16 %v3044_v46, %v3044_v46  ;;  %v10066_v48 = vcombine.high %v3492_v63, %v3496_v0  ;;  %v3484_v8 = vld [vmem:[#allocation7 + $0xd40] sm:$0xff] }
 0x22d   :  { %6237 = vmatprep.subr.bf16.mxu1 %v9858_v16  ;;  %v9938_v16 = vcombine.high %v3364_v47, %v3368_v50  ;;  %v10065_v28 = vcombine.low %v3492_v63, %v3496_v0  ;;  %v3352_v15 = vld [vmem:[#allocation7 + $0x920] sm:$0xff] }
 0x22e   :  { %v3480_v53 = vld [vmem:[#allocation7 + $0xd20] sm:$0xff] }
 0x22f   :  { %6197 = vmatpush2.bf16.msra.mxu0 %v9729_v52  ;;  %v3468_v34 = vld [vmem:[#allocation7 + $0xcc0] sm:$0xff] }
 0x230   :  { %6238 = vmatpush2.bf16.msra.mxu1 %v9857_v9  ;;  %6198 = vmatprep.subr.bf16.mxu0 %v9722_v10  ;;  %v3488_v9 = vld [vmem:[#allocation7 + $0xd60] sm:$0xff] }
 0x231   :  { %6239 = vmatprep.subr.bf16.mxu1 %v9850_v11  ;;  %v9937_v11 = vcombine.low %v3364_v47, %v3368_v50  ;;  %v3472_v35 = vld [vmem:[#allocation7 + $0xce0] sm:$0xff] }
 0x232   :  { %v3332_v32 = vld [vmem:[#allocation7 + $0x880] sm:$0xff]  ;;  %v10042_v40 = vcombine.high %v3468_v34, %v3472_v35 }
 0x233   :  { %6199 = vmatpush2.bf16.msra.mxu0 %v9721_v14  ;;  %v3348_v14 = vld [vmem:[#allocation7 + $0x900] sm:$0xff] }
 0x234   :  { %6240 = vmatpush2.bf16.msra.mxu1 %v9849_v17  ;;  %6200 = vmatprep.subr.bf16.mxu0 %v9714_v18  ;;  %v10058_v17 = vcombine.high %v3484_v8, %v3488_v9  ;;  %v9922_v54 = vcombine.high %v3348_v14, %v3352_v15  ;;  %v9921_v61 = vcombine.low %v3348_v14, %v3352_v15  ;;  %v3460_v41 = vld [vmem:[#allocation7 + $0xc80] sm:$0xff] }
 0x235   :  { %6241 = vmatprep.subr.bf16.mxu1 %v9842_v24  ;;  %v3476_v24 = vld [vmem:[#allocation7 + $0xd00] sm:$0xff] }
 0x236   :  { %v10050_v20 = vcombine.high %v3476_v24, %v3480_v53  ;;  %v3464_v19 = vld [vmem:[#allocation7 + $0xca0] sm:$0xff] }
 0x237   :  { %6201 = vmatpush2.bf16.msra.mxu0 %v9713_v30  ;;  %v10057_v30 = vcombine.low %v3484_v8, %v3488_v9  ;;  %v3328_v46 = vld [vmem:[#allocation7 + $0x860] sm:$0xff]  ;;  %v10034_v47 = vcombine.high %v3460_v41, %v3464_v19  ;;  %v10033_v0 = vcombine.low %v3460_v41, %v3464_v19 }
 0x238   :  { %6242 = vmatpush2.bf16.msra.mxu1 %v9841_v31  ;;  %6202 = vmatprep.subr.bf16.mxu0 %v9706_v33  ;;  %v3340_v33 = vld [vmem:[#allocation7 + $0x8c0] sm:$0xff] }
 0x239   :  { %6243 = vmatprep.subr.bf16.mxu1 %v9834_v49  ;;  %v3344_v49 = vld [vmem:[#allocation7 + $0x8e0] sm:$0xff] }
 0x23a   :  { %v9914_v36 = vcombine.high %v3340_v33, %v3344_v49  ;;  %v9913_v43 = vcombine.low %v3340_v33, %v3344_v49  ;;  %v3452_v50 = vld [vmem:[#allocation7 + $0xc40] sm:$0xff] }
 0x23b   :  { %6203 = vmatpush2.bf16.msra.mxu0 %v9705_v37  ;;  %v10049_v37 = vcombine.low %v3476_v24, %v3480_v53  ;;  %v3444_v6 = vld [vmem:[#allocation7 + $0xc00] sm:$0xff] }
 0x23c   :  { %6244 = vmatpush2.bf16.msra.mxu1 %v9833_v23  ;;  %6204 = vmatprep.subr.bf16.mxu0 %v9698_v38  ;;  %v11446_v23 = vld [vmem:[#allocation7 + $0x5c8] sm:$0xff]  ;;  %v3448_v29 = vld [vmem:[#allocation7 + $0xc20] sm:$0xff] }
 0x23d   :  { %6245 = vmatprep.subr.bf16.mxu1 %v9826_v39  ;;  %v11448_v38 = vld [vmem:[#allocation7 + $0x5e8] sm:$0xff]  ;;  %v3336_v39 = vld [vmem:[#allocation7 + $0x8a0] sm:$0xff]  ;;  %v10017_v24 = vcombine.low %v3444_v6, %v3448_v29 }
 0x23e   :  { %v9819_v58 = vcombine.low %v11446_v23, %v11448_v38  ;;  %v9905_v57 = vcombine.low %v3332_v32, %v3336_v39  ;;  %v3564_v14 = vld [vmem:[#allocation7 + $0xfc0] sm:$0xff] }
 0x23f   :  { %6205 = vmatpush2.bf16.msra.mxu0 %v9697_v25  ;;  %v9906_v25 = vcombine.high %v3332_v32, %v3336_v39  ;;  %v3568_v15 = vld [vmem:[#allocation7 + $0xfe0] sm:$0xff] }
 0x240   :  { %6246 = vmatpush2.bf16.msra.mxu1 %v9825_v44  ;;  %6256 = vmatprep.subr.bf16.mxu0 %v9946_v45  ;;  %v10041_v44 = vcombine.low %v3468_v34, %v3472_v35  ;;  %v3324_v45 = vld [vmem:[#allocation7 + $0x840] sm:$0xff]  ;;  %v10137_v33 = vcombine.low %v3564_v14, %v3568_v15 }
 0x241   :  { %6297 = vmatprep.subr.bf16.mxu1 %v10074_v56  ;;  %v3456_v56 = vld [vmem:[#allocation7 + $0xc60] sm:$0xff]  ;;  %v9898_v63 = vcombine.high %v3324_v45, %v3328_v46 }
 0x242   :  { %v11436_v52 = vpop.f32.mrf.mxu0  ;;  %6207 = vmatmul.mubr.bf16.vlgmr.msra.gmra.mxu0 %v11432_v2  ;;  %v10025_v9 = vcombine.low %v3452_v50, %v3456_v56  ;;  %v3428_v53 = vld [vmem:[#allocation7 + $0xb80] sm:$0xff] }
 0x243   :  { %v11439_v10 = vpop.f32.mrf.mxu1  ;;  %6248 = vmatmul.mubr.bf16.vlgmr.msra.gmra.mxu1 %v11434_v4  ;;  %6257 = vmatpush1.bf16.msra.mxu0 %v9945_v1  ;;  %v3316_v1 = vld [vmem:[#allocation7 + $0x800] sm:$0xff] }
 0x244   :  { %v11442_v59 = vpop.f32.mrf.mxu0  ;;  %6258 = vmatprep.subr.bf16.mxu0 %v9938_v16  ;;  %6298 = vmatpush1.bf16.msra.mxu1 %v10073_v3  ;;  %v3320_v16 = vld [vmem:[#allocation7 + $0x820] sm:$0xff]  ;;  %v10026_v3 = vcombine.high %v3452_v50, %v3456_v56 }
 0x245   :  { %v11444_v13 = vpop.f32.mrf.mxu1  ;;  %6299 = vmatprep.subr.bf16.mxu1 %v10066_v48  ;;  %v9897_v48 = vcombine.low %v3324_v45, %v3328_v46  ;;  %v9890_v8 = vcombine.high %v3316_v1, %v3320_v16  ;;  %v3420_v49 = vld [vmem:[#allocation7 + $0xb40] sm:$0xff] }
 0x246   :  { %v2820_v18 = vpop.f32.mrf.mxu0  ;;  %v3548_v35 = vld [vmem:[#allocation7 + $0xf40] sm:$0xff] }
 0x247   :  { %v2861_v55 = vpop.f32.mrf.mxu1  ;;  %6259 = vmatpush1.bf16.msra.mxu0 %v9937_v11  ;;  %v3436_v11 = vld [vmem:[#allocation7 + $0xbc0] sm:$0xff] }
 0x248   :  { %v2821_v27 = vpop.f32.mrf.mxu0  ;;  %6260 = vmatprep.subr.bf16.mxu0 %v9930_v12  ;;  %6300 = vmatpush1.bf16.msra.mxu1 %v10065_v28  ;;  %v3440_v12 = vld [vmem:[#allocation7 + $0xbe0] sm:$0xff]  ;;  %v10018_v28 = vcombine.high %v3444_v6, %v3448_v29 }
 0x249   :  { %v2862_v31 = vpop.f32.mrf.mxu1  ;;  %6301 = vmatprep.subr.bf16.mxu1 %v10058_v17  ;;  %v9889_v17 = vcombine.low %v3316_v1, %v3320_v16  ;;  %v10010_v18 = vcombine.high %v3436_v11, %v3440_v12  ;;  %v3432_v55 = vld [vmem:[#allocation7 + $0xba0] sm:$0xff] }
 0x24a   :  { %v3556_v27 = vld [vmem:[#allocation7 + $0xf80] sm:$0xff]  ;;  %v10002_v31 = vcombine.high %v3428_v53, %v3432_v55 }
 0x24b   :  { %6261 = vmatpush1.bf16.msra.mxu0 %v9929_v26  ;;  %v10138_v26 = vcombine.high %v3564_v14, %v3568_v15  ;;  %v3412_v39 = vld [vmem:[#allocation7 + $0xb00] sm:$0xff] }
 0x24c   :  { %6262 = vmatprep.subr.bf16.mxu0 %v9922_v54  ;;  %6302 = vmatpush1.bf16.msra.mxu1 %v10057_v30  ;;  %v3560_v54 = vld [vmem:[#allocation7 + $0xfa0] sm:$0xff]  ;;  %v10009_v30 = vcombine.low %v3436_v11, %v3440_v12 }
 0x24d   :  { %6303 = vmatprep.subr.bf16.mxu1 %v10050_v20  ;;  %v3424_v20 = vld [vmem:[#allocation7 + $0xb60] sm:$0xff]  ;;  %v10130_v34 = vcombine.high %v3556_v27, %v3560_v54  ;;  %v10129_v32 = vcombine.low %v3556_v27, %v3560_v54 }
 0x24e   :  { %v3540_v19 = vld [vmem:[#allocation7 + $0xf00] sm:$0xff] }
 0x24f   :  { %6263 = vmatpush1.bf16.msra.mxu0 %v9921_v61  ;;  %v3552_v61 = vld [vmem:[#allocation7 + $0xf60] sm:$0xff] }
 0x250   :  { %6264 = vmatprep.subr.bf16.mxu0 %v9914_v36  ;;  %6304 = vmatpush1.bf16.msra.mxu1 %v10049_v37  ;;  %v10001_v36 = vcombine.low %v3428_v53, %v3432_v55  ;;  %v9994_v37 = vcombine.high %v3420_v49, %v3424_v20  ;;  %v10122_v41 = vcombine.high %v3548_v35, %v3552_v61  ;;  %v3404_v46 = vld [vmem:[#allocation7 + $0xac0] sm:$0xff]  ;;  %v573_v55 = vsub.s32 4, %v11364_v42 }
 0x251   :  { %6305 = vmatprep.subr.bf16.mxu1 %v10042_v40  ;;  %v3416_v40 = vld [vmem:[#allocation7 + $0xb20] sm:$0xff]  ;;  %v10121_v45 = vcombine.low %v3548_v35, %v3552_v61  ;;  %v3117_v61 = vld [vmem:[#allocation7 + $0x1c8] sm:$0xff] }
 0x252   :  { %v3532_v56 = vld [vmem:[#allocation7 + $0xec0] sm:$0xff]  ;;  %v574_v35 = vrot.slane %v11422_v7, %v573_v55 }
 0x253   :  { %6265 = vmatpush1.bf16.msra.mxu0 %v9913_v43  ;;  %v3544_v43 = vld [vmem:[#allocation7 + $0xf20] sm:$0xff] }
 0x254   :  { %6266 = vmatprep.subr.bf16.mxu0 %v9906_v25  ;;  %6306 = vmatpush1.bf16.msra.mxu1 %v10041_v44  ;;  %v9993_v25 = vcombine.low %v3420_v49, %v3424_v20  ;;  %v9986_v44 = vcombine.high %v3412_v39, %v3416_v40  ;;  %v10114_v50 = vcombine.high %v3540_v19, %v3544_v43  ;;  %v3396_v16 = vld [vmem:[#allocation7 + $0xa80] sm:$0xff] }
 0x255   :  { %6307 = vmatprep.subr.bf16.mxu1 %v10034_v47  ;;  %v3408_v47 = vld [vmem:[#allocation7 + $0xae0] sm:$0xff]  ;;  %v10113_v1 = vcombine.low %v3540_v19, %v3544_v43  ;;  %v2817_v19 = vadd.f32 %v11436_v52, %v574_v35  ;;  %v9820_v43 = vcombine.high %v11446_v23, %v11448_v38  ;;  %v3069_v35 = vld [vmem:[#allocation7 + $0x48] sm:$0xff] }
 0x256   :  { %v3524_v29 = vld [vmem:[#allocation7 + $0xe80] sm:$0xff] }
 0x257   :  { %6267 = vmatpush1.bf16.msra.mxu0 %v9905_v57  ;;  %v3536_v57 = vld [vmem:[#allocation7 + $0xee0] sm:$0xff] }
 0x258   :  { %6268 = vmatprep.subr.bf16.mxu0 %v9898_v63  ;;  %6308 = vmatpush1.bf16.msra.mxu1 %v10033_v0  ;;  %v9985_v63 = vcombine.low %v3412_v39, %v3416_v40  ;;  %v9978_v0 = vcombine.high %v3404_v46, %v3408_v47  ;;  %v10106_v6 = vcombine.high %v3532_v56, %v3536_v57  ;;  %v3388_v12 = vld [vmem:[#allocation7 + $0xa40] sm:$0xff] }
 0x259   :  { %6309 = vmatprep.subr.bf16.mxu1 %v10026_v3  ;;  %v3400_v3 = vld [vmem:[#allocation7 + $0xaa0] sm:$0xff]  ;;  %v10105_v11 = vcombine.low %v3532_v56, %v3536_v57 }
 0x25a   :  { %v3516_v15 = vld [vmem:[#allocation7 + $0xe40] sm:$0xff] }
 0x25b   :  { %6269 = vmatpush1.bf16.msra.mxu0 %v9897_v48  ;;  %v3528_v48 = vld [vmem:[#allocation7 + $0xea0] sm:$0xff] }
 0x25c   :  { %6270 = vmatprep.subr.bf16.mxu0 %v9890_v8  ;;  %6310 = vmatpush1.bf16.msra.mxu1 %v10025_v9  ;;  %v9977_v8 = vcombine.low %v3404_v46, %v3408_v47  ;;  %v9970_v9 = vcombine.high %v3396_v16, %v3400_v3  ;;  %v10098_v14 = vcombine.high %v3524_v29, %v3528_v48  ;;  %v3384_v27 = vld [vmem:[#allocation7 + $0xa20] sm:$0xff] }
 0x25d   :  { %6311 = vmatprep.subr.bf16.mxu1 %v10018_v28  ;;  %v3392_v28 = vld [vmem:[#allocation7 + $0xa60] sm:$0xff]  ;;  %v10097_v53 = vcombine.low %v3524_v29, %v3528_v48 }
 0x25e   :  { %v9961_v49 = vcombine.low %v3388_v12, %v3392_v28 }
 0x25f   :  { %6271 = vmatpush1.bf16.msra.mxu0 %v9889_v17  ;;  %v3520_v17 = vld [vmem:[#allocation7 + $0xe60] sm:$0xff] }
 0x260   :  { %6272 = vmatprep.subr.bf16.mxu0 %v10010_v18  ;;  %6312 = vmatpush1.bf16.msra.mxu1 %v10017_v24  ;;  %v9969_v18 = vcombine.low %v3396_v16, %v3400_v3  ;;  %v9962_v24 = vcombine.high %v3388_v12, %v3392_v28  ;;  %v10090_v54 = vcombine.high %v3516_v15, %v3520_v17  ;;  %v3101_v12 = vld [vmem:[#allocation7 + $0x148] sm:$0xff] }
 0x261   :  { %6313 = vmatprep.subr.bf16.mxu1 %v10138_v26  ;;  %v3380_v26 = vld [vmem:[#allocation7 + $0xa00] sm:$0xff]  ;;  %v3105_v28 = vld [vmem:[#allocation7 + $0x168] sm:$0xff] }
 0x262   :  { %v9954_v20 = vcombine.high %v3380_v26, %v3384_v27  ;;  %v9953_v39 = vcombine.low %v3380_v26, %v3384_v27  ;;  %v3085_v26 = vld [vmem:[#allocation7 + $0xc8] sm:$0xff] }
 0x263   :  { %6273 = vmatpush2.bf16.msra.mxu0 %v10009_v30  ;;  %v3508_v30 = vld [vmem:[#allocation7 + $0xe00] sm:$0xff]  ;;  %v3089_v27 = vld [vmem:[#allocation7 + $0xe8] sm:$0xff] }
 0x264   :  { %6274 = vmatprep.subr.bf16.mxu0 %v10002_v31  ;;  %6314 = vmatpush2.bf16.msra.mxu1 %v10137_v33  ;;  %v3512_v31 = vld [vmem:[#allocation7 + $0xe20] sm:$0xff]  ;;  %v577_v33 = vsub.s32 5, %v11364_v42 }
 0x265   :  { %6315 = vmatprep.subr.bf16.mxu1 %v10130_v34  ;;  %v10089_v34 = vcombine.low %v3516_v15, %v3520_v17  ;;  %v9676_v15 = vcombine.high %v3101_v12, %v3105_v28  ;;  %v3093_v17 = vld [vmem:[#allocation7 + $0x108] sm:$0xff] }
 0x267   :  { %6275 = vmatpush2.bf16.msra.mxu0 %v10001_v36  ;;  %v3121_v36 = vld [vmem:[#allocation7 + $0x1e8] sm:$0xff] }
 0x268   :  { %6276 = vmatprep.subr.bf16.mxu0 %v9994_v37  ;;  %6316 = vmatpush2.bf16.msra.mxu1 %v10129_v32  ;;  %v10082_v37 = vcombine.high %v3508_v30, %v3512_v31  ;;  %v578_v32 = vrot.slane %v11422_v7, %v577_v33  ;;  %v9692_v40 = vcombine.high %v3117_v61, %v3121_v36 }
 0x269   :  { %6317 = vmatprep.subr.bf16.mxu1 %v10122_v41  ;;  %v10081_v41 = vcombine.low %v3508_v30, %v3512_v31  ;;  %v9660_v30 = vcombine.high %v3085_v26, %v3089_v27  ;;  %v3077_v31 = vld [vmem:[#allocation7 + $0x88] sm:$0xff] }
 0x26b   :  { %6277 = vmatpush2.bf16.msra.mxu0 %v9993_v25  ;;  %v2819_v25 = vadd.f32 %v11442_v59, %v578_v32  ;;  %v3061_v32 = vld [vmem:[#allocation7 + $0x8] sm:$0xff] }
 0x26c   :  { %6278 = vmatprep.subr.bf16.mxu0 %v9986_v44  ;;  %6318 = vmatpush2.bf16.msra.mxu1 %v10121_v45  ;;  %v2858_v44 = vadd.f32 %v11439_v10, %v2817_v19  ;;  %v3109_v10 = vld [vmem:[#allocation7 + $0x188] sm:$0xff] }
 0x26d   :  { %6319 = vmatprep.subr.bf16.mxu1 %v10114_v50  ;;  %v2860_v46 = vadd.f32 %v11444_v13, %v2819_v25  ;;  %v3181_v19 = vld [vmem:[#allocation7 + $0x3c8] sm:$0xff] }
 0x26f   :  { %6279 = vmatpush2.bf16.msra.mxu0 %v9985_v63 }
 0x270   :  { %6280 = vmatprep.subr.bf16.mxu0 %v9978_v0  ;;  %6320 = vmatpush2.bf16.msra.mxu1 %v10113_v1 }
 0x271   :  { %6321 = vmatprep.subr.bf16.mxu1 %v10106_v6  ;;  %v3113_v6 = vld [vmem:[#allocation7 + $0x1a8] sm:$0xff] }
 0x273   :  { %6281 = vmatpush2.bf16.msra.mxu0 %v9977_v8  ;;  %v9691_v8 = vcombine.low %v3117_v61, %v3121_v36  ;;  %v3073_v61 = vld [vmem:[#allocation7 + $0x68] sm:$0xff] }
 0x274   :  { %6282 = vmatprep.subr.bf16.mxu0 %v9970_v9  ;;  %6322 = vmatpush2.bf16.msra.mxu1 %v10105_v11  ;;  %v9684_v11 = vcombine.high %v3109_v10, %v3113_v6 }
 0x275   :  { %6323 = vmatprep.subr.bf16.mxu1 %v10098_v14  ;;  %v9683_v14 = vcombine.low %v3109_v10, %v3113_v6  ;;  %v3149_v6 = vld [vmem:[#allocation7 + $0x2c8] sm:$0xff] }
 0x277   :  { %6283 = vmatpush2.bf16.msra.mxu0 %v9969_v18  ;;  %v3097_v18 = vld [vmem:[#allocation7 + $0x128] sm:$0xff] }
 0x278   :  { %6284 = vmatprep.subr.bf16.mxu0 %v9962_v24  ;;  %6324 = vmatpush2.bf16.msra.mxu1 %v10097_v53  ;;  %v9675_v24 = vcombine.low %v3101_v12, %v3105_v28  ;;  %v9668_v53 = vcombine.high %v3093_v17, %v3097_v18  ;;  %v3145_v12 = vld [vmem:[#allocation7 + $0x2a8] sm:$0xff]  ;;  %v581_v28 = vsub.s32 6, %v11364_v42 }
 0x279   :  { %6325 = vmatprep.subr.bf16.mxu1 %v10090_v54  ;;  %v9667_v54 = vcombine.low %v3093_v17, %v3097_v18  ;;  %v3133_v18 = vld [vmem:[#allocation7 + $0x248] sm:$0xff] }
 0x27b   :  { %6285 = vmatpush2.bf16.msra.mxu0 %v9961_v49  ;;  %v3081_v49 = vld [vmem:[#allocation7 + $0xa8] sm:$0xff] }
 0x27c   :  { %6286 = vmatprep.subr.bf16.mxu0 %v9954_v20  ;;  %6326 = vmatpush2.bf16.msra.mxu1 %v10089_v34  ;;  %v9659_v20 = vcombine.low %v3085_v26, %v3089_v27  ;;  %v9652_v34 = vcombine.high %v3077_v31, %v3081_v49  ;;  %v9651_v36 = vcombine.low %v3077_v31, %v3081_v49  ;;  %v3129_v31 = vld [vmem:[#allocation7 + $0x228] sm:$0xff] }
 0x27d   :  { %6327 = vmatprep.subr.bf16.mxu1 %v10082_v37  ;;  %v9644_v37 = vcombine.high %v3069_v35, %v3073_v61 }
 0x27f   :  { %6287 = vmatpush2.bf16.msra.mxu0 %v9953_v39  ;;  %v3065_v39 = vld [vmem:[#allocation7 + $0x28] sm:$0xff] }
 0x280   :  { %6338 = vmatprep.subr.bf16.mxu0 %v9692_v40  ;;  %6328 = vmatpush2.bf16.msra.mxu1 %v10081_v41  ;;  %v9643_v40 = vcombine.low %v3069_v35, %v3073_v61  ;;  %v9636_v41 = vcombine.high %v3061_v32, %v3065_v39  ;;  %v9635_v25 = vcombine.low %v3061_v32, %v3065_v39  ;;  %v3373_v39 = vld [vmem:[#allocation7 + $0x9c8] sm:$0xff] }
 0x281   :  { %6379 = vmatprep.subr.bf16.mxu1 %v9820_v43  ;;  %v3185_v43 = vld [vmem:[#allocation7 + $0x3e8] sm:$0xff] }
 0x282   :  { %v2898_v45 = vpop.f32.mrf.mxu0 }
 0x283   :  { %v2899_v47 = vadd.f32 %v2898_v45, %v2858_v44  ;;  %v11466_v50 = vpop.f32.mrf.mxu1  ;;  %v9756_v44 = vcombine.high %v3181_v19, %v3185_v43  ;;  %v3173_v45 = vld [vmem:[#allocation7 + $0x388] sm:$0xff] }
 0x284   :  { %v2900_v56 = vpop.f32.mrf.mxu0 }
 0x285   :  { %vm3032_vm4 = vcmp.gt.f32.partialorder %v2899_v47, 0.0  ;;  %v3040_v52 = vmul.f32 0.01, %v2899_v47  ;;  %v2901_v57 = vadd.f32 %v2900_v56, %v2860_v46  ;;  %v11468_v63 = vpop.f32.mrf.mxu1  ;;  %v3177_v46 = vld [vmem:[#allocation7 + $0x3a8] sm:$0xff] }
 0x286   :  { %v2902_v0 = vpop.f32.mrf.mxu0  ;;  %v9748_v56 = vcombine.high %v3173_v45, %v3177_v46 }
 0x287   :  { %vm3033_vm5 = vcmp.gt.f32.partialorder %v2901_v57, 0.0  ;;  %v3041_v59 = vmul.f32 0.01, %v2901_v57  ;;  %v2943_v1 = vpop.f32.mrf.mxu1  ;;  %v3048_v16 = vsel %vm3032_vm4, %v2899_v47, %v3040_v52  ;;  %v9755_v47 = vcombine.low %v3181_v19, %v3185_v43  ;;  %v3165_v52 = vld [vmem:[#allocation7 + $0x348] sm:$0xff] }
 0x288   :  { %v2903_v3 = vpop.f32.mrf.mxu0  ;;  %v11472_v9 = vpack.c.bf16 %v3048_v16, %v3048_v16  ;;  %v9747_v0 = vcombine.low %v3173_v45, %v3177_v46  ;;  %v3157_v1 = vld [vmem:[#allocation7 + $0x308] sm:$0xff]  ;;  %vm11219_vm4 = vmmov 0  }
 0x289   :  { %v3049_v29 = vsel %vm3033_vm5, %v2901_v57, %v3041_v59  ;;  %v2944_v48 = vpop.f32.mrf.mxu1  ;;  %v3169_v57 = vld [vmem:[#allocation7 + $0x368] sm:$0xff] }
 0x28a   :  { %v11470_v13 = vpack.c.bf16 %v3049_v29, %v3049_v29  ;;  %v9740_v59 = vcombine.high %v3165_v52, %v3169_v57  ;;  %v3161_v16 = vld [vmem:[#allocation7 + $0x328] sm:$0xff]  ;;  %v9739_v3 = vcombine.low %v3165_v52, %v3169_v57 }
 0x28b   :  { %v9732_v10 = vcombine.high %v3157_v1, %v3161_v16  ;;  %v3153_v29 = vld [vmem:[#allocation7 + $0x2e8] sm:$0xff]  ;;  %v9731_v48 = vcombine.low %v3157_v1, %v3161_v16 }
 0x28c   :  { %6288 = vmatprep.mubr.bf16.mxu0 %v11470_v13 }
 0x28d   :  { %6289 = vmatmul.mubr.bf16.vlgmr.msra.gmra.mxu0 %v11472_v9 }
 0x28e   :  { %6339 = vmatpush1.bf16.msra.mxu0 %v9691_v8  ;;  %6370 = vmatprep.mubr.bf16.mxu0 %v11406_v22  ;;  %v9724_v8 = vcombine.high %v3149_v6, %v3153_v29 }
 0x28f   :  { %6340 = vmatprep.subr.bf16.mxu0 %v9684_v11  ;;  %v3141_v11 = vld [vmem:[#allocation7 + $0x288] sm:$0xff] }
 0x290   :  { %v9716_v17 = vcombine.high %v3141_v11, %v3145_v12  ;;  %v9715_v26 = vcombine.low %v3141_v11, %v3145_v12 }
 0x292   :  { %6341 = vmatpush1.bf16.msra.mxu0 %v9683_v14  ;;  %v9723_v14 = vcombine.low %v3149_v6, %v3153_v29  ;;  %v3357_v29 = vld [vmem:[#allocation7 + $0x948] sm:$0xff] }
 0x293   :  { %6342 = vmatprep.subr.bf16.mxu0 %v9676_v15  ;;  %v585_v15 = vsub.s32 7, %v11364_v42 }
 0x295   :  { %v586_v27 = vrot.slane %v11422_v7, %v585_v15 }
 0x296   :  { %6343 = vmatpush1.bf16.msra.mxu0 %v9675_v24  ;;  %v3137_v24 = vld [vmem:[#allocation7 + $0x268] sm:$0xff] }
 0x297   :  { %6344 = vmatprep.subr.bf16.mxu0 %v9668_v53  ;;  %v582_v53 = vrot.slane %v11422_v7, %v581_v28  ;;  %v2942_v35 = vadd.f32 %v11468_v63, %v586_v27 }
 0x299   :  { %v2940_v49 = vadd.f32 %v11466_v50, %v582_v53  ;;  %v3353_v53 = vld [vmem:[#allocation7 + $0x928] sm:$0xff] }
 0x29a   :  { %6345 = vmatpush1.bf16.msra.mxu0 %v9667_v54  ;;  %v9708_v54 = vcombine.high %v3133_v18, %v3137_v24 }
 0x29b   :  { %6346 = vmatprep.subr.bf16.mxu0 %v9660_v30  ;;  %v3125_v30 = vld [vmem:[#allocation7 + $0x208] sm:$0xff] }
 0x29e   :  { %6347 = vmatpush1.bf16.msra.mxu0 %v9659_v20 }
 0x29f   :  { %6348 = vmatprep.subr.bf16.mxu0 %v9652_v34  ;;  %v9707_v34 = vcombine.low %v3133_v18, %v3137_v24  ;;  %v3233_v18 = vld [vmem:[#allocation7 + $0x568] sm:$0xff] }
 0x2a0   :  { %v3349_v24 = vld [vmem:[#allocation7 + $0x908] sm:$0xff] }
 0x2a2   :  { %6349 = vmatpush1.bf16.msra.mxu0 %v9651_v36 }
 0x2a3   :  { %6350 = vmatprep.subr.bf16.mxu0 %v9644_v37  ;;  %v9700_v37 = vcombine.high %v3125_v30, %v3129_v31 }
 0x2a6   :  { %6351 = vmatpush1.bf16.msra.mxu0 %v9643_v40  ;;  %v3377_v40 = vld [vmem:[#allocation7 + $0x9e8] sm:$0xff] }
 0x2a7   :  { %6352 = vmatprep.subr.bf16.mxu0 %v9636_v41  ;;  %v9948_v46 = vcombine.high %v3373_v39, %v3377_v40 }
 0x2aa   :  { %6353 = vmatpush1.bf16.msra.mxu0 %v9635_v25  ;;  %v9699_v25 = vcombine.low %v3125_v30, %v3129_v31  ;;  %v9924_v30 = vcombine.high %v3349_v24, %v3353_v53  ;;  %v3221_v31 = vld [vmem:[#allocation7 + $0x508] sm:$0xff] }
 0x2ab   :  { %6354 = vmatprep.subr.bf16.mxu0 %v9756_v44 }
 0x2ae   :  { %6355 = vmatpush2.bf16.msra.mxu0 %v9755_v47  ;;  %v3365_v47 = vld [vmem:[#allocation7 + $0x988] sm:$0xff] }
 0x2af   :  { %6356 = vmatprep.subr.bf16.mxu0 %v9748_v56  ;;  %v3369_v56 = vld [vmem:[#allocation7 + $0x9a8] sm:$0xff] }
 0x2b0   :  { %v9940_v16 = vcombine.high %v3365_v47, %v3369_v56  ;;  %v9939_v11 = vcombine.low %v3365_v47, %v3369_v56  ;;  %v3197_v47 = vld [vmem:[#allocation7 + $0x448] sm:$0xff] }
 0x2b1   :  { %v3201_v56 = vld [vmem:[#allocation7 + $0x468] sm:$0xff] }
 0x2b2   :  { %6357 = vmatpush2.bf16.msra.mxu0 %v9747_v0  ;;  %v9947_v0 = vcombine.low %v3373_v39, %v3377_v40 }
 0x2b3   :  { %6358 = vmatprep.subr.bf16.mxu0 %v9740_v59 }
 0x2b6   :  { %6359 = vmatpush2.bf16.msra.mxu0 %v9739_v3  ;;  %v3237_v3 = vld [vmem:[#allocation7 + $0x588] sm:$0xff] }
 0x2b7   :  { %6360 = vmatprep.subr.bf16.mxu0 %v9732_v10  ;;  %v3241_v10 = vld [vmem:[#allocation7 + $0x5a8] sm:$0xff] }
 0x2b8   :  { %v9812_v12 = vcombine.high %v3237_v3, %v3241_v10 }
 0x2ba   :  { %6361 = vmatpush2.bf16.msra.mxu0 %v9731_v48  ;;  %v3361_v48 = vld [vmem:[#allocation7 + $0x968] sm:$0xff] }
 0x2bb   :  { %6362 = vmatprep.subr.bf16.mxu0 %v9724_v8  ;;  %v9931_v27 = vcombine.low %v3357_v29, %v3361_v48 }
 0x2be   :  { %6363 = vmatpush2.bf16.msra.mxu0 %v9723_v14  ;;  %v9932_v14 = vcombine.high %v3357_v29, %v3361_v48  ;;  %v3437_v29 = vld [vmem:[#allocation7 + $0xbc8] sm:$0xff] }
 0x2bf   :  { %6364 = vmatprep.subr.bf16.mxu0 %v9716_v17  ;;  %v3229_v17 = vld [vmem:[#allocation7 + $0x548] sm:$0xff] }
 0x2c0   :  { %v3441_v48 = vld [vmem:[#allocation7 + $0xbe8] sm:$0xff] }
 0x2c2   :  { %6365 = vmatpush2.bf16.msra.mxu0 %v9715_v26  ;;  %v2980_v20 = vpop.f32.mrf.mxu0  ;;  %v9811_v26 = vcombine.low %v3237_v3, %v3241_v10  ;;  %v3189_v3 = vld [vmem:[#allocation7 + $0x408] sm:$0xff] }
 0x2c3   :  { %v2981_v61 = vadd.f32 %v2980_v20, %v2940_v49  ;;  %v3021_v36 = vpop.f32.mrf.mxu1  ;;  %6366 = vmatprep.subr.bf16.mxu0 %v9708_v54  ;;  %v9804_v54 = vcombine.high %v3229_v17, %v3233_v18  ;;  %v3225_v49 = vld [vmem:[#allocation7 + $0x528] sm:$0xff] }
 0x2c4   :  { %v2982_v32 = vpop.f32.mrf.mxu0  ;;  %v3341_v20 = vld [vmem:[#allocation7 + $0x8c8] sm:$0xff]  ;;  %v9796_v23 = vcombine.high %v3221_v31, %v3225_v49  ;;  %v9795_v39 = vcombine.low %v3221_v31, %v3225_v49 }
 0x2c5   :  { %v3022_v41 = vadd.f32 %v3021_v36, %v2981_v61  ;;  %v2983_v7 = vadd.f32 %v2982_v32, %v2942_v35  ;;  %v3023_v19 = vpop.f32.mrf.mxu1  ;;  %v9803_v35 = vcombine.low %v3229_v17, %v3233_v18  ;;  %v9923_v61 = vcombine.low %v3349_v24, %v3353_v53  ;;  %v3217_v36 = vld [vmem:[#allocation7 + $0x4e8] sm:$0xff] }
 0x2c6   :  { %6367 = vmatpush2.bf16.msra.mxu0 %v9707_v34  ;;  %v2984_v43 = vpop.f32.mrf.mxu0  ;;  %v3345_v34 = vld [vmem:[#allocation7 + $0x8e8] sm:$0xff]  ;;  %v10012_v17 = vcombine.high %v3437_v29, %v3441_v48 }
 0x2c7   :  { %v3042_v44 = vmul.f32 0.01, %v3022_v41  ;;  %v3024_v50 = vadd.f32 %v3023_v19, %v2983_v7  ;;  %v3025_v45 = vpop.f32.mrf.mxu1  ;;  %6368 = vmatprep.subr.bf16.mxu0 %v9700_v37  ;;  %vm3034_vm6 = vcmp.gt.f32.partialorder %v3022_v41, 0.0  ;;  %v9916_v38 = vcombine.high %v3341_v20, %v3345_v34  ;;  %v3333_v37 = vld [vmem:[#allocation7 + $0x888] sm:$0xff] }
 0x2c8   :  { %v2985_v63 = vpop.f32.mrf.mxu0  ;;  %v3337_v32 = vld [vmem:[#allocation7 + $0x8a8] sm:$0xff]  ;;  %v9915_v40 = vcombine.low %v3341_v20, %v3345_v34 }
 0x2c9   :  { %vm3035_vm7 = vcmp.gt.f32.partialorder %v3024_v50, 0.0  ;;  %v3043_v52 = vmul.f32 0.01, %v3024_v50  ;;  %v3026_v57 = vpop.f32.mrf.mxu1  ;;  %v3050_v59 = vsel %vm3034_vm6, %v3022_v41, %v3042_v44  ;;  %v9908_v7 = vcombine.high %v3333_v37, %v3337_v32  ;;  %v3205_v19 = vld [vmem:[#allocation7 + $0x488] sm:$0xff] }
 0x2ca   :  { %6369 = vmatpush2.bf16.msra.mxu0 %v9699_v25  ;;  %v11490_v8 = vpack.c.bf16 %v3050_v59, %v3050_v59  ;;  %v3209_v43 = vld [vmem:[#allocation7 + $0x4a8] sm:$0xff]  ;;  %v9907_v45 = vcombine.low %v3333_v37, %v3337_v32 }
 0x2cb   :  { %v3051_v1 = vsel %vm3035_vm7, %v3024_v50, %v3043_v52  ;;  %6420 = vmatprep.subr.bf16.mxu0 %v9948_v46  ;;  %v3325_v25 = vld [vmem:[#allocation7 + $0x848] sm:$0xff]  ;;  %v9780_v46 = vcombine.high %v3205_v19, %v3209_v43 }
 0x2cc   :  { %v11487_v6 = vpack.c.bf16 %v3051_v1, %v3051_v1  ;;  %v3329_v44 = vld [vmem:[#allocation7 + $0x868] sm:$0xff]  ;;  %v9772_v1 = vcombine.high %v3197_v47, %v3201_v56 }
 0x2cd   :  { %6371 = vmatmul.mubr.bf16.vlgmr.msra.gmra.mxu0 %v11432_v2  ;;  %v9900_v63 = vcombine.high %v3325_v25, %v3329_v44  ;;  %v3317_v52 = vld [vmem:[#allocation7 + $0x808] sm:$0xff]  ;;  %v9899_v59 = vcombine.low %v3325_v25, %v3329_v44 }
 0x2ce   :  { %6421 = vmatpush1.bf16.msra.mxu0 %v9947_v0  ;;  %6452 = vmatprep.mubr.bf16.mxu0 %v11470_v13  ;;  %v3321_v57 = vld [vmem:[#allocation7 + $0x828] sm:$0xff]  ;;  %v9779_v0 = vcombine.low %v3205_v19, %v3209_v43 }
 0x2cf   :  { %6329 = vmatprep.mubr.bf16.mxu1 %v11487_v6  ;;  %6422 = vmatprep.subr.bf16.mxu0 %v9940_v16  ;;  %v9892_v16 = vcombine.high %v3317_v52, %v3321_v57  ;;  %v3193_v10 = vld [vmem:[#allocation7 + $0x428] sm:$0xff] }
 0x2d0   :  { %6330 = vmatmul.mubr.bf16.vlgmr.msra.gmra.mxu1 %v11490_v8  ;;  %v3309_v18 = vld [vmem:[#allocation7 + $0x7c8] sm:$0xff] }
 0x2d1   :  { %6380 = vmatpush1.bf16.msra.mxu1 %v9819_v58  ;;  %6411 = vmatprep.mubr.bf16.mxu1 %v11416_v62  ;;  %v3213_v58 = vld [vmem:[#allocation7 + $0x4c8] sm:$0xff] }
 0x2d2   :  { %6423 = vmatpush1.bf16.msra.mxu0 %v9939_v11  ;;  %6381 = vmatprep.subr.bf16.mxu1 %v9812_v12  ;;  %v9788_v41 = vcombine.high %v3213_v58, %v3217_v36  ;;  %v9787_v50 = vcombine.low %v3213_v58, %v3217_v36  ;;  %v9771_v11 = vcombine.low %v3197_v47, %v3201_v56  ;;  %v3313_v24 = vld [vmem:[#allocation7 + $0x7e8] sm:$0xff] }
 0x2d3   :  { %6424 = vmatprep.subr.bf16.mxu0 %v9932_v14  ;;  %v9891_v12 = vcombine.low %v3317_v52, %v3321_v57  ;;  %v9764_v14 = vcombine.high %v3189_v3, %v3193_v10  ;;  %v3429_v53 = vld [vmem:[#allocation7 + $0xb88] sm:$0xff] }
 0x2d4   :  { %v3301_v49 = vld [vmem:[#allocation7 + $0x788] sm:$0xff] }
 0x2d5   :  { %6382 = vmatpush1.bf16.msra.mxu1 %v9811_v26  ;;  %v3433_v26 = vld [vmem:[#allocation7 + $0xba8] sm:$0xff] }
 0x2d6   :  { %6425 = vmatpush1.bf16.msra.mxu0 %v9931_v27  ;;  %6383 = vmatprep.subr.bf16.mxu1 %v9804_v54  ;;  %v9763_v27 = vcombine.low %v3189_v3, %v3193_v10  ;;  %v10011_v54 = vcombine.low %v3437_v29, %v3441_v48  ;;  %v10004_v31 = vcombine.high %v3429_v53, %v3433_v26  ;;  %v3305_v20 = vld [vmem:[#allocation7 + $0x7a8] sm:$0xff]  ;;  %v3572_v48 = vld [vmem:[#allocation8] sm:$0xff] }
 0x2d7   :  { %6426 = vmatprep.subr.bf16.mxu0 %v9924_v30  ;;  %v9884_v30 = vcombine.high %v3309_v18, %v3313_v24  ;;  %v3421_v34 = vld [vmem:[#allocation7 + $0xb48] sm:$0xff] }
 0x2d8   :  { %v3293_v36 = vld [vmem:[#allocation7 + $0x748] sm:$0xff] }
 0x2d9   :  { %6384 = vmatpush1.bf16.msra.mxu1 %v9803_v35  ;;  %v3425_v35 = vld [vmem:[#allocation7 + $0xb68] sm:$0xff] }
 0x2da   :  { %6427 = vmatpush1.bf16.msra.mxu0 %v9923_v61  ;;  %6385 = vmatprep.subr.bf16.mxu1 %v9796_v23  ;;  %v9883_v61 = vcombine.low %v3309_v18, %v3313_v24  ;;  %v10003_v23 = vcombine.low %v3429_v53, %v3433_v26  ;;  %v9996_v58 = vcombine.high %v3421_v34, %v3425_v35  ;;  %v3297_v37 = vld [vmem:[#allocation7 + $0x768] sm:$0xff] }
 0x2db   :  { %6428 = vmatprep.subr.bf16.mxu0 %v9916_v38  ;;  %v9876_v38 = vcombine.high %v3301_v49, %v3305_v20  ;;  %v3413_v32 = vld [vmem:[#allocation7 + $0xb08] sm:$0xff]  ;;  %v3577_v24 = vrot.slane %v3572_v48, %v11367_v51 }
 0x2dc   :  { %v3285_v43 = vld [vmem:[#allocation7 + $0x708] sm:$0xff] }
 0x2dd   :  { %6386 = vmatpush1.bf16.msra.mxu1 %v9795_v39  ;;  %v3417_v39 = vld [vmem:[#allocation7 + $0xb28] sm:$0xff] }
 0x2de   :  { %6429 = vmatpush1.bf16.msra.mxu0 %v9915_v40  ;;  %6387 = vmatprep.subr.bf16.mxu1 %v9788_v41  ;;  %v9875_v40 = vcombine.low %v3301_v49, %v3305_v20  ;;  %v9995_v41 = vcombine.low %v3421_v34, %v3425_v35  ;;  %v9988_v19 = vcombine.high %v3413_v32, %v3417_v39  ;;  %v3289_v25 = vld [vmem:[#allocation7 + $0x728] sm:$0xff] }
 0x2df   :  { %6430 = vmatprep.subr.bf16.mxu0 %v9908_v7  ;;  %v9868_v7 = vcombine.high %v3293_v36, %v3297_v37  ;;  %v3405_v44 = vld [vmem:[#allocation7 + $0xac8] sm:$0xff]  ;;  %v3581_v49 = vrot.slane %v3572_v48, %v11372_v60  ;;  %v3102_v48 = vld [vmem:[#allocation7 + $0x150] sm:$0xff] }
 0x2e0   :  { %v3277_v56 = vld [vmem:[#allocation7 + $0x6c8] sm:$0xff] }
 0x2e1   :  { %6388 = vmatpush1.bf16.msra.mxu1 %v9787_v50  ;;  %v3409_v50 = vld [vmem:[#allocation7 + $0xae8] sm:$0xff] }
 0x2e2   :  { %6431 = vmatpush1.bf16.msra.mxu0 %v9907_v45  ;;  %6389 = vmatprep.subr.bf16.mxu1 %v9780_v46  ;;  %v9867_v45 = vcombine.low %v3293_v36, %v3297_v37  ;;  %v9987_v46 = vcombine.low %v3413_v32, %v3417_v39  ;;  %v9980_v47 = vcombine.high %v3405_v44, %v3409_v50  ;;  %v3281_v52 = vld [vmem:[#allocation7 + $0x6e8] sm:$0xff]  ;;  %v3118_v32 = vld [vmem:[#allocation7 + $0x1d0] sm:$0xff] }
 0x2e3   :  { %6432 = vmatprep.subr.bf16.mxu0 %v9900_v63  ;;  %v9860_v63 = vcombine.high %v3285_v43, %v3289_v25  ;;  %v3397_v57 = vld [vmem:[#allocation7 + $0xa88] sm:$0xff]  ;;  %v3122_v39 = vld [vmem:[#allocation7 + $0x1f0] sm:$0xff] }
 0x2e4   :  { %v3269_v10 = vld [vmem:[#allocation7 + $0x688] sm:$0xff] }
 0x2e5   :  { %6390 = vmatpush1.bf16.msra.mxu1 %v9779_v0  ;;  %v3401_v0 = vld [vmem:[#allocation7 + $0xaa8] sm:$0xff] }
 0x2e6   :  { %6433 = vmatpush1.bf16.msra.mxu0 %v9899_v59  ;;  %6391 = vmatprep.subr.bf16.mxu1 %v9772_v1  ;;  %v9859_v59 = vcombine.low %v3285_v43, %v3289_v25  ;;  %v9979_v1 = vcombine.low %v3405_v44, %v3409_v50  ;;  %v9972_v3 = vcombine.high %v3397_v57, %v3401_v0  ;;  %v3273_v29 = vld [vmem:[#allocation7 + $0x6a8] sm:$0xff] }
 0x2e7   :  { %6434 = vmatprep.subr.bf16.mxu0 %v9892_v16  ;;  %v9852_v16 = vcombine.high %v3277_v56, %v3281_v52  ;;  %v9844_v18 = vcombine.high %v3269_v10, %v3273_v29  ;;  %v3261_v26 = vld [vmem:[#allocation7 + $0x648] sm:$0xff] }
 0x2e8   :  { %v3257_v36 = vld [vmem:[#allocation7 + $0x628] sm:$0xff] }
 0x2e9   :  { %6392 = vmatpush1.bf16.msra.mxu1 %v9771_v11  ;;  %v3389_v11 = vld [vmem:[#allocation7 + $0xa48] sm:$0xff] }
 0x2ea   :  { %6435 = vmatpush1.bf16.msra.mxu0 %v9891_v12  ;;  %6393 = vmatprep.subr.bf16.mxu1 %v9764_v14  ;;  %v3393_v12 = vld [vmem:[#allocation7 + $0xa68] sm:$0xff]  ;;  %v9851_v14 = vcombine.low %v3277_v56, %v3281_v52  ;;  %v3110_v52 = vld [vmem:[#allocation7 + $0x190] sm:$0xff] }
 0x2eb   :  { %6436 = vmatprep.subr.bf16.mxu0 %v10012_v17  ;;  %v9971_v17 = vcombine.low %v3397_v57, %v3401_v0  ;;  %v9964_v53 = vcombine.high %v3389_v11, %v3393_v12  ;;  %v9963_v34 = vcombine.low %v3389_v11, %v3393_v12  ;;  %v3505_v56 = vld [vmem:[#allocation7 + $0xde8] sm:$0xff]  ;;  %v3114_v57 = vld [vmem:[#allocation7 + $0x1b0] sm:$0xff] }
 0x2ec   :  { %v3106_v11 = vld [vmem:[#allocation7 + $0x170] sm:$0xff] }
 0x2ed   :  { %6394 = vmatpush1.bf16.msra.mxu1 %v9763_v27  ;;  %v3265_v27 = vld [vmem:[#allocation7 + $0x668] sm:$0xff] }
 0x2ee   :  { %6437 = vmatpush2.bf16.msra.mxu0 %v10011_v54  ;;  %6395 = vmatprep.subr.bf16.mxu1 %v9884_v30  ;;  %v3381_v54 = vld [vmem:[#allocation7 + $0xa08] sm:$0xff]  ;;  %v9836_v35 = vcombine.high %v3261_v26, %v3265_v27 }
 0x2ef   :  { %6438 = vmatprep.subr.bf16.mxu0 %v10004_v31  ;;  %v3385_v30 = vld [vmem:[#allocation7 + $0xa28] sm:$0xff]  ;;  %v9843_v31 = vcombine.low %v3269_v10, %v3273_v29 }
 0x2f0   :  { %v9955_v25 = vcombine.low %v3381_v54, %v3385_v30  ;;  %v3493_v10 = vld [vmem:[#allocation7 + $0xd88] sm:$0xff] }
 0x2f1   :  { %6396 = vmatpush2.bf16.msra.mxu1 %v9883_v61  ;;  %v3497_v29 = vld [vmem:[#allocation7 + $0xda8] sm:$0xff] }
 0x2f2   :  { %6439 = vmatpush2.bf16.msra.mxu0 %v10003_v23  ;;  %6397 = vmatprep.subr.bf16.mxu1 %v9876_v38  ;;  %v9956_v38 = vcombine.high %v3381_v54, %v3385_v30  ;;  %v10067_v54 = vcombine.low %v3493_v10, %v3497_v29  ;;  %v9677_v30 = vcombine.low %v3102_v48, %v3106_v11 }
 0x2f3   :  { %6440 = vmatprep.subr.bf16.mxu0 %v9996_v58  ;;  %v3253_v58 = vld [vmem:[#allocation7 + $0x608] sm:$0xff] }
 0x2f4   :  { %v9828_v44 = vcombine.high %v3253_v58, %v3257_v36 }
 0x2f5   :  { %6398 = vmatpush2.bf16.msra.mxu1 %v9875_v40 }
 0x2f6   :  { %6441 = vmatpush2.bf16.msra.mxu0 %v9995_v41  ;;  %6399 = vmatprep.subr.bf16.mxu1 %v9868_v7 }
 0x2f7   :  { %6442 = vmatprep.subr.bf16.mxu0 %v9988_v19  ;;  %v9835_v19 = vcombine.low %v3261_v26, %v3265_v27  ;;  %v3094_v26 = vld [vmem:[#allocation7 + $0x110] sm:$0xff] }
 0x2f8   :  { %v3098_v27 = vld [vmem:[#allocation7 + $0x130] sm:$0xff] }
 0x2f9   :  { %6400 = vmatpush2.bf16.msra.mxu1 %v9867_v45 }
 0x2fa   :  { %6443 = vmatpush2.bf16.msra.mxu0 %v9987_v46  ;;  %6401 = vmatprep.subr.bf16.mxu1 %v9860_v63  ;;  %v9694_v46 = vcombine.high %v3118_v32, %v3122_v39  ;;  %v3501_v63 = vld [vmem:[#allocation7 + $0xdc8] sm:$0xff] }
 0x2fb   :  { %6444 = vmatprep.subr.bf16.mxu0 %v9980_v47  ;;  %v10075_v12 = vcombine.low %v3501_v63, %v3505_v56 }
 0x2fd   :  { %6402 = vmatpush2.bf16.msra.mxu1 %v9859_v59  ;;  %v9827_v59 = vcombine.low %v3253_v58, %v3257_v36 }
 0x2fe   :  { %6445 = vmatpush2.bf16.msra.mxu0 %v9979_v1  ;;  %6403 = vmatprep.subr.bf16.mxu1 %v9852_v16  ;;  %v9693_v1 = vcombine.low %v3118_v32, %v3122_v39  ;;  %v10076_v16 = vcombine.high %v3501_v63, %v3505_v56  ;;  %v3473_v32 = vld [vmem:[#allocation7 + $0xce8] sm:$0xff]  ;;  %v3078_v39 = vld [vmem:[#allocation7 + $0x90] sm:$0xff] }
 0x2ff   :  { %6446 = vmatprep.subr.bf16.mxu0 %v9972_v3  ;;  %v9686_v3 = vcombine.high %v3110_v52, %v3114_v57  ;;  %v3074_v63 = vld [vmem:[#allocation7 + $0x70] sm:$0xff] }
 0x301   :  { %6404 = vmatpush2.bf16.msra.mxu1 %v9851_v14  ;;  %v9685_v14 = vcombine.low %v3110_v52, %v3114_v57 }
 0x302   :  { %6447 = vmatpush2.bf16.msra.mxu0 %v9971_v17  ;;  %v6208_v20 = vpop.f32.mrf.mxu0  ;;  %6405 = vmatprep.subr.bf16.mxu1 %v9844_v18  ;;  %v10068_v17 = vcombine.high %v3493_v10, %v3497_v29  ;;  %v9678_v18 = vcombine.high %v3102_v48, %v3106_v11  ;;  %v3445_v11 = vld [vmem:[#allocation7 + $0xc08] sm:$0xff] }
 0x303   :  { %v6209_v61 = vadd.f32 %v6208_v20, %v3577_v24  ;;  %v6249_v23 = vpop.f32.mrf.mxu1  ;;  %6448 = vmatprep.subr.bf16.mxu0 %v9964_v53  ;;  %v3485_v24 = vld [vmem:[#allocation7 + $0xd48] sm:$0xff] }
 0x304   :  { %v6210_v37 = vpop.f32.mrf.mxu0  ;;  %v3489_v53 = vld [vmem:[#allocation7 + $0xd68] sm:$0xff] }
 0x305   :  { %v11501_v40 = vadd.f32 %v6249_v23, %v6209_v61  ;;  %6406 = vmatpush2.bf16.msra.mxu1 %v9843_v31  ;;  %v6211_v41 = vadd.f32 %v6210_v37, %v3581_v49  ;;  %v6251_v7 = vpop.f32.mrf.mxu1  ;;  %v10060_v31 = vcombine.high %v3485_v24, %v3489_v53  ;;  %v9670_v49 = vcombine.high %v3094_v26, %v3098_v27  ;;  %v3477_v20 = vld [vmem:[#allocation7 + $0xd08] sm:$0xff]  ;;  %v3090_v61 = vld [vmem:[#allocation7 + $0xf0] sm:$0xff] }
 0x306   :  { %6449 = vmatpush2.bf16.msra.mxu0 %v9963_v34  ;;  %v6212_v43 = vpop.f32.mrf.mxu0  ;;  %6407 = vmatprep.subr.bf16.mxu1 %v9836_v35  ;;  %v3481_v34 = vld [vmem:[#allocation7 + $0xd28] sm:$0xff]  ;;  %v3086_v35 = vld [vmem:[#allocation7 + $0xd0] sm:$0xff]  ;;  %v10059_v23 = vcombine.low %v3485_v24, %v3489_v53 }
 0x307   :  { %v11503_v50 = vadd.f32 %v6251_v7, %v6211_v41  ;;  %v6253_v45 = vpop.f32.mrf.mxu1  ;;  %6450 = vmatprep.subr.bf16.mxu0 %v9956_v38  ;;  %v9669_v38 = vcombine.low %v3094_v26, %v3098_v27  ;;  %v10052_v58 = vcombine.high %v3477_v20, %v3481_v34  ;;  %v9662_v36 = vcombine.high %v3086_v35, %v3090_v61  ;;  %v3469_v37 = vld [vmem:[#allocation7 + $0xcc8] sm:$0xff]  ;;  %v3082_v41 = vld [vmem:[#allocation7 + $0xb0] sm:$0xff] }
 0x308   :  { %v6213_v47 = vpop.f32.mrf.mxu0  ;;  %v10051_v7 = vcombine.low %v3477_v20, %v3481_v34  ;;  %v10044_v43 = vcombine.high %v3469_v37, %v3473_v32  ;;  %v3465_v45 = vld [vmem:[#allocation7 + $0xca8] sm:$0xff]  ;;  %v9653_v56 = vcombine.low %v3078_v39, %v3082_v41 }
 0x309   :  { %6408 = vmatpush2.bf16.msra.mxu1 %v9835_v19  ;;  %v6254_v0 = vpop.f32.mrf.mxu1  ;;  %v9661_v19 = vcombine.low %v3086_v35, %v3090_v61  ;;  %v10043_v47 = vcombine.low %v3469_v37, %v3473_v32  ;;  %v3565_v27 = vld [vmem:[#allocation7 + $0xfc8] sm:$0xff] }
 0x30a   :  { %6451 = vmatpush2.bf16.msra.mxu0 %v9955_v25  ;;  %6409 = vmatprep.subr.bf16.mxu1 %v9828_v44  ;;  %v9654_v25 = vcombine.high %v3078_v39, %v3082_v41  ;;  %v3461_v44 = vld [vmem:[#allocation7 + $0xc88] sm:$0xff] }
 0x30b   :  { %6502 = vmatprep.subr.bf16.mxu0 %v9694_v46  ;;  %v3070_v46 = vld [vmem:[#allocation7 + $0x50] sm:$0xff]  ;;  %v10036_v52 = vcombine.high %v3461_v44, %v3465_v45  ;;  %v3453_v0 = vld [vmem:[#allocation7 + $0xc48] sm:$0xff] }
 0x30c   :  { %v9646_v57 = vcombine.high %v3070_v46, %v3074_v63  ;;  %v9645_v10 = vcombine.low %v3070_v46, %v3074_v63  ;;  %v3557_v61 = vld [vmem:[#allocation7 + $0xf88] sm:$0xff] }
 0x30d   :  { %6410 = vmatpush2.bf16.msra.mxu1 %v9827_v59  ;;  %6453 = vmatmul.mubr.bf16.vlgmr.msra.gmra.mxu0 %v11472_v9  ;;  %v3457_v59 = vld [vmem:[#allocation7 + $0xc68] sm:$0xff] }
 0x30e   :  { %6503 = vmatpush1.bf16.msra.mxu0 %v9693_v1  ;;  %6534 = vmatprep.mubr.bf16.mxu0 %v11406_v22  ;;  %v3062_v1 = vld [vmem:[#allocation7 + $0x10] sm:$0xff]  ;;  %v10028_v29 = vcombine.high %v3453_v0, %v3457_v59  ;;  %v3549_v41 = vld [vmem:[#allocation7 + $0xf48] sm:$0xff] }
 0x30f   :  { %6461 = vmatprep.subr.bf16.mxu1 %v10076_v16  ;;  %6504 = vmatprep.subr.bf16.mxu0 %v9686_v3  ;;  %v3066_v16 = vld [vmem:[#allocation7 + $0x30] sm:$0xff]  ;;  %v10035_v3 = vcombine.low %v3461_v44, %v3465_v45  ;;  %v3541_v63 = vld [vmem:[#allocation7 + $0xf08] sm:$0xff] }
 0x310   :  { %6412 = vmatmul.mubr.bf16.vlgmr.msra.gmra.mxu1 %v11434_v4  ;;  %v9638_v48 = vcombine.high %v3062_v1, %v3066_v16  ;;  %v9637_v24 = vcombine.low %v3062_v1, %v3066_v16  ;;  %v3533_v16 = vld [vmem:[#allocation7 + $0xec8] sm:$0xff] }
 0x311   :  { %6462 = vmatpush1.bf16.msra.mxu1 %v10075_v12  ;;  %6493 = vmatprep.mubr.bf16.mxu1 %v11487_v6  ;;  %v3449_v12 = vld [vmem:[#allocation7 + $0xc28] sm:$0xff] }
 0x312   :  { %6505 = vmatpush1.bf16.msra.mxu0 %v9685_v14  ;;  %6463 = vmatprep.subr.bf16.mxu1 %v10068_v17  ;;  %v3182_v14 = vld [vmem:[#allocation7 + $0x3d0] sm:$0xff]  ;;  %v10020_v53 = vcombine.high %v3445_v11, %v3449_v12 }
 0x313   :  { %6506 = vmatprep.subr.bf16.mxu0 %v9678_v18  ;;  %v3186_v17 = vld [vmem:[#allocation7 + $0x3f0] sm:$0xff]  ;;  %v10027_v18 = vcombine.low %v3453_v0, %v3457_v59 }
 0x314   :  { %v9758_v26 = vcombine.high %v3182_v14, %v3186_v17  ;;  %v9757_v20 = vcombine.low %v3182_v14, %v3186_v17  ;;  %v3525_v17 = vld [vmem:[#allocation7 + $0xe88] sm:$0xff] }
 0x315   :  { %6464 = vmatpush1.bf16.msra.mxu1 %v10067_v54  ;;  %v3569_v54 = vld [vmem:[#allocation7 + $0xfe8] sm:$0xff] }
 0x316   :  { %6507 = vmatpush1.bf16.msra.mxu0 %v9677_v30  ;;  %6465 = vmatprep.subr.bf16.mxu1 %v10060_v31  ;;  %v3174_v30 = vld [vmem:[#allocation7 + $0x390] sm:$0xff]  ;;  %v10140_v34 = vcombine.high %v3565_v27, %v3569_v54 }
 0x317   :  { %6508 = vmatprep.subr.bf16.mxu0 %v9670_v49  ;;  %v3178_v31 = vld [vmem:[#allocation7 + $0x3b0] sm:$0xff]  ;;  %v10019_v49 = vcombine.low %v3445_v11, %v3449_v12 }
 0x318   :  { %v9750_v35 = vcombine.high %v3174_v30, %v3178_v31  ;;  %v9749_v37 = vcombine.low %v3174_v30, %v3178_v31  ;;  %v3517_v31 = vld [vmem:[#allocation7 + $0xe48] sm:$0xff] }
 0x319   :  { %6466 = vmatpush1.bf16.msra.mxu1 %v10059_v23  ;;  %v3561_v23 = vld [vmem:[#allocation7 + $0xfa8] sm:$0xff] }
 0x31a   :  { %6509 = vmatpush1.bf16.msra.mxu0 %v9669_v38  ;;  %6467 = vmatprep.subr.bf16.mxu1 %v10052_v58  ;;  %v3166_v38 = vld [vmem:[#allocation7 + $0x350] sm:$0xff]  ;;  %v10132_v32 = vcombine.high %v3557_v61, %v3561_v23 }
 0x31b   :  { %6510 = vmatprep.subr.bf16.mxu0 %v9662_v36  ;;  %v3170_v58 = vld [vmem:[#allocation7 + $0x370] sm:$0xff]  ;;  %v10139_v36 = vcombine.low %v3565_v27, %v3569_v54 }
 0x31c   :  { %v9742_v39 = vcombine.high %v3166_v38, %v3170_v58  ;;  %v9741_v44 = vcombine.low %v3166_v38, %v3170_v58  ;;  %v3509_v58 = vld [vmem:[#allocation7 + $0xe08] sm:$0xff] }
 0x31d   :  { %6468 = vmatpush1.bf16.msra.mxu1 %v10051_v7  ;;  %v3553_v7 = vld [vmem:[#allocation7 + $0xf68] sm:$0xff] }
 0x31e   :  { %6511 = vmatpush1.bf16.msra.mxu0 %v9661_v19  ;;  %6469 = vmatprep.subr.bf16.mxu1 %v10044_v43  ;;  %v3158_v19 = vld [vmem:[#allocation7 + $0x310] sm:$0xff]  ;;  %v10124_v45 = vcombine.high %v3549_v41, %v3553_v7 }
 0x31f   :  { %6512 = vmatprep.subr.bf16.mxu0 %v9654_v25  ;;  %v3162_v43 = vld [vmem:[#allocation7 + $0x330] sm:$0xff]  ;;  %v10131_v25 = vcombine.low %v3557_v61, %v3561_v23 }
 0x320   :  { %v9734_v46 = vcombine.high %v3158_v19, %v3162_v43  ;;  %v9733_v0 = vcombine.low %v3158_v19, %v3162_v43  ;;  %v3246_v43 = vld [vmem:[#allocation7 + $0x5d0] sm:$0xff] }
 0x321   :  { %6470 = vmatpush1.bf16.msra.mxu1 %v10043_v47  ;;  %v3545_v47 = vld [vmem:[#allocation7 + $0xf28] sm:$0xff] }
 0x322   :  { %6513 = vmatpush1.bf16.msra.mxu0 %v9653_v56  ;;  %6471 = vmatprep.subr.bf16.mxu1 %v10036_v52  ;;  %v3150_v56 = vld [vmem:[#allocation7 + $0x2d0] sm:$0xff]  ;;  %v10116_v59 = vcombine.high %v3541_v63, %v3545_v47 }
 0x323   :  { %6514 = vmatprep.subr.bf16.mxu0 %v9646_v57  ;;  %v3154_v52 = vld [vmem:[#allocation7 + $0x2f0] sm:$0xff]  ;;  %v10123_v57 = vcombine.low %v3549_v41, %v3553_v7 }
 0x324   :  { %v9726_v1 = vcombine.high %v3150_v56, %v3154_v52  ;;  %v9725_v11 = vcombine.low %v3150_v56, %v3154_v52  ;;  %v3238_v52 = vld [vmem:[#allocation7 + $0x590] sm:$0xff] }
 0x325   :  { %6472 = vmatpush1.bf16.msra.mxu1 %v10035_v3  ;;  %v3537_v3 = vld [vmem:[#allocation7 + $0xee8] sm:$0xff] }
 0x326   :  { %6515 = vmatpush1.bf16.msra.mxu0 %v9645_v10  ;;  %6473 = vmatprep.subr.bf16.mxu1 %v10028_v29  ;;  %v3142_v10 = vld [vmem:[#allocation7 + $0x290] sm:$0xff]  ;;  %v10108_v12 = vcombine.high %v3533_v16, %v3537_v3 }
 0x327   :  { %6516 = vmatprep.subr.bf16.mxu0 %v9638_v48  ;;  %v3146_v29 = vld [vmem:[#allocation7 + $0x2b0] sm:$0xff]  ;;  %v10115_v48 = vcombine.low %v3541_v63, %v3545_v47 }
 0x328   :  { %v9718_v14 = vcombine.high %v3142_v10, %v3146_v29  ;;  %v9717_v27 = vcombine.low %v3142_v10, %v3146_v29 }
 0x329   :  { %6474 = vmatpush1.bf16.msra.mxu1 %v10027_v18  ;;  %v3529_v18 = vld [vmem:[#allocation7 + $0xea8] sm:$0xff] }
 0x32a   :  { %6517 = vmatpush1.bf16.msra.mxu0 %v9637_v24  ;;  %6475 = vmatprep.subr.bf16.mxu1 %v10020_v53  ;;  %v3134_v24 = vld [vmem:[#allocation7 + $0x250] sm:$0xff]  ;;  %v10100_v54 = vcombine.high %v3525_v17, %v3529_v18 }
 0x32b   :  { %6518 = vmatprep.subr.bf16.mxu0 %v9758_v26  ;;  %v3138_v53 = vld [vmem:[#allocation7 + $0x270] sm:$0xff]  ;;  %v10107_v26 = vcombine.low %v3533_v16, %v3537_v3 }
 0x32c   :  { %v9710_v30 = vcombine.high %v3134_v24, %v3138_v53  ;;  %v9709_v61 = vcombine.low %v3134_v24, %v3138_v53  ;;  %v3354_v24 = vld [vmem:[#allocation7 + $0x930] sm:$0xff] }
 0x32d   :  { %6476 = vmatpush1.bf16.msra.mxu1 %v10019_v49  ;;  %v3521_v49 = vld [vmem:[#allocation7 + $0xe68] sm:$0xff] }
 0x32e   :  { %6519 = vmatpush2.bf16.msra.mxu0 %v9757_v20  ;;  %6477 = vmatprep.subr.bf16.mxu1 %v10140_v34  ;;  %v3126_v20 = vld [vmem:[#allocation7 + $0x210] sm:$0xff]  ;;  %v10092_v23 = vcombine.high %v3517_v31, %v3521_v49 }
 0x32f   :  { %6520 = vmatprep.subr.bf16.mxu0 %v9750_v35  ;;  %v3130_v34 = vld [vmem:[#allocation7 + $0x230] sm:$0xff]  ;;  %v10099_v35 = vcombine.low %v3525_v17, %v3529_v18 }
 0x330   :  { %v9702_v38 = vcombine.high %v3126_v20, %v3130_v34  ;;  %v9701_v41 = vcombine.low %v3126_v20, %v3130_v34  ;;  %v3350_v18 = vld [vmem:[#allocation7 + $0x910] sm:$0xff] }
 0x331   :  { %6478 = vmatpush2.bf16.msra.mxu1 %v10139_v36  ;;  %v3513_v36 = vld [vmem:[#allocation7 + $0xe28] sm:$0xff]  ;;  %v3342_v20 = vld [vmem:[#allocation7 + $0x8d0] sm:$0xff] }
 0x332   :  { %6521 = vmatpush2.bf16.msra.mxu0 %v9749_v37  ;;  %6479 = vmatprep.subr.bf16.mxu1 %v10132_v32  ;;  %v3374_v37 = vld [vmem:[#allocation7 + $0x9d0] sm:$0xff]  ;;  %v10084_v7 = vcombine.high %v3509_v58, %v3513_v36 }
 0x333   :  { %6522 = vmatprep.subr.bf16.mxu0 %v9742_v39  ;;  %v3378_v32 = vld [vmem:[#allocation7 + $0x9f0] sm:$0xff]  ;;  %v10091_v39 = vcombine.low %v3517_v31, %v3521_v49 }
 0x334   :  { %v9950_v19 = vcombine.high %v3374_v37, %v3378_v32  ;;  %v9949_v63 = vcombine.low %v3374_v37, %v3378_v32  ;;  %v3222_v31 = vld [vmem:[#allocation7 + $0x510] sm:$0xff] }
 0x335   :  { %6480 = vmatpush2.bf16.msra.mxu1 %v10131_v25  ;;  %v3250_v25 = vld [vmem:[#allocation7 + $0x5f0] sm:$0xff] }
 0x336   :  { %6523 = vmatpush2.bf16.msra.mxu0 %v9741_v44  ;;  %6481 = vmatprep.subr.bf16.mxu1 %v10124_v45  ;;  %v3366_v44 = vld [vmem:[#allocation7 + $0x990] sm:$0xff]  ;;  %v9822_v47 = vcombine.high %v3246_v43, %v3250_v25  ;;  %v9821_v16 = vcombine.low %v3246_v43, %v3250_v25 }
 0x337   :  { %6524 = vmatprep.subr.bf16.mxu0 %v9734_v46  ;;  %v3370_v45 = vld [vmem:[#allocation7 + $0x9b0] sm:$0xff]  ;;  %v10083_v46 = vcombine.low %v3509_v58, %v3513_v36 }
 0x338   :  { %v9942_v56 = vcombine.high %v3366_v44, %v3370_v45  ;;  %v9941_v10 = vcombine.low %v3366_v44, %v3370_v45  ;;  %v3226_v49 = vld [vmem:[#allocation7 + $0x530] sm:$0xff] }
 0x339   :  { %6482 = vmatpush2.bf16.msra.mxu1 %v10123_v57  ;;  %v3242_v57 = vld [vmem:[#allocation7 + $0x5b0] sm:$0xff]  ;;  %v9797_v32 = vcombine.low %v3222_v31, %v3226_v49 }
 0x33a   :  { %6525 = vmatpush2.bf16.msra.mxu0 %v9733_v0  ;;  %6483 = vmatprep.subr.bf16.mxu1 %v10116_v59  ;;  %v3358_v0 = vld [vmem:[#allocation7 + $0x950] sm:$0xff]  ;;  %v9814_v29 = vcombine.high %v3238_v52, %v3242_v57  ;;  %v9813_v53 = vcombine.low %v3238_v52, %v3242_v57 }
 0x33b   :  { %6526 = vmatprep.subr.bf16.mxu0 %v9726_v1  ;;  %v3362_v59 = vld [vmem:[#allocation7 + $0x970] sm:$0xff] }
 0x33c   :  { %v3346_v34 = vld [vmem:[#allocation7 + $0x8f0] sm:$0xff] }
 0x33d   :  { %6484 = vmatpush2.bf16.msra.mxu1 %v10115_v48  ;;  %v3218_v58 = vld [vmem:[#allocation7 + $0x4f0] sm:$0xff] }
 0x33e   :  { %6527 = vmatpush2.bf16.msra.mxu0 %v9725_v11  ;;  %6485 = vmatprep.subr.bf16.mxu1 %v10108_v12  ;;  %v9934_v11 = vcombine.high %v3358_v0, %v3362_v59  ;;  %v3230_v12 = vld [vmem:[#allocation7 + $0x550] sm:$0xff] }
 0x33f   :  { %6528 = vmatprep.subr.bf16.mxu0 %v9718_v14  ;;  %v3234_v14 = vld [vmem:[#allocation7 + $0x570] sm:$0xff] }
 0x340   :  { %v3334_v36 = vld [vmem:[#allocation7 + $0x890] sm:$0xff] }
 0x341   :  { %6486 = vmatpush2.bf16.msra.mxu1 %v10107_v26  ;;  %v9933_v26 = vcombine.low %v3358_v0, %v3362_v59  ;;  %v3338_v37 = vld [vmem:[#allocation7 + $0x8b0] sm:$0xff] }
 0x342   :  { %6529 = vmatpush2.bf16.msra.mxu0 %v9717_v27  ;;  %6487 = vmatprep.subr.bf16.mxu1 %v10100_v54  ;;  %v9806_v27 = vcombine.high %v3230_v12, %v3234_v14  ;;  %v3210_v43 = vld [vmem:[#allocation7 + $0x4b0] sm:$0xff] }
 0x343   :  { %6530 = vmatprep.subr.bf16.mxu0 %v9710_v30  ;;  %v9926_v30 = vcombine.high %v3350_v18, %v3354_v24  ;;  %v3326_v25 = vld [vmem:[#allocation7 + $0x850] sm:$0xff] }
 0x344   :  { %v3330_v44 = vld [vmem:[#allocation7 + $0x870] sm:$0xff] }
 0x345   :  { %6488 = vmatpush2.bf16.msra.mxu1 %v10099_v35  ;;  %v9925_v35 = vcombine.low %v3350_v18, %v3354_v24  ;;  %v3202_v52 = vld [vmem:[#allocation7 + $0x470] sm:$0xff] }
 0x346   :  { %6531 = vmatpush2.bf16.msra.mxu0 %v9709_v61  ;;  %6489 = vmatprep.subr.bf16.mxu1 %v10092_v23  ;;  %v9798_v61 = vcombine.high %v3222_v31, %v3226_v49  ;;  %v9918_v23 = vcombine.high %v3342_v20, %v3346_v34  ;;  %v3318_v57 = vld [vmem:[#allocation7 + $0x810] sm:$0xff] }
 0x347   :  { %6532 = vmatprep.subr.bf16.mxu0 %v9702_v38  ;;  %v3214_v38 = vld [vmem:[#allocation7 + $0x4d0] sm:$0xff] }
 0x348   :  { %v9789_v45 = vcombine.low %v3214_v38, %v3218_v58  ;;  %v3322_v0 = vld [vmem:[#allocation7 + $0x830] sm:$0xff] }
 0x349   :  { %6490 = vmatpush2.bf16.msra.mxu1 %v10091_v39  ;;  %v9917_v39 = vcombine.low %v3342_v20, %v3346_v34  ;;  %v9893_v18 = vcombine.low %v3318_v57, %v3322_v0  ;;  %v3302_v34 = vld [vmem:[#allocation7 + $0x790] sm:$0xff] }
 0x34a   :  { %6533 = vmatpush2.bf16.msra.mxu0 %v9701_v41  ;;  %6491 = vmatprep.subr.bf16.mxu1 %v10084_v7  ;;  %v9790_v41 = vcombine.high %v3214_v38, %v3218_v58  ;;  %v9910_v7 = vcombine.high %v3334_v36, %v3338_v37 }
 0x34b   :  { %6584 = vmatprep.subr.bf16.mxu0 %v9950_v19  ;;  %v3206_v19 = vld [vmem:[#allocation7 + $0x490] sm:$0xff] }
 0x34c   :  { %v9781_v59 = vcombine.low %v3206_v19, %v3210_v43 }
 0x34d   :  { %6492 = vmatpush2.bf16.msra.mxu1 %v10083_v46  ;;  %6535 = vmatmul.mubr.bf16.vlgmr.msra.gmra.mxu0 %v11432_v2  ;;  %v6290_v1 = vpop.f32.mrf.mxu0  ;;  %v9909_v46 = vcombine.low %v3334_v36, %v3338_v37  ;;  %v3294_v37 = vld [vmem:[#allocation7 + $0x750] sm:$0xff] }
 0x34e   :  { %v11511_v3 = vadd.f32 %v6290_v1, %v11501_v40  ;;  %6585 = vmatpush1.bf16.msra.mxu0 %v9949_v63  ;;  %6616 = vmatprep.mubr.bf16.mxu0 %v11470_v13  ;;  %v9782_v63 = vcombine.high %v3206_v19, %v3210_v43  ;;  %v9901_v1 = vcombine.low %v3326_v25, %v3330_v44 }
 0x34f   :  { %6543 = vmatprep.subr.bf16.mxu1 %v9822_v47  ;;  %v6292_v48 = vpop.f32.mrf.mxu0  ;;  %6586 = vmatprep.subr.bf16.mxu0 %v9942_v56  ;;  %v9902_v47 = vcombine.high %v3326_v25, %v3330_v44  ;;  %v3198_v56 = vld [vmem:[#allocation7 + $0x450] sm:$0xff] }
 0x350   :  { %6494 = vmatmul.mubr.bf16.vlgmr.msra.gmra.mxu1 %v11490_v8  ;;  %v11516_v17 = vadd.f32 %v6292_v48, %v11503_v50  ;;  %v9805_v50 = vcombine.low %v3230_v12, %v3234_v14  ;;  %v3194_v48 = vld [vmem:[#allocation7 + $0x430] sm:$0xff]  ;;  %v9773_v14 = vcombine.low %v3198_v56, %v3202_v52 }
 0x351   :  { %6544 = vmatpush1.bf16.msra.mxu1 %v9821_v16  ;;  %6575 = vmatprep.mubr.bf16.mxu1 %v11416_v62  ;;  %v6294_v40 = vpop.f32.mrf.mxu0  ;;  %v9774_v16 = vcombine.high %v3198_v56, %v3202_v52  ;;  %v3442_v12 = vld [vmem:[#allocation7 + $0xbf0] sm:$0xff] }
 0x352   :  { %6587 = vmatpush1.bf16.msra.mxu0 %v9941_v10  ;;  %6545 = vmatprep.subr.bf16.mxu1 %v9814_v29  ;;  %v9894_v10 = vcombine.high %v3318_v57, %v3322_v0  ;;  %v3190_v29 = vld [vmem:[#allocation7 + $0x410] sm:$0xff] }
 0x353   :  { %v6295_v54 = vpop.f32.mrf.mxu0  ;;  %6588 = vmatprep.subr.bf16.mxu0 %v9934_v11  ;;  %v3438_v11 = vld [vmem:[#allocation7 + $0xbd0] sm:$0xff]  ;;  %v9766_v24 = vcombine.high %v3190_v29, %v3194_v48 }
 0x354   :  { %v10014_v40 = vcombine.high %v3438_v11, %v3442_v12  ;;  %v3434_v54 = vld [vmem:[#allocation7 + $0xbb0] sm:$0xff]  ;;  %v10013_v31 = vcombine.low %v3438_v11, %v3442_v12 }
 0x355   :  { %6546 = vmatpush1.bf16.msra.mxu1 %v9813_v53  ;;  %v3310_v53 = vld [vmem:[#allocation7 + $0x7d0] sm:$0xff] }
 0x356   :  { %6589 = vmatpush1.bf16.msra.mxu0 %v9933_v26  ;;  %6547 = vmatprep.subr.bf16.mxu1 %v9806_v27  ;;  %v3314_v26 = vld [vmem:[#allocation7 + $0x7f0] sm:$0xff] }
 0x357   :  { %6590 = vmatprep.subr.bf16.mxu0 %v9926_v30  ;;  %v3430_v27 = vld [vmem:[#allocation7 + $0xb90] sm:$0xff]  ;;  %v9765_v30 = vcombine.low %v3190_v29, %v3194_v48  ;;  %v9886_v49 = vcombine.high %v3310_v53, %v3314_v26 }
 0x358   :  { %v10006_v20 = vcombine.high %v3430_v27, %v3434_v54  ;;  %v10005_v38 = vcombine.low %v3430_v27, %v3434_v54  ;;  %v3286_v44 = vld [vmem:[#allocation7 + $0x710] sm:$0xff] }
 0x359   :  { %6548 = vmatpush1.bf16.msra.mxu1 %v9805_v50  ;;  %v3306_v50 = vld [vmem:[#allocation7 + $0x7b0] sm:$0xff] }
 0x35a   :  { %6591 = vmatpush1.bf16.msra.mxu0 %v9925_v35  ;;  %6549 = vmatprep.subr.bf16.mxu1 %v9798_v61  ;;  %v3422_v35 = vld [vmem:[#allocation7 + $0xb50] sm:$0xff]  ;;  %v9878_v58 = vcombine.high %v3302_v34, %v3306_v50 }
 0x35b   :  { %6592 = vmatprep.subr.bf16.mxu0 %v9918_v23  ;;  %v3426_v61 = vld [vmem:[#allocation7 + $0xb70] sm:$0xff]  ;;  %v9885_v23 = vcombine.low %v3310_v53, %v3314_v26 }
 0x35c   :  { %v9998_v36 = vcombine.high %v3422_v35, %v3426_v61  ;;  %v9997_v19 = vcombine.low %v3422_v35, %v3426_v61  ;;  %v3278_v0 = vld [vmem:[#allocation7 + $0x6d0] sm:$0xff] }
 0x35d   :  { %6550 = vmatpush1.bf16.msra.mxu1 %v9797_v32  ;;  %v3298_v32 = vld [vmem:[#allocation7 + $0x770] sm:$0xff] }
 0x35e   :  { %6593 = vmatpush1.bf16.msra.mxu0 %v9917_v39  ;;  %6551 = vmatprep.subr.bf16.mxu1 %v9790_v41  ;;  %v3414_v39 = vld [vmem:[#allocation7 + $0xb10] sm:$0xff]  ;;  %v9870_v43 = vcombine.high %v3294_v37, %v3298_v32 }
 0x35f   :  { %6594 = vmatprep.subr.bf16.mxu0 %v9910_v7  ;;  %v3418_v41 = vld [vmem:[#allocation7 + $0xb30] sm:$0xff]  ;;  %v9877_v7 = vcombine.low %v3302_v34, %v3306_v50 }
 0x360   :  { %v9990_v25 = vcombine.high %v3414_v39, %v3418_v41  ;;  %v9989_v56 = vcombine.low %v3414_v39, %v3418_v41  ;;  %v3270_v12 = vld [vmem:[#allocation7 + $0x690] sm:$0xff] }
 0x361   :  { %6552 = vmatpush1.bf16.msra.mxu1 %v9789_v45  ;;  %v3290_v45 = vld [vmem:[#allocation7 + $0x730] sm:$0xff] }
 0x362   :  { %6595 = vmatpush1.bf16.msra.mxu0 %v9909_v46  ;;  %6553 = vmatprep.subr.bf16.mxu1 %v9782_v63  ;;  %v3406_v46 = vld [vmem:[#allocation7 + $0xad0] sm:$0xff]  ;;  %v9862_v52 = vcombine.high %v3286_v44, %v3290_v45 }
 0x363   :  { %6596 = vmatprep.subr.bf16.mxu0 %v9902_v47  ;;  %v3410_v63 = vld [vmem:[#allocation7 + $0xaf0] sm:$0xff]  ;;  %v9869_v47 = vcombine.low %v3294_v37, %v3298_v32 }
 0x364   :  { %v9982_v57 = vcombine.high %v3406_v46, %v3410_v63  ;;  %v9981_v29 = vcombine.low %v3406_v46, %v3410_v63  ;;  %v3262_v54 = vld [vmem:[#allocation7 + $0x650] sm:$0xff] }
 0x365   :  { %6554 = vmatpush1.bf16.msra.mxu1 %v9781_v59  ;;  %v3282_v59 = vld [vmem:[#allocation7 + $0x6f0] sm:$0xff] }
 0x366   :  { %6597 = vmatpush1.bf16.msra.mxu0 %v9901_v1  ;;  %6555 = vmatprep.subr.bf16.mxu1 %v9774_v16  ;;  %v3398_v1 = vld [vmem:[#allocation7 + $0xa90] sm:$0xff]  ;;  %v9854_v48 = vcombine.high %v3278_v0, %v3282_v59 }
 0x367   :  { %6598 = vmatprep.subr.bf16.mxu0 %v9894_v10  ;;  %v3402_v16 = vld [vmem:[#allocation7 + $0xab0] sm:$0xff]  ;;  %v9861_v10 = vcombine.low %v3286_v44, %v3290_v45 }
 0x368   :  { %v9974_v11 = vcombine.high %v3398_v1, %v3402_v16  ;;  %v9973_v53 = vcombine.low %v3398_v1, %v3402_v16  ;;  %v3254_v61 = vld [vmem:[#allocation7 + $0x610] sm:$0xff] }
 0x369   :  { %6556 = vmatpush1.bf16.msra.mxu1 %v9773_v14  ;;  %v3274_v14 = vld [vmem:[#allocation7 + $0x6b0] sm:$0xff] }
 0x36a   :  { %6599 = vmatpush1.bf16.msra.mxu0 %v9893_v18  ;;  %6557 = vmatprep.subr.bf16.mxu1 %v9766_v24  ;;  %v3390_v18 = vld [vmem:[#allocation7 + $0xa50] sm:$0xff]  ;;  %v9846_v26 = vcombine.high %v3270_v12, %v3274_v14 }
 0x36b   :  { %6600 = vmatprep.subr.bf16.mxu0 %v10014_v40  ;;  %v3394_v24 = vld [vmem:[#allocation7 + $0xa70] sm:$0xff]  ;;  %v9853_v40 = vcombine.low %v3278_v0, %v3282_v59 }
 0x36c   :  { %v9966_v27 = vcombine.high %v3390_v18, %v3394_v24  ;;  %v9965_v34 = vcombine.low %v3390_v18, %v3394_v24  ;;  %v3502_v41 = vld [vmem:[#allocation7 + $0xdd0] sm:$0xff] }
 0x36d   :  { %6558 = vmatpush1.bf16.msra.mxu1 %v9765_v30  ;;  %v3266_v30 = vld [vmem:[#allocation7 + $0x670] sm:$0xff] }
 0x36e   :  { %6601 = vmatpush2.bf16.msra.mxu0 %v10013_v31  ;;  %6559 = vmatprep.subr.bf16.mxu1 %v9886_v49  ;;  %v3382_v31 = vld [vmem:[#allocation7 + $0xa10] sm:$0xff]  ;;  %v9838_v50 = vcombine.high %v3262_v54, %v3266_v30 }
 0x36f   :  { %6602 = vmatprep.subr.bf16.mxu0 %v10006_v20  ;;  %v3386_v49 = vld [vmem:[#allocation7 + $0xa30] sm:$0xff]  ;;  %v9845_v20 = vcombine.low %v3270_v12, %v3274_v14  ;;  %v3095_v12 = vld [vmem:[#allocation7 + $0x118] sm:$0xff] }
 0x370   :  { %v9958_v35 = vcombine.high %v3382_v31, %v3386_v49  ;;  %v9957_v37 = vcombine.low %v3382_v31, %v3386_v49  ;;  %v3494_v63 = vld [vmem:[#allocation7 + $0xd90] sm:$0xff]  ;;  %v3099_v14 = vld [vmem:[#allocation7 + $0x138] sm:$0xff] }
 0x371   :  { %6560 = vmatpush2.bf16.msra.mxu1 %v9885_v23  ;;  %v3258_v23 = vld [vmem:[#allocation7 + $0x630] sm:$0xff] }
 0x372   :  { %6603 = vmatpush2.bf16.msra.mxu0 %v10005_v38  ;;  %6561 = vmatprep.subr.bf16.mxu1 %v9878_v58  ;;  %v3119_v38 = vld [vmem:[#allocation7 + $0x1d8] sm:$0xff]  ;;  %v9830_v32 = vcombine.high %v3254_v61, %v3258_v23  ;;  %v3478_v31 = vld [vmem:[#allocation7 + $0xd10] sm:$0xff] }
 0x373   :  { %6604 = vmatprep.subr.bf16.mxu0 %v9998_v36  ;;  %v3123_v58 = vld [vmem:[#allocation7 + $0x1f8] sm:$0xff]  ;;  %v9837_v36 = vcombine.low %v3262_v54, %v3266_v30  ;;  %v9672_v30 = vcombine.high %v3095_v12, %v3099_v14  ;;  %v3482_v49 = vld [vmem:[#allocation7 + $0xd30] sm:$0xff] }
 0x374   :  { %v9696_v39 = vcombine.high %v3119_v38, %v3123_v58  ;;  %v9695_v44 = vcombine.low %v3119_v38, %v3123_v58  ;;  %v3470_v58 = vld [vmem:[#allocation7 + $0xcd0] sm:$0xff] }
 0x375   :  { %6562 = vmatpush2.bf16.msra.mxu1 %v9877_v7  ;;  %v3506_v7 = vld [vmem:[#allocation7 + $0xdf0] sm:$0xff] }
 0x376   :  { %6605 = vmatpush2.bf16.msra.mxu0 %v9997_v19  ;;  %6563 = vmatprep.subr.bf16.mxu1 %v9870_v43  ;;  %v3111_v19 = vld [vmem:[#allocation7 + $0x198] sm:$0xff]  ;;  %v10078_v45 = vcombine.high %v3502_v41, %v3506_v7  ;;  %v10077_v0 = vcombine.low %v3502_v41, %v3506_v7 }
 0x377   :  { %6606 = vmatprep.subr.bf16.mxu0 %v9990_v25  ;;  %v3115_v43 = vld [vmem:[#allocation7 + $0x1b8] sm:$0xff]  ;;  %v9829_v25 = vcombine.low %v3254_v61, %v3258_v23  ;;  %v9671_v61 = vcombine.low %v3095_v12, %v3099_v14  ;;  %v10054_v23 = vcombine.high %v3478_v31, %v3482_v49  ;;  %v3450_v12 = vld [vmem:[#allocation7 + $0xc30] sm:$0xff] }
 0x378   :  { %v9688_v46 = vcombine.high %v3111_v19, %v3115_v43  ;;  %v9687_v59 = vcombine.low %v3111_v19, %v3115_v43  ;;  %v3462_v19 = vld [vmem:[#allocation7 + $0xc90] sm:$0xff]  ;;  %v3183_v14 = vld [vmem:[#allocation7 + $0x3d8] sm:$0xff] }
 0x379   :  { %6564 = vmatpush2.bf16.msra.mxu1 %v9869_v47  ;;  %v3498_v47 = vld [vmem:[#allocation7 + $0xdb0] sm:$0xff] }
 0x37a   :  { %6607 = vmatpush2.bf16.msra.mxu0 %v9989_v56  ;;  %6565 = vmatprep.subr.bf16.mxu1 %v9862_v52  ;;  %v3103_v56 = vld [vmem:[#allocation7 + $0x158] sm:$0xff]  ;;  %v10070_v1 = vcombine.high %v3494_v63, %v3498_v47  ;;  %v10069_v24 = vcombine.low %v3494_v63, %v3498_v47  ;;  %v3466_v43 = vld [vmem:[#allocation7 + $0xcb0] sm:$0xff] }
 0x37b   :  { %6608 = vmatprep.subr.bf16.mxu0 %v9982_v57  ;;  %v3107_v52 = vld [vmem:[#allocation7 + $0x178] sm:$0xff]  ;;  %v10038_v63 = vcombine.high %v3462_v19, %v3466_v43 }
 0x37d   :  { %6566 = vmatpush2.bf16.msra.mxu1 %v9861_v10  ;;  %v9680_v10 = vcombine.high %v3103_v56, %v3107_v52 }
 0x37e   :  { %6609 = vmatpush2.bf16.msra.mxu0 %v9981_v29  ;;  %6567 = vmatprep.subr.bf16.mxu1 %v9854_v48  ;;  %v3486_v29 = vld [vmem:[#allocation7 + $0xd50] sm:$0xff] }
 0x37f   :  { %6610 = vmatprep.subr.bf16.mxu0 %v9974_v11  ;;  %v3490_v48 = vld [vmem:[#allocation7 + $0xd70] sm:$0xff] }
 0x381   :  { %6568 = vmatpush2.bf16.msra.mxu1 %v9853_v40 }
 0x382   :  { %6611 = vmatpush2.bf16.msra.mxu0 %v9973_v53  ;;  %6569 = vmatprep.subr.bf16.mxu1 %v9846_v26  ;;  %v9679_v53 = vcombine.low %v3103_v56, %v3107_v52  ;;  %v10062_v26 = vcombine.high %v3486_v29, %v3490_v48  ;;  %v3454_v56 = vld [vmem:[#allocation7 + $0xc50] sm:$0xff] }
 0x383   :  { %6612 = vmatprep.subr.bf16.mxu0 %v9966_v27  ;;  %v3458_v52 = vld [vmem:[#allocation7 + $0xc70] sm:$0xff] }
 0x385   :  { %6570 = vmatpush2.bf16.msra.mxu1 %v9845_v20  ;;  %v3087_v20 = vld [vmem:[#allocation7 + $0xd8] sm:$0xff] }
 0x386   :  { %6613 = vmatpush2.bf16.msra.mxu0 %v9965_v34  ;;  %6571 = vmatprep.subr.bf16.mxu1 %v9838_v50  ;;  %v3091_v34 = vld [vmem:[#allocation7 + $0xf8] sm:$0xff]  ;;  %v10061_v50 = vcombine.low %v3486_v29, %v3490_v48  ;;  %v10030_v29 = vcombine.high %v3454_v56, %v3458_v52 }
 0x387   :  { %6614 = vmatprep.subr.bf16.mxu0 %v9958_v35  ;;  %v9664_v38 = vcombine.high %v3087_v20, %v3091_v34 }
 0x389   :  { %6572 = vmatpush2.bf16.msra.mxu1 %v9837_v36  ;;  %v3079_v36 = vld [vmem:[#allocation7 + $0x98] sm:$0xff] }
 0x38a   :  { %6615 = vmatpush2.bf16.msra.mxu0 %v9957_v37  ;;  %6573 = vmatprep.subr.bf16.mxu1 %v9830_v32  ;;  %v3083_v37 = vld [vmem:[#allocation7 + $0xb8] sm:$0xff]  ;;  %v10053_v32 = vcombine.low %v3478_v31, %v3482_v49 }
 0x38b   :  { %6666 = vmatprep.subr.bf16.mxu0 %v9696_v39  ;;  %v9663_v39 = vcombine.low %v3087_v20, %v3091_v34  ;;  %v9656_v7 = vcombine.high %v3079_v36, %v3083_v37  ;;  %v3175_v31 = vld [vmem:[#allocation7 + $0x398] sm:$0xff] }
 0x38c   :  { %v3179_v49 = vld [vmem:[#allocation7 + $0x3b8] sm:$0xff] }
 0x38d   :  { %6574 = vmatpush2.bf16.msra.mxu1 %v9829_v25  ;;  %v11519_v57 = vpop.f32.mrf.mxu0  ;;  %6617 = vmatmul.mubr.bf16.vlgmr.msra.gmra.mxu0 %v11472_v9  ;;  %v3071_v25 = vld [vmem:[#allocation7 + $0x58] sm:$0xff] }
 0x38e   :  { %6667 = vmatpush1.bf16.msra.mxu0 %v9695_v44  ;;  %6698 = vmatprep.mubr.bf16.mxu0 %v11406_v22  ;;  %v3075_v44 = vld [vmem:[#allocation7 + $0x78] sm:$0xff] }
 0x38f   :  { %v11523_v16 = vpop.f32.mrf.mxu0  ;;  %6625 = vmatprep.subr.bf16.mxu1 %v10078_v45  ;;  %6668 = vmatprep.subr.bf16.mxu0 %v9688_v46  ;;  %v9655_v46 = vcombine.low %v3079_v36, %v3083_v37  ;;  %v9648_v47 = vcombine.high %v3071_v25, %v3075_v44 }
 0x390   :  { %6576 = vmatmul.mubr.bf16.vlgmr.msra.gmra.mxu1 %v11434_v4  ;;  %v6331_v11 = vpop.f32.mrf.mxu1 }
 0x391   :  { %v11527_v18 = vadd.f32 %v6331_v11, %v11511_v3  ;;  %6626 = vmatpush1.bf16.msra.mxu1 %v10077_v0  ;;  %6657 = vmatprep.mubr.bf16.mxu1 %v11487_v6  ;;  %v6376_v22 = vpop.f32.mrf.mxu0  ;;  %v3063_v0 = vld [vmem:[#allocation7 + $0x18] sm:$0xff]  ;;  %v3446_v11 = vld [vmem:[#allocation7 + $0xc10] sm:$0xff] }
 0x392   :  { %v6333_v40 = vpop.f32.mrf.mxu1  ;;  %6669 = vmatpush1.bf16.msra.mxu0 %v9687_v59  ;;  %6627 = vmatprep.subr.bf16.mxu1 %v10070_v1  ;;  %v3067_v59 = vld [vmem:[#allocation7 + $0x38] sm:$0xff]  ;;  %v10037_v1 = vcombine.low %v3462_v19, %v3466_v43 }
 0x393   :  { %v11531_v27 = vadd.f32 %v6333_v40, %v11516_v17  ;;  %v6377_v54 = vpop.f32.mrf.mxu0  ;;  %6670 = vmatprep.subr.bf16.mxu0 %v9680_v10  ;;  %v3474_v17 = vld [vmem:[#allocation7 + $0xcf0] sm:$0xff]  ;;  %v9647_v10 = vcombine.low %v3071_v25, %v3075_v44  ;;  %v9640_v48 = vcombine.high %v3063_v0, %v3067_v59  ;;  %v3187_v22 = vld [vmem:[#allocation7 + $0x3f8] sm:$0xff]  ;;  %v9639_v40 = vcombine.low %v3063_v0, %v3067_v59 }
 0x394   :  { %v6335_v3 = vpop.f32.mrf.mxu1  ;;  %v10046_v41 = vcombine.high %v3470_v58, %v3474_v17  ;;  %v10045_v45 = vcombine.low %v3470_v58, %v3474_v17  ;;  %v3566_v54 = vld [vmem:[#allocation7 + $0xfd0] sm:$0xff]  ;;  %v9759_v20 = vcombine.low %v3183_v14, %v3187_v22  ;;  %v9751_v17 = vcombine.low %v3175_v31, %v3179_v49 }
 0x395   :  { %6628 = vmatpush1.bf16.msra.mxu1 %v10069_v24  ;;  %v10029_v24 = vcombine.low %v3454_v56, %v3458_v52  ;;  %v10021_v3 = vcombine.low %v3446_v11, %v3450_v12  ;;  %vm6831_vm8 = vcmp.gt.f32.partialorder %v11531_v27, 0.0  ;;  %vm6830_vm9 = vcmp.gt.f32.partialorder %v11527_v18, 0.0 }
 0x396   :  { %v6336_v35 = vpop.f32.mrf.mxu1  ;;  %6671 = vmatpush1.bf16.msra.mxu0 %v9679_v53  ;;  %6629 = vmatprep.subr.bf16.mxu1 %v10062_v26  ;;  %v10022_v53 = vcombine.high %v3446_v11, %v3450_v12  ;;  %v9760_v26 = vcombine.high %v3183_v14, %v3187_v22 }
 0x397   :  { %6672 = vmatprep.subr.bf16.mxu0 %v9672_v30  ;;  %v3570_v30 = vld [vmem:[#allocation7 + $0xff0] sm:$0xff] }
 0x398   :  { %v10142_v34 = vcombine.high %v3566_v54, %v3570_v30  ;;  %v3558_v35 = vld [vmem:[#allocation7 + $0xf90] sm:$0xff]  ;;  %v10141_v58 = vcombine.low %v3566_v54, %v3570_v30 }
 0x399   :  { %6630 = vmatpush1.bf16.msra.mxu1 %v10061_v50  ;;  %v9752_v50 = vcombine.high %v3175_v31, %v3179_v49 }
 0x39a   :  { %6673 = vmatpush1.bf16.msra.mxu0 %v9671_v61  ;;  %6631 = vmatprep.subr.bf16.mxu1 %v10054_v23  ;;  %v3562_v61 = vld [vmem:[#allocation7 + $0xfb0] sm:$0xff]  ;;  %v3167_v23 = vld [vmem:[#allocation7 + $0x358] sm:$0xff] }
 0x39b   :  { %6674 = vmatprep.subr.bf16.mxu0 %v9664_v38  ;;  %v3171_v38 = vld [vmem:[#allocation7 + $0x378] sm:$0xff]  ;;  %v10134_v36 = vcombine.high %v3558_v35, %v3562_v61  ;;  %v10133_v19 = vcombine.low %v3558_v35, %v3562_v61 }
 0x39c   :  { %v9744_v37 = vcombine.high %v3167_v23, %v3171_v38  ;;  %v9743_v43 = vcombine.low %v3167_v23, %v3171_v38 }
 0x39d   :  { %6632 = vmatpush1.bf16.msra.mxu1 %v10053_v32  ;;  %v3550_v32 = vld [vmem:[#allocation7 + $0xf50] sm:$0xff] }
 0x39e   :  { %6675 = vmatpush1.bf16.msra.mxu0 %v9663_v39  ;;  %6633 = vmatprep.subr.bf16.mxu1 %v10046_v41  ;;  %v3554_v39 = vld [vmem:[#allocation7 + $0xf70] sm:$0xff]  ;;  %v3159_v41 = vld [vmem:[#allocation7 + $0x318] sm:$0xff] }
 0x39f   :  { %6676 = vmatprep.subr.bf16.mxu0 %v9656_v7  ;;  %v3163_v7 = vld [vmem:[#allocation7 + $0x338] sm:$0xff]  ;;  %v10126_v25 = vcombine.high %v3550_v32, %v3554_v39  ;;  %v10125_v56 = vcombine.low %v3550_v32, %v3554_v39 }
 0x3a0   :  { %v9736_v44 = vcombine.high %v3159_v41, %v3163_v7  ;;  %v9735_v52 = vcombine.low %v3159_v41, %v3163_v7 }
 0x3a1   :  { %6634 = vmatpush1.bf16.msra.mxu1 %v10045_v45  ;;  %v3542_v45 = vld [vmem:[#allocation7 + $0xf10] sm:$0xff] }
 0x3a2   :  { %6677 = vmatpush1.bf16.msra.mxu0 %v9655_v46  ;;  %6635 = vmatprep.subr.bf16.mxu1 %v10038_v63  ;;  %v3546_v46 = vld [vmem:[#allocation7 + $0xf30] sm:$0xff]  ;;  %v3151_v63 = vld [vmem:[#allocation7 + $0x2d8] sm:$0xff] }
 0x3a3   :  { %6678 = vmatprep.subr.bf16.mxu0 %v9648_v47  ;;  %v3155_v47 = vld [vmem:[#allocation7 + $0x2f8] sm:$0xff]  ;;  %v10118_v0 = vcombine.high %v3542_v45, %v3546_v46  ;;  %v10117_v11 = vcombine.low %v3542_v45, %v3546_v46 }
 0x3a4   :  { %v9728_v59 = vcombine.high %v3151_v63, %v3155_v47  ;;  %v9727_v12 = vcombine.low %v3151_v63, %v3155_v47  ;;  %v11533_v63 = vld [vmem:[#allocation8] sm:$0xff] }
 0x3a5   :  { %6636 = vmatpush1.bf16.msra.mxu1 %v10037_v1  ;;  %v3534_v1 = vld [vmem:[#allocation7 + $0xed0] sm:$0xff]  ;;  %v3585_v47 = vrot.slane %v11533_v63, %v11420_v21 }
 0x3a6   :  { %6679 = vmatpush1.bf16.msra.mxu0 %v9647_v10  ;;  %6637 = vmatprep.subr.bf16.mxu1 %v10030_v29  ;;  %v3538_v10 = vld [vmem:[#allocation7 + $0xef0] sm:$0xff]  ;;  %v3143_v29 = vld [vmem:[#allocation7 + $0x298] sm:$0xff] }
 0x3a7   :  { %6680 = vmatprep.subr.bf16.mxu0 %v9640_v48  ;;  %v3147_v48 = vld [vmem:[#allocation7 + $0x2b8] sm:$0xff]  ;;  %v10110_v14 = vcombine.high %v3534_v1, %v3538_v10  ;;  %v10109_v54 = vcombine.low %v3534_v1, %v3538_v10 }
 0x3a8   :  { %v9720_v22 = vcombine.high %v3143_v29, %v3147_v48  ;;  %v9719_v30 = vcombine.low %v3143_v29, %v3147_v48  ;;  %v3359_v1 = vld [vmem:[#allocation7 + $0x958] sm:$0xff]  ;;  %v3589_v29 = vrot.slane %v11533_v63, %v11402_v5 }
 0x3a9   :  { %6638 = vmatpush1.bf16.msra.mxu1 %v10029_v24  ;;  %v3526_v24 = vld [vmem:[#allocation7 + $0xe90] sm:$0xff]  ;;  %v3363_v10 = vld [vmem:[#allocation7 + $0x978] sm:$0xff] }
 0x3aa   :  { %6681 = vmatpush1.bf16.msra.mxu0 %v9639_v40  ;;  %6639 = vmatprep.subr.bf16.mxu1 %v10022_v53  ;;  %v3530_v40 = vld [vmem:[#allocation7 + $0xeb0] sm:$0xff]  ;;  %v3135_v53 = vld [vmem:[#allocation7 + $0x258] sm:$0xff] }
 0x3ab   :  { %6682 = vmatprep.subr.bf16.mxu0 %v9760_v26  ;;  %v3139_v26 = vld [vmem:[#allocation7 + $0x278] sm:$0xff]  ;;  %v10102_v31 = vcombine.high %v3526_v24, %v3530_v40  ;;  %v10101_v35 = vcombine.low %v3526_v24, %v3530_v40  ;;  %v9936_v40 = vcombine.high %v3359_v1, %v3363_v10 }
 0x3ac   :  { %v9712_v49 = vcombine.high %v3135_v53, %v3139_v26  ;;  %v9711_v61 = vcombine.low %v3135_v53, %v3139_v26  ;;  %v3231_v53 = vld [vmem:[#allocation7 + $0x558] sm:$0xff] }
 0x3ad   :  { %6640 = vmatpush1.bf16.msra.mxu1 %v10021_v3  ;;  %v3518_v3 = vld [vmem:[#allocation7 + $0xe50] sm:$0xff]  ;;  %v3235_v26 = vld [vmem:[#allocation7 + $0x578] sm:$0xff] }
 0x3ae   :  { %6683 = vmatpush2.bf16.msra.mxu0 %v9759_v20  ;;  %6641 = vmatprep.subr.bf16.mxu1 %v10142_v34  ;;  %v3522_v20 = vld [vmem:[#allocation7 + $0xe70] sm:$0xff]  ;;  %v3127_v34 = vld [vmem:[#allocation7 + $0x218] sm:$0xff] }
 0x3af   :  { %6684 = vmatprep.subr.bf16.mxu0 %v9752_v50  ;;  %v3131_v50 = vld [vmem:[#allocation7 + $0x238] sm:$0xff]  ;;  %v10094_v23 = vcombine.high %v3518_v3, %v3522_v20  ;;  %v10093_v32 = vcombine.low %v3518_v3, %v3522_v20  ;;  %v9935_v20 = vcombine.low %v3359_v1, %v3363_v10 }
 0x3b0   :  { %v9704_v38 = vcombine.high %v3127_v34, %v3131_v50  ;;  %v9703_v39 = vcombine.low %v3127_v34, %v3131_v50  ;;  %v9808_v34 = vcombine.high %v3231_v53, %v3235_v26  ;;  %v3331_v1 = vld [vmem:[#allocation7 + $0x878] sm:$0xff] }
 0x3b1   :  { %6642 = vmatpush2.bf16.msra.mxu1 %v10141_v58  ;;  %v3510_v58 = vld [vmem:[#allocation7 + $0xe10] sm:$0xff] }
 0x3b2   :  { %6685 = vmatpush2.bf16.msra.mxu0 %v9751_v17  ;;  %6643 = vmatprep.subr.bf16.mxu1 %v10134_v36  ;;  %v3514_v17 = vld [vmem:[#allocation7 + $0xe30] sm:$0xff]  ;;  %v3375_v36 = vld [vmem:[#allocation7 + $0x9d8] sm:$0xff] }
 0x3b3   :  { %6686 = vmatprep.subr.bf16.mxu0 %v9744_v37  ;;  %v3379_v37 = vld [vmem:[#allocation7 + $0x9f8] sm:$0xff]  ;;  %v10086_v41 = vcombine.high %v3510_v58, %v3514_v17  ;;  %v10085_v45 = vcombine.low %v3510_v58, %v3514_v17 }
 0x3b4   :  { %v9952_v7 = vcombine.high %v3375_v36, %v3379_v37  ;;  %v9951_v46 = vcombine.low %v3375_v36, %v3379_v37  ;;  %v3343_v17 = vld [vmem:[#allocation7 + $0x8d8] sm:$0xff] }
 0x3b5   :  { %6644 = vmatpush2.bf16.msra.mxu1 %v10133_v19  ;;  %v3247_v19 = vld [vmem:[#allocation7 + $0x5d8] sm:$0xff] }
 0x3b6   :  { %6687 = vmatpush2.bf16.msra.mxu0 %v9743_v43  ;;  %6645 = vmatprep.subr.bf16.mxu1 %v10126_v25  ;;  %v3251_v43 = vld [vmem:[#allocation7 + $0x5f8] sm:$0xff] }
 0x3b7   :  { %6688 = vmatprep.subr.bf16.mxu0 %v9736_v44  ;;  %v3367_v25 = vld [vmem:[#allocation7 + $0x998] sm:$0xff] }
 0x3b8   :  { %v3371_v44 = vld [vmem:[#allocation7 + $0x9b8] sm:$0xff] }
 0x3b9   :  { %6646 = vmatpush2.bf16.msra.mxu1 %v10125_v56  ;;  %v9824_v56 = vcombine.high %v3247_v19, %v3251_v43  ;;  %v3347_v36 = vld [vmem:[#allocation7 + $0x8f8] sm:$0xff] }
 0x3ba   :  { %6689 = vmatpush2.bf16.msra.mxu0 %v9735_v52  ;;  %6647 = vmatprep.subr.bf16.mxu1 %v10118_v0  ;;  %v9944_v52 = vcombine.high %v3367_v25, %v3371_v44  ;;  %v3239_v0 = vld [vmem:[#allocation7 + $0x598] sm:$0xff] }
 0x3bb   :  { %6690 = vmatprep.subr.bf16.mxu0 %v9728_v59  ;;  %v3243_v59 = vld [vmem:[#allocation7 + $0x5b8] sm:$0xff] }
 0x3bc   :  { %v9815_v3 = vcombine.low %v3239_v0, %v3243_v59 }
 0x3bd   :  { %6648 = vmatpush2.bf16.msra.mxu1 %v10117_v11  ;;  %v9823_v11 = vcombine.low %v3247_v19, %v3251_v43  ;;  %v3215_v19 = vld [vmem:[#allocation7 + $0x4d8] sm:$0xff] }
 0x3be   :  { %6691 = vmatpush2.bf16.msra.mxu0 %v9727_v12  ;;  %6649 = vmatprep.subr.bf16.mxu1 %v10110_v14  ;;  %v9943_v12 = vcombine.low %v3367_v25, %v3371_v44  ;;  %v9816_v14 = vcombine.high %v3239_v0, %v3243_v59  ;;  %v3219_v43 = vld [vmem:[#allocation7 + $0x4f8] sm:$0xff] }
 0x3bf   :  { %6692 = vmatprep.subr.bf16.mxu0 %v9720_v22  ;;  %v6373_v22 = vadd.f32 %v11519_v57, %v3585_v47  ;;  %v3335_v25 = vld [vmem:[#allocation7 + $0x898] sm:$0xff]  ;;  %v9792_v47 = vcombine.high %v3215_v19, %v3219_v43  ;;  %v9791_v10 = vcombine.low %v3215_v19, %v3219_v43 }
 0x3c0   :  { %v3339_v44 = vld [vmem:[#allocation7 + $0x8b8] sm:$0xff] }
 0x3c1   :  { %6650 = vmatpush2.bf16.msra.mxu1 %v10109_v54  ;;  %v3211_v0 = vld [vmem:[#allocation7 + $0x4b8] sm:$0xff] }
 0x3c2   :  { %6693 = vmatpush2.bf16.msra.mxu0 %v9719_v30  ;;  %6651 = vmatprep.subr.bf16.mxu1 %v10102_v31  ;;  %v3351_v30 = vld [vmem:[#allocation7 + $0x918] sm:$0xff] }
 0x3c3   :  { %6694 = vmatprep.subr.bf16.mxu0 %v9712_v49  ;;  %v3355_v31 = vld [vmem:[#allocation7 + $0x938] sm:$0xff] }
 0x3c4   :  { %v3327_v59 = vld [vmem:[#allocation7 + $0x858] sm:$0xff] }
 0x3c5   :  { %6652 = vmatpush2.bf16.msra.mxu1 %v10101_v35 }
 0x3c6   :  { %6695 = vmatpush2.bf16.msra.mxu0 %v9711_v61  ;;  %6653 = vmatprep.subr.bf16.mxu1 %v10094_v23  ;;  %v9928_v61 = vcombine.high %v3351_v30, %v3355_v31  ;;  %v3223_v23 = vld [vmem:[#allocation7 + $0x518] sm:$0xff] }
 0x3c7   :  { %6696 = vmatprep.subr.bf16.mxu0 %v9704_v38  ;;  %v3227_v38 = vld [vmem:[#allocation7 + $0x538] sm:$0xff] }
 0x3c9   :  { %6654 = vmatpush2.bf16.msra.mxu1 %v10093_v32 }
 0x3ca   :  { %6697 = vmatpush2.bf16.msra.mxu0 %v9703_v39  ;;  %6655 = vmatprep.subr.bf16.mxu1 %v10086_v41  ;;  %v9927_v39 = vcombine.low %v3351_v30, %v3355_v31  ;;  %v9800_v41 = vcombine.high %v3223_v23, %v3227_v38  ;;  %v3191_v30 = vld [vmem:[#allocation7 + $0x418] sm:$0xff] }
 0x3cb   :  { %6748 = vmatprep.subr.bf16.mxu0 %v9952_v7  ;;  %v9920_v7 = vcombine.high %v3343_v17, %v3347_v36  ;;  %v3195_v31 = vld [vmem:[#allocation7 + $0x438] sm:$0xff] }
 0x3cd   :  { %6656 = vmatpush2.bf16.msra.mxu1 %v10085_v45  ;;  %v6454_v48 = vpop.f32.mrf.mxu0  ;;  %6699 = vmatmul.mubr.bf16.vlgmr.msra.gmra.mxu0 %v11432_v2  ;;  %v6375_v2 = vadd.f32 %v11523_v16, %v3589_v29  ;;  %v9799_v45 = vcombine.low %v3223_v23, %v3227_v38  ;;  %v9911_v29 = vcombine.low %v3335_v25, %v3339_v44 }
 0x3ce   :  { %6749 = vmatpush1.bf16.msra.mxu0 %v9951_v46  ;;  %6780 = vmatprep.mubr.bf16.mxu0 %v11470_v13  ;;  %v9919_v46 = vcombine.low %v3343_v17, %v3347_v36  ;;  %v9767_v23 = vcombine.low %v3191_v30, %v3195_v31  ;;  %v3303_v36 = vld [vmem:[#allocation7 + $0x798] sm:$0xff] }
 0x3cf   :  { %v6456_v24 = vpop.f32.mrf.mxu0  ;;  %6707 = vmatprep.subr.bf16.mxu1 %v9824_v56  ;;  %6750 = vmatprep.subr.bf16.mxu0 %v9944_v52  ;;  %v9912_v56 = vcombine.high %v3335_v25, %v3339_v44  ;;  %v3207_v52 = vld [vmem:[#allocation7 + $0x498] sm:$0xff] }
 0x3d0   :  { %v6413_v54 = vpop.f32.mrf.mxu1  ;;  %6658 = vmatmul.mubr.bf16.vlgmr.msra.gmra.mxu1 %v11490_v8  ;;  %v3295_v25 = vld [vmem:[#allocation7 + $0x758] sm:$0xff] }
 0x3d1   :  { %v6414_v49 = vadd.f32 %v6413_v54, %v6373_v22  ;;  %6708 = vmatpush1.bf16.msra.mxu1 %v9823_v11  ;;  %6739 = vmatprep.mubr.bf16.mxu1 %v11416_v62  ;;  %v6458_v13 = vpop.f32.mrf.mxu0  ;;  %v9807_v62 = vcombine.low %v3231_v53, %v3235_v26  ;;  %v9904_v11 = vcombine.high %v3327_v59, %v3331_v1  ;;  %v3319_v22 = vld [vmem:[#allocation7 + $0x818] sm:$0xff] }
 0x3d2   :  { %v6415_v57 = vpop.f32.mrf.mxu1  ;;  %6751 = vmatpush1.bf16.msra.mxu0 %v9943_v12  ;;  %6709 = vmatprep.subr.bf16.mxu1 %v9816_v14  ;;  %v3199_v12 = vld [vmem:[#allocation7 + $0x458] sm:$0xff]  ;;  %v9903_v53 = vcombine.low %v3327_v59, %v3331_v1 }
 0x3d3   :  { %v6416_v50 = vadd.f32 %v6415_v57, %v6375_v2  ;;  %v6459_v35 = vpop.f32.mrf.mxu0  ;;  %6752 = vmatprep.subr.bf16.mxu0 %v9936_v40  ;;  %v11545_v58 = vadd.f32 %v6454_v48, %v6414_v49  ;;  %v9784_v48 = vcombine.high %v3207_v52, %v3211_v0  ;;  %v3203_v14 = vld [vmem:[#allocation7 + $0x478] sm:$0xff]  ;;  %v9783_v40 = vcombine.low %v3207_v52, %v3211_v0 }
 0x3d4   :  { %v6417_v16 = vpop.f32.mrf.mxu1  ;;  %v9776_v26 = vcombine.high %v3199_v12, %v3203_v14  ;;  %v3439_v2 = vld [vmem:[#allocation7 + $0xbd8] sm:$0xff]  ;;  %v9775_v13 = vcombine.low %v3199_v12, %v3203_v14  ;;  %v9768_v57 = vcombine.high %v3191_v30, %v3195_v31 }
 0x3d5   :  { %6710 = vmatpush1.bf16.msra.mxu1 %v9815_v3  ;;  %v11547_v37 = vadd.f32 %v6456_v24, %v6416_v50  ;;  %v3323_v24 = vld [vmem:[#allocation7 + $0x838] sm:$0xff] }
 0x3d6   :  { %v6418_v32 = vpop.f32.mrf.mxu1  ;;  %6753 = vmatpush1.bf16.msra.mxu0 %v9935_v20  ;;  %6711 = vmatprep.subr.bf16.mxu1 %v9808_v34  ;;  %v9896_v54 = vcombine.high %v3319_v22, %v3323_v24  ;;  %v3443_v49 = vld [vmem:[#allocation7 + $0xbf8] sm:$0xff]  ;;  %v9895_v3 = vcombine.low %v3319_v22, %v3323_v24 }
 0x3d7   :  { %6754 = vmatprep.subr.bf16.mxu0 %v9928_v61  ;;  %v10016_v20 = vcombine.high %v3439_v2, %v3443_v49  ;;  %v3311_v34 = vld [vmem:[#allocation7 + $0x7d8] sm:$0xff]  ;;  %v10015_v38 = vcombine.low %v3439_v2, %v3443_v49 }
 0x3d8   :  { %v3315_v50 = vld [vmem:[#allocation7 + $0x7f8] sm:$0xff] }
 0x3d9   :  { %6712 = vmatpush1.bf16.msra.mxu1 %v9807_v62  ;;  %v3431_v35 = vld [vmem:[#allocation7 + $0xb98] sm:$0xff]  ;;  %v9888_v16 = vcombine.high %v3311_v34, %v3315_v50 }
 0x3da   :  { %6755 = vmatpush1.bf16.msra.mxu0 %v9927_v39  ;;  %6713 = vmatprep.subr.bf16.mxu1 %v9800_v41  ;;  %v3435_v61 = vld [vmem:[#allocation7 + $0xbb8] sm:$0xff]  ;;  %v9887_v41 = vcombine.low %v3311_v34, %v3315_v50 }
 0x3db   :  { %6756 = vmatprep.subr.bf16.mxu0 %v9920_v7  ;;  %v10008_v17 = vcombine.high %v3431_v35, %v3435_v61  ;;  %v3307_v62 = vld [vmem:[#allocation7 + $0x7b8] sm:$0xff]  ;;  %v10007_v7 = vcombine.low %v3431_v35, %v3435_v61 }
 0x3dc   :  { %v3423_v32 = vld [vmem:[#allocation7 + $0xb58] sm:$0xff]  ;;  %v9880_v19 = vcombine.high %v3303_v36, %v3307_v62 }
 0x3dd   :  { %6714 = vmatpush1.bf16.msra.mxu1 %v9799_v45  ;;  %v3427_v39 = vld [vmem:[#allocation7 + $0xb78] sm:$0xff] }
 0x3de   :  { %6757 = vmatpush1.bf16.msra.mxu0 %v9919_v46  ;;  %6715 = vmatprep.subr.bf16.mxu1 %v9792_v47  ;;  %v10000_v43 = vcombine.high %v3423_v32, %v3427_v39  ;;  %v3299_v44 = vld [vmem:[#allocation7 + $0x778] sm:$0xff]  ;;  %v9879_v47 = vcombine.low %v3303_v36, %v3307_v62 }
 0x3df   :  { %6758 = vmatprep.subr.bf16.mxu0 %v9912_v56  ;;  %v3415_v45 = vld [vmem:[#allocation7 + $0xb18] sm:$0xff]  ;;  %v9999_v56 = vcombine.low %v3423_v32, %v3427_v39  ;;  %v9872_v52 = vcombine.high %v3295_v25, %v3299_v44 }
 0x3e0   :  { %v3419_v46 = vld [vmem:[#allocation7 + $0xb38] sm:$0xff] }
 0x3e1   :  { %6716 = vmatpush1.bf16.msra.mxu1 %v9791_v10  ;;  %v9992_v0 = vcombine.high %v3415_v45, %v3419_v46  ;;  %v3287_v59 = vld [vmem:[#allocation7 + $0x718] sm:$0xff] }
 0x3e2   :  { %6759 = vmatpush1.bf16.msra.mxu0 %v9911_v29  ;;  %6717 = vmatprep.subr.bf16.mxu1 %v9784_v48  ;;  %v3291_v1 = vld [vmem:[#allocation7 + $0x738] sm:$0xff]  ;;  %v9871_v48 = vcombine.low %v3295_v25, %v3299_v44 }
 0x3e3   :  { %6760 = vmatprep.subr.bf16.mxu0 %v9904_v11  ;;  %v3407_v10 = vld [vmem:[#allocation7 + $0xad8] sm:$0xff]  ;;  %v9991_v11 = vcombine.low %v3415_v45, %v3419_v46  ;;  %v9864_v12 = vcombine.high %v3287_v59, %v3291_v1 }
 0x3e4   :  { %v3411_v29 = vld [vmem:[#allocation7 + $0xaf8] sm:$0xff] }
 0x3e5   :  { %6718 = vmatpush1.bf16.msra.mxu1 %v9783_v40  ;;  %v9984_v14 = vcombine.high %v3407_v10, %v3411_v29  ;;  %v3279_v22 = vld [vmem:[#allocation7 + $0x6d8] sm:$0xff] }
 0x3e6   :  { %6761 = vmatpush1.bf16.msra.mxu0 %v9903_v53  ;;  %6719 = vmatprep.subr.bf16.mxu1 %v9776_v26  ;;  %v3283_v24 = vld [vmem:[#allocation7 + $0x6f8] sm:$0xff]  ;;  %v9863_v26 = vcombine.low %v3287_v59, %v3291_v1 }
 0x3e7   :  { %6762 = vmatprep.subr.bf16.mxu0 %v9896_v54  ;;  %v3399_v40 = vld [vmem:[#allocation7 + $0xa98] sm:$0xff]  ;;  %v9983_v54 = vcombine.low %v3407_v10, %v3411_v29  ;;  %v9856_v30 = vcombine.high %v3279_v22, %v3283_v24 }
 0x3e8   :  { %v3403_v53 = vld [vmem:[#allocation7 + $0xab8] sm:$0xff] }
 0x3e9   :  { %6720 = vmatpush1.bf16.msra.mxu1 %v9775_v13  ;;  %v9976_v31 = vcombine.high %v3399_v40, %v3403_v53  ;;  %v3271_v2 = vld [vmem:[#allocation7 + $0x698] sm:$0xff] }
 0x3ea   :  { %6763 = vmatpush1.bf16.msra.mxu0 %v9895_v3  ;;  %6721 = vmatprep.subr.bf16.mxu1 %v9768_v57  ;;  %v3275_v49 = vld [vmem:[#allocation7 + $0x6b8] sm:$0xff]  ;;  %v9855_v57 = vcombine.low %v3279_v22, %v3283_v24 }
 0x3eb   :  { %6764 = vmatprep.subr.bf16.mxu0 %v10016_v20  ;;  %v3391_v13 = vld [vmem:[#allocation7 + $0xa58] sm:$0xff]  ;;  %v9975_v20 = vcombine.low %v3399_v40, %v3403_v53  ;;  %v9848_v34 = vcombine.high %v3271_v2, %v3275_v49 }
 0x3ec   :  { %v3395_v3 = vld [vmem:[#allocation7 + $0xa78] sm:$0xff] }
 0x3ed   :  { %6722 = vmatpush1.bf16.msra.mxu1 %v9767_v23  ;;  %v9968_v50 = vcombine.high %v3391_v13, %v3395_v3  ;;  %v3263_v35 = vld [vmem:[#allocation7 + $0x658] sm:$0xff] }
 0x3ee   :  { %6765 = vmatpush2.bf16.msra.mxu0 %v10015_v38  ;;  %6723 = vmatprep.subr.bf16.mxu1 %v9888_v16  ;;  %v3267_v61 = vld [vmem:[#allocation7 + $0x678] sm:$0xff]  ;;  %v9847_v16 = vcombine.low %v3271_v2, %v3275_v49 }
 0x3ef   :  { %6766 = vmatprep.subr.bf16.mxu0 %v10008_v17  ;;  %v3383_v23 = vld [vmem:[#allocation7 + $0xa18] sm:$0xff]  ;;  %v9967_v17 = vcombine.low %v3391_v13, %v3395_v3  ;;  %v9840_v36 = vcombine.high %v3263_v35, %v3267_v61 }
 0x3f0   :  { %v3387_v38 = vld [vmem:[#allocation7 + $0xa38] sm:$0xff] }
 0x3f1   :  { %6724 = vmatpush2.bf16.msra.mxu1 %v9887_v41  ;;  %v9960_v62 = vcombine.high %v3383_v23, %v3387_v38  ;;  %v3255_v32 = vld [vmem:[#allocation7 + $0x618] sm:$0xff]  ;;  %v6839_v41 = vmul.f32 0.01, %v11531_v27 }
 0x3f2   :  { %6767 = vmatpush2.bf16.msra.mxu0 %v10007_v7  ;;  %6725 = vmatprep.subr.bf16.mxu1 %v9880_v19  ;;  %v3259_v39 = vld [vmem:[#allocation7 + $0x638] sm:$0xff]  ;;  %v9839_v7 = vcombine.low %v3263_v35, %v3267_v61  ;;  %v9959_v19 = vcombine.low %v3383_v23, %v3387_v38 }
 0x3f3   :  { %6768 = vmatprep.subr.bf16.mxu0 %v10000_v43  ;;  %v9832_v43 = vcombine.high %v3255_v32, %v3259_v39  ;;  %v10543_v25 = vld [vmem:[#allocation10 + $0xe4] ss:$16 sps:$4 sm:$0xff]   ;;  %v9831_v46 = vcombine.low %v3255_v32, %v3259_v39  ;;  %v10553_v23 = vld [vmem:[#allocation10 + $0x60] ss:$16 sps:$4 sm:$0xff]  }
 0x3f4   :  { %v3503_v44 = vld [vmem:[#allocation7 + $0xdd8] sm:$0xff] }
 0x3f5   :  { %6726 = vmatpush2.bf16.msra.mxu1 %v9879_v47  ;;  %v3507_v45 = vld [vmem:[#allocation7 + $0xdf8] sm:$0xff]  ;;  %v6847_v47 = vsel %vm6831_vm8, %v11531_v27, %v6839_v41 }
 0x3f6   :  { %6769 = vmatpush2.bf16.msra.mxu0 %v9999_v56  ;;  %6727 = vmatprep.subr.bf16.mxu1 %v9872_v52  ;;  %v10541_v56 = vld [vmem:[#allocation10 + $0xe0] ss:$16 sps:$4 sm:$0xff]   ;;  %v10080_v52 = vcombine.high %v3503_v44, %v3507_v45  ;;  %v11552_v10 = vpack.c.bf16 %v6847_v47, %v6847_v47  ;;  %v10552_v49 = vld [vmem:[#allocation10 + $0x84] ss:$16 sps:$4 sm:$0xff]  }
 0x3f7   :  { %6770 = vmatprep.subr.bf16.mxu0 %v9992_v0  ;;  %v10546_v0 = vld [vmem:[#allocation10 + $0xc4] ss:$16 sps:$4 sm:$0xff]   ;;  %v10544_v27 = vld [vmem:[#allocation10 + $0xc0] ss:$16 sps:$4 sm:$0xff]  }
 0x3f8   :  { %v3495_v59 = vld [vmem:[#allocation7 + $0xd98] sm:$0xff] }
 0x3f9   :  { %6728 = vmatpush2.bf16.msra.mxu1 %v9871_v48  ;;  %v3499_v1 = vld [vmem:[#allocation7 + $0xdb8] sm:$0xff]  ;;  %v10079_v48 = vcombine.low %v3503_v44, %v3507_v45 }
 0x3fa   :  { %6771 = vmatpush2.bf16.msra.mxu0 %v9991_v11  ;;  %6729 = vmatprep.subr.bf16.mxu1 %v9864_v12  ;;  %v10072_v11 = vcombine.high %v3495_v59, %v3499_v1  ;;  %v3487_v22 = vld [vmem:[#allocation7 + $0xd58] sm:$0xff] }
 0x3fb   :  { %6772 = vmatprep.subr.bf16.mxu0 %v9984_v14  ;;  %v10549_v14 = vld [vmem:[#allocation10 + $0xa4] ss:$16 sps:$4 sm:$0xff]   ;;  %v10556_v32 = vld [vmem:[#allocation10 + $0x40] ss:$16 sps:$4 sm:$0xff]  }
 0x3fc   :  { %v3491_v24 = vld [vmem:[#allocation7 + $0xd78] sm:$0xff] }
 0x3fd   :  { %6730 = vmatpush2.bf16.msra.mxu1 %v9863_v26  ;;  %v10071_v26 = vcombine.low %v3495_v59, %v3499_v1  ;;  %v3479_v13 = vld [vmem:[#allocation7 + $0xd18] sm:$0xff] }
 0x3fe   :  { %6773 = vmatpush2.bf16.msra.mxu0 %v9983_v54  ;;  %6731 = vmatprep.subr.bf16.mxu1 %v9856_v30  ;;  %v10547_v30 = vld [vmem:[#allocation10 + $0xa0] ss:$16 sps:$4 sm:$0xff]   ;;  %v10561_v41 = vld [vmem:[#allocation10 + $0x24] ss:$16 sps:$4 sm:$0xff]  }
 0x3ff   :  { %6774 = vmatprep.subr.bf16.mxu0 %v9976_v31  ;;  %v10064_v31 = vcombine.high %v3487_v22, %v3491_v24  ;;  %v3483_v3 = vld [vmem:[#allocation7 + $0xd38] sm:$0xff] }
 0x400   :  { %v3475_v35 = vld [vmem:[#allocation7 + $0xcf8] sm:$0xff]  ;;  %v10055_v61 = vcombine.low %v3479_v13, %v3483_v3 }
 0x401   :  { %6732 = vmatpush2.bf16.msra.mxu1 %v9855_v57  ;;  %v10564_v45 = vld [vmem:[#allocation10 + $0x4] ss:$16 sps:$4 sm:$0xff]  }
 0x402   :  { %6775 = vmatpush2.bf16.msra.mxu0 %v9975_v20  ;;  %6733 = vmatprep.subr.bf16.mxu1 %v9848_v34  ;;  %v10056_v20 = vcombine.high %v3479_v13, %v3483_v3  ;;  %v10555_v34 = vld [vmem:[#allocation10 + $0x64] ss:$16 sps:$4 sm:$0xff]   ;;  %v10571_v3 = vld [vmem:[#allocation10 + $0x1a0] ss:$16 sps:$4 sm:$0xff]  }
 0x403   :  { %6776 = vmatprep.subr.bf16.mxu0 %v9968_v50  ;;  %v3471_v50 = vld [vmem:[#allocation7 + $0xcd8] sm:$0xff] }
 0x404   :  { %v10048_v38 = vcombine.high %v3471_v50, %v3475_v35  ;;  %v3451_v47 = vld [vmem:[#allocation7 + $0xc38] sm:$0xff] }
 0x405   :  { %6734 = vmatpush2.bf16.msra.mxu1 %v9847_v16  ;;  %v10558_v16 = vld [vmem:[#allocation10 + $0x44] ss:$16 sps:$4 sm:$0xff]  }
 0x406   :  { %6777 = vmatpush2.bf16.msra.mxu0 %v9967_v17  ;;  %6735 = vmatprep.subr.bf16.mxu1 %v9840_v36  ;;  %v3463_v17 = vld [vmem:[#allocation7 + $0xc98] sm:$0xff] }
 0x407   :  { %6778 = vmatprep.subr.bf16.mxu0 %v9960_v62  ;;  %v3467_v36 = vld [vmem:[#allocation7 + $0xcb8] sm:$0xff]  ;;  %v10047_v62 = vcombine.low %v3471_v50, %v3475_v35 }
 0x408   :  { %v10040_v39 = vcombine.high %v3463_v17, %v3467_v36  ;;  %v10567_v59 = vld [vmem:[#allocation10 + $0x1e4] ss:$16 sps:$4 sm:$0xff]  }
 0x409   :  { %6736 = vmatpush2.bf16.msra.mxu1 %v9839_v7  ;;  %v3455_v7 = vld [vmem:[#allocation7 + $0xc58] sm:$0xff] }
 0x40a   :  { %6779 = vmatpush2.bf16.msra.mxu0 %v9959_v19  ;;  %6737 = vmatprep.subr.bf16.mxu1 %v9832_v43  ;;  %v3459_v19 = vld [vmem:[#allocation7 + $0xc78] sm:$0xff]  ;;  %v10039_v43 = vcombine.low %v3463_v17, %v3467_v36 }
 0x40b   :  { %8420 = vmatprep.subr.bf16.mxu0 %v10543_v25  ;;  %v10559_v25 = vld [vmem:[#allocation10 + $0x20] ss:$16 sps:$4 sm:$0xff]   ;;  %v10032_v44 = vcombine.high %v3455_v7, %v3459_v19  ;;  %v10579_v35 = vld [vmem:[#allocation10 + $0x164] ss:$16 sps:$4 sm:$0xff]  }
 0x40c   :  { %v3567_v1 = vld [vmem:[#allocation7 + $0xfd8] sm:$0xff] }
 0x40d   :  { %6738 = vmatpush2.bf16.msra.mxu1 %v9831_v46  ;;  %v11554_v29 = vpop.f32.mrf.mxu0  ;;  %6781 = vmatmul.mubr.bf16.vlgmr.msra.gmra.mxu0 %v11472_v9  ;;  %v3447_v46 = vld [vmem:[#allocation7 + $0xc18] sm:$0xff] }
 0x40e   :  { %8421 = vmatpush1.bf16.msra.mxu0 %v10541_v56  ;;  %8452 = vmatprep.mubr.bf16.mxu0 %v11552_v10  ;;  %v10031_v56 = vcombine.low %v3455_v7, %v3459_v19  ;;  %v10582_v36 = vld [vmem:[#allocation10 + $0x144] ss:$16 sps:$4 sm:$0xff]  }
 0x40f   :  { %v11558_v12 = vpop.f32.mrf.mxu0  ;;  %6789 = vmatprep.subr.bf16.mxu1 %v10080_v52  ;;  %8422 = vmatprep.subr.bf16.mxu0 %v10546_v0  ;;  %v10562_v52 = vld [vmem:[#allocation10] ss:$16 sps:$4 sm:$0xff]   ;;  %v10024_v0 = vcombine.high %v3447_v46, %v3451_v47  ;;  %v10585_v19 = vld [vmem:[#allocation10 + $0x124] ss:$16 sps:$4 sm:$0xff]  }
 0x410   :  { %v6495_v40 = vpop.f32.mrf.mxu1  ;;  %6740 = vmatmul.mubr.bf16.vlgmr.msra.gmra.mxu1 %v11434_v4 }
 0x411   :  { %v11562_v53 = vadd.f32 %v6495_v40, %v11545_v58  ;;  %6790 = vmatpush1.bf16.msra.mxu1 %v10079_v48  ;;  %6821 = vmatprep.mubr.bf16.mxu1 %v11487_v6  ;;  %v6540_v9 = vpop.f32.mrf.mxu0  ;;  %v10063_v58 = vcombine.low %v3487_v22, %v3491_v24  ;;  %v10550_v6 = vld [vmem:[#allocation10 + $0x80] ss:$16 sps:$4 sm:$0xff]   ;;  %v10570_v22 = vld [vmem:[#allocation10 + $0x1c4] ss:$16 sps:$4 sm:$0xff]  }
 0x412   :  { %v11565_v54 = vpop.f32.mrf.mxu1  ;;  %8423 = vmatpush1.bf16.msra.mxu0 %v10544_v27  ;;  %6791 = vmatprep.subr.bf16.mxu1 %v10072_v11  ;;  %v3571_v48 = vld [vmem:[#allocation7 + $0xff8] sm:$0xff]  ;;  %v10023_v27 = vcombine.low %v3447_v46, %v3451_v47 }
 0x413   :  { %v6541_v2 = vpop.f32.mrf.mxu0  ;;  %8424 = vmatprep.subr.bf16.mxu0 %v10549_v14  ;;  %v10565_v11 = vld [vmem:[#allocation10 + $0x1e0] ss:$16 sps:$4 sm:$0xff]   ;;  %v10144_v14 = vcombine.high %v3567_v1, %v3571_v48  ;;  %v10143_v9 = vcombine.low %v3567_v1, %v3571_v48  ;;  %v10588_v47 = vld [vmem:[#allocation10 + $0x104] ss:$16 sps:$4 sm:$0xff]   ;;  %vm6832_vm11 = vcmp.gt.f32.partialorder %v11562_v53, 0.0 }
 0x414   :  { %v6499_v4 = vpop.f32.mrf.mxu1  ;;  %v3559_v24 = vld [vmem:[#allocation7 + $0xf98] sm:$0xff] }
 0x415   :  { %6792 = vmatpush1.bf16.msra.mxu1 %v10071_v26  ;;  %v3563_v40 = vld [vmem:[#allocation7 + $0xfb8] sm:$0xff] }
 0x416   :  { %v6500_v57 = vpop.f32.mrf.mxu1  ;;  %8425 = vmatpush1.bf16.msra.mxu0 %v10547_v30  ;;  %6793 = vmatprep.subr.bf16.mxu1 %v10064_v31  ;;  %v10568_v26 = vld [vmem:[#allocation10 + $0x1c0] ss:$16 sps:$4 sm:$0xff]   ;;  %v10136_v30 = vcombine.high %v3559_v24, %v3563_v40  ;;  %v10573_v31 = vld [vmem:[#allocation10 + $0x1a4] ss:$16 sps:$4 sm:$0xff]   ;;  %v10135_v13 = vcombine.low %v3559_v24, %v3563_v40 }
 0x417   :  { %8426 = vmatprep.subr.bf16.mxu0 %v10552_v49  ;;  %v3551_v2 = vld [vmem:[#allocation7 + $0xf58] sm:$0xff] }
 0x418   :  { %v3555_v49 = vld [vmem:[#allocation7 + $0xf78] sm:$0xff] }
 0x419   :  { %6794 = vmatpush1.bf16.msra.mxu1 %v10063_v58  ;;  %v10128_v4 = vcombine.high %v3551_v2, %v3555_v49  ;;  %v10576_v58 = vld [vmem:[#allocation10 + $0x184] ss:$16 sps:$4 sm:$0xff]   ;;  %v10586_v48 = vld [vmem:[#allocation10 + $0x100] ss:$16 sps:$4 sm:$0xff]  }
 0x41a   :  { %8427 = vmatpush1.bf16.msra.mxu0 %v10550_v6  ;;  %6795 = vmatprep.subr.bf16.mxu1 %v10056_v20  ;;  %v3543_v57 = vld [vmem:[#allocation7 + $0xf18] sm:$0xff]  ;;  %v10127_v20 = vcombine.low %v3551_v2, %v3555_v49 }
 0x41b   :  { %8428 = vmatprep.subr.bf16.mxu0 %v10555_v34  ;;  %v3547_v6 = vld [vmem:[#allocation7 + $0xf38] sm:$0xff] }
 0x41c   :  { %v10574_v34 = vld [vmem:[#allocation10 + $0x180] ss:$16 sps:$4 sm:$0xff]   ;;  %v10120_v50 = vcombine.high %v3543_v57, %v3547_v6  ;;  %v10591_v40 = vld [vmem:[#allocation10 + $0x2e4] ss:$16 sps:$4 sm:$0xff]  }
 0x41d   :  { %6796 = vmatpush1.bf16.msra.mxu1 %v10055_v61  ;;  %v3535_v61 = vld [vmem:[#allocation7 + $0xed8] sm:$0xff] }
 0x41e   :  { %8429 = vmatpush1.bf16.msra.mxu0 %v10553_v23  ;;  %6797 = vmatprep.subr.bf16.mxu1 %v10048_v38  ;;  %v3539_v23 = vld [vmem:[#allocation7 + $0xef8] sm:$0xff]  ;;  %v10119_v38 = vcombine.low %v3543_v57, %v3547_v6 }
 0x41f   :  { %8430 = vmatprep.subr.bf16.mxu0 %v10558_v16  ;;  %v10577_v16 = vld [vmem:[#allocation10 + $0x160] ss:$16 sps:$4 sm:$0xff]   ;;  %v10112_v17 = vcombine.high %v3535_v61, %v3539_v23  ;;  %v10594_v49 = vld [vmem:[#allocation10 + $0x2c4] ss:$16 sps:$4 sm:$0xff]  }
 0x420   :  { %v10589_v2 = vld [vmem:[#allocation10 + $0x2e0] ss:$16 sps:$4 sm:$0xff]  }
 0x421   :  { %6798 = vmatpush1.bf16.msra.mxu1 %v10047_v62  ;;  %v3527_v62 = vld [vmem:[#allocation7 + $0xe98] sm:$0xff] }
 0x422   :  { %8431 = vmatpush1.bf16.msra.mxu0 %v10556_v32  ;;  %6799 = vmatprep.subr.bf16.mxu1 %v10040_v39  ;;  %v3531_v32 = vld [vmem:[#allocation7 + $0xeb8] sm:$0xff]  ;;  %v10111_v39 = vcombine.low %v3535_v61, %v3539_v23 }
 0x423   :  { %8432 = vmatprep.subr.bf16.mxu0 %v10561_v41  ;;  %v10580_v41 = vld [vmem:[#allocation10 + $0x140] ss:$16 sps:$4 sm:$0xff]   ;;  %v10104_v7 = vcombine.high %v3527_v62, %v3531_v32  ;;  %v10618_v23 = vld [vmem:[#allocation10 + $0x484] ss:$16 sps:$4 sm:$0xff]  }
 0x425   :  { %6800 = vmatpush1.bf16.msra.mxu1 %v10039_v43  ;;  %v3519_v43 = vld [vmem:[#allocation7 + $0xe58] sm:$0xff] }
 0x426   :  { %8433 = vmatpush1.bf16.msra.mxu0 %v10559_v25  ;;  %6801 = vmatprep.subr.bf16.mxu1 %v10032_v44  ;;  %v3523_v25 = vld [vmem:[#allocation7 + $0xe78] sm:$0xff]  ;;  %v10103_v44 = vcombine.low %v3527_v62, %v3531_v32 }
 0x427   :  { %8434 = vmatprep.subr.bf16.mxu0 %v10564_v45  ;;  %v10583_v45 = vld [vmem:[#allocation10 + $0x120] ss:$16 sps:$4 sm:$0xff]   ;;  %v10096_v46 = vcombine.high %v3519_v43, %v3523_v25  ;;  %v10095_v1 = vcombine.low %v3519_v43, %v3523_v25  ;;  %v10624_v32 = vld [vmem:[#allocation10 + $0x464] ss:$16 sps:$4 sm:$0xff]  }
 0x428   :  { %v10616_v62 = vld [vmem:[#allocation10 + $0x480] ss:$16 sps:$4 sm:$0xff]   ;;  %v10615_v25 = vld [vmem:[#allocation10 + $0x244] ss:$16 sps:$4 sm:$0xff]  }
 0x429   :  { %6802 = vmatpush1.bf16.msra.mxu1 %v10031_v56  ;;  %v3511_v56 = vld [vmem:[#allocation7 + $0xe18] sm:$0xff] }
 0x42a   :  { %8435 = vmatpush1.bf16.msra.mxu0 %v10562_v52  ;;  %6803 = vmatprep.subr.bf16.mxu1 %v10024_v0  ;;  %v3515_v52 = vld [vmem:[#allocation7 + $0xe38] sm:$0xff]  ;;  %v6838_v0 = vmul.f32 0.01, %v11527_v18 }
 0x42b   :  { %8436 = vmatprep.subr.bf16.mxu0 %v10567_v59  ;;  %v6498_v59 = vadd.f32 %v11565_v54, %v11547_v37  ;;  %v10087_v24 = vcombine.low %v3511_v56, %v3515_v52  ;;  %v10598_v37 = vld [vmem:[#allocation10 + $0x4e0] ss:$16 sps:$4 sm:$0xff]  }
 0x42c   :  { %v10607_v43 = vld [vmem:[#allocation10 + $0x260] ss:$16 sps:$4 sm:$0xff]  }
 0x42d   :  { %6804 = vmatpush1.bf16.msra.mxu1 %v10023_v27  ;;  %v10088_v27 = vcombine.high %v3511_v56, %v3515_v52  ;;  %vm6833_vm10 = vcmp.gt.f32.partialorder %v6498_v59, 0.0  ;;  %v10634_v56 = vld [vmem:[#allocation10 + $0x420] ss:$16 sps:$4 sm:$0xff]   ;;  %v10642_v52 = vld [vmem:[#allocation10 + $0x404] ss:$16 sps:$4 sm:$0xff]  }
 0x42e   :  { %8437 = vmatpush2.bf16.msra.mxu0 %v10565_v11  ;;  %6805 = vmatprep.subr.bf16.mxu1 %v10144_v14  ;;  %v10600_v11 = vld [vmem:[#allocation10 + $0x4e4] ss:$16 sps:$4 sm:$0xff]   ;;  %v6846_v14 = vsel %vm6830_vm9, %v11527_v18, %v6838_v0  ;;  %v3597_v18 = vrot.slane %v11533_v63, %v577_v33  ;;  %v10619_v0 = vld [vmem:[#allocation10 + $0x220] ss:$16 sps:$4 sm:$0xff]  }
 0x42f   :  { %8438 = vmatprep.subr.bf16.mxu0 %v10570_v22  ;;  %v6841_v22 = vmul.f32 0.01, %v6498_v59  ;;  %v11572_v54 = vpack.c.bf16 %v6846_v14, %v6846_v14  ;;  %v10646_v14 = vld [vmem:[#allocation10 + $0x5e0] ss:$16 sps:$4 sm:$0xff]  }
 0x430   :  { %v6539_v33 = vadd.f32 %v11558_v12, %v3597_v18  ;;  %v10595_v12 = vld [vmem:[#allocation10 + $0x2a0] ss:$16 sps:$4 sm:$0xff]  }
 0x431   :  { %6806 = vmatpush2.bf16.msra.mxu1 %v10143_v9  ;;  %v3593_v9 = vrot.slane %v11533_v63, %v573_v55  ;;  %v10658_v18 = vld [vmem:[#allocation10 + $0x5a0] ss:$16 sps:$4 sm:$0xff]  }
 0x432   :  { %8439 = vmatpush2.bf16.msra.mxu0 %v10568_v26  ;;  %6807 = vmatprep.subr.bf16.mxu1 %v10136_v30  ;;  %v10606_v26 = vld [vmem:[#allocation10 + $0x4c4] ss:$16 sps:$4 sm:$0xff]   ;;  %v6849_v30 = vsel %vm6833_vm10, %v6498_v59, %v6841_v22 }
 0x433   :  { %8440 = vmatprep.subr.bf16.mxu0 %v10573_v31  ;;  %v11582_v55 = vpack.c.bf16 %v6849_v30, %v6849_v30  ;;  %v10627_v59 = vld [vmem:[#allocation10 + $0x204] ss:$16 sps:$4 sm:$0xff]  }
 0x434   :  { %v10654_v22 = vld [vmem:[#allocation10 + $0x5c4] ss:$16 sps:$4 sm:$0xff]  }
 0x435   :  { %6808 = vmatpush2.bf16.msra.mxu1 %v10135_v13  ;;  %v10604_v13 = vld [vmem:[#allocation10 + $0x4c0] ss:$16 sps:$4 sm:$0xff]   ;;  %v10645_v30 = vld [vmem:[#allocation10 + $0x3a4] ss:$16 sps:$4 sm:$0xff]  }
 0x436   :  { %8441 = vmatpush2.bf16.msra.mxu0 %v10571_v3  ;;  %6809 = vmatprep.subr.bf16.mxu1 %v10128_v4  ;;  %v6537_v3 = vadd.f32 %v11554_v29, %v3593_v9  ;;  %v10610_v29 = vld [vmem:[#allocation10 + $0x4a0] ss:$16 sps:$4 sm:$0xff]   ;;  %v10660_v9 = vld [vmem:[#allocation10 + $0x5a4] ss:$16 sps:$4 sm:$0xff]  }
 0x437   :  { %8442 = vmatprep.subr.bf16.mxu0 %v10576_v58  ;;  %v10612_v58 = vld [vmem:[#allocation10 + $0x4a4] ss:$16 sps:$4 sm:$0xff]  }
 0x439   :  { %6810 = vmatpush2.bf16.msra.mxu1 %v10127_v20  ;;  %v10592_v20 = vld [vmem:[#allocation10 + $0x2c0] ss:$16 sps:$4 sm:$0xff]  }
 0x43a   :  { %8443 = vmatpush2.bf16.msra.mxu0 %v10574_v34  ;;  %6811 = vmatprep.subr.bf16.mxu1 %v10120_v50  ;;  %v10597_v50 = vld [vmem:[#allocation10 + $0x2a4] ss:$16 sps:$4 sm:$0xff]  }
 0x43b   :  { %8444 = vmatprep.subr.bf16.mxu0 %v10579_v35 }
 0x43d   :  { %6812 = vmatpush2.bf16.msra.mxu1 %v10119_v38 }
 0x43e   :  { %8445 = vmatpush2.bf16.msra.mxu0 %v10577_v16  ;;  %6813 = vmatprep.subr.bf16.mxu1 %v10112_v17 }
 0x43f   :  { %8446 = vmatprep.subr.bf16.mxu0 %v10582_v36  ;;  %v10603_v36 = vld [vmem:[#allocation10 + $0x284] ss:$16 sps:$4 sm:$0xff]  }
 0x441   :  { %6814 = vmatpush2.bf16.msra.mxu1 %v10111_v39  ;;  %v10601_v39 = vld [vmem:[#allocation10 + $0x280] ss:$16 sps:$4 sm:$0xff]  }
 0x442   :  { %8447 = vmatpush2.bf16.msra.mxu0 %v10580_v41  ;;  %6815 = vmatprep.subr.bf16.mxu1 %v10104_v7  ;;  %v10609_v41 = vld [vmem:[#allocation10 + $0x264] ss:$16 sps:$4 sm:$0xff]   ;;  %v10622_v7 = vld [vmem:[#allocation10 + $0x460] ss:$16 sps:$4 sm:$0xff]  }
 0x443   :  { %8448 = vmatprep.subr.bf16.mxu0 %v10585_v19  ;;  %v10630_v19 = vld [vmem:[#allocation10 + $0x444] ss:$16 sps:$4 sm:$0xff]  }
 0x445   :  { %6816 = vmatpush2.bf16.msra.mxu1 %v10103_v44  ;;  %v10628_v44 = vld [vmem:[#allocation10 + $0x440] ss:$16 sps:$4 sm:$0xff]  }
 0x446   :  { %8449 = vmatpush2.bf16.msra.mxu0 %v10583_v45  ;;  %6817 = vmatprep.subr.bf16.mxu1 %v10096_v46  ;;  %v10636_v45 = vld [vmem:[#allocation10 + $0x424] ss:$16 sps:$4 sm:$0xff]   ;;  %v10613_v46 = vld [vmem:[#allocation10 + $0x240] ss:$16 sps:$4 sm:$0xff]  }
 0x447   :  { %8450 = vmatprep.subr.bf16.mxu0 %v10588_v47  ;;  %v10621_v47 = vld [vmem:[#allocation10 + $0x224] ss:$16 sps:$4 sm:$0xff]  }
 0x449   :  { %6818 = vmatpush2.bf16.msra.mxu1 %v10095_v1  ;;  %v10640_v1 = vld [vmem:[#allocation10 + $0x400] ss:$16 sps:$4 sm:$0xff]  }
 0x44a   :  { %8451 = vmatpush2.bf16.msra.mxu0 %v10586_v48  ;;  %6819 = vmatprep.subr.bf16.mxu1 %v10088_v27  ;;  %v10648_v48 = vld [vmem:[#allocation10 + $0x5e4] ss:$16 sps:$4 sm:$0xff]   ;;  %v10625_v27 = vld [vmem:[#allocation10 + $0x200] ss:$16 sps:$4 sm:$0xff]  }
 0x44b   :  { %8502 = vmatprep.subr.bf16.mxu0 %v10600_v11  ;;  %v10633_v11 = vld [vmem:[#allocation10 + $0x3e4] ss:$16 sps:$4 sm:$0xff]  }
 0x44d   :  { %6820 = vmatpush2.bf16.msra.mxu1 %v10087_v24  ;;  %v6618_v31 = vpop.f32.mrf.mxu0  ;;  %8453 = vmatmul.mubr.bf16.vlgmr.msra.gmra.mxu0 %v11572_v54  ;;  %v10631_v24 = vld [vmem:[#allocation10 + $0x3e0] ss:$16 sps:$4 sm:$0xff]  }
 0x44e   :  { %8461 = vmatprep.subr.bf16.mxu1 %v10591_v40  ;;  %8503 = vmatpush1.bf16.msra.mxu0 %v10598_v37  ;;  %v10639_v40 = vld [vmem:[#allocation10 + $0x3c4] ss:$16 sps:$4 sm:$0xff]   ;;  %v10652_v37 = vld [vmem:[#allocation10 + $0x5c0] ss:$16 sps:$4 sm:$0xff]  }
 0x44f   :  { %v6620_v4 = vpop.f32.mrf.mxu0  ;;  %8504 = vmatprep.subr.bf16.mxu0 %v10606_v26  ;;  %v10637_v26 = vld [vmem:[#allocation10 + $0x3c0] ss:$16 sps:$4 sm:$0xff]  }
 0x450   :  { %v6577_v57 = vpop.f32.mrf.mxu1  ;;  %6822 = vmatmul.mubr.bf16.vlgmr.msra.gmra.mxu1 %v11490_v8 }
 0x451   :  { %v6578_v63 = vadd.f32 %v6577_v57, %v6537_v3  ;;  %8462 = vmatpush1.bf16.msra.mxu1 %v10589_v2  ;;  %8493 = vmatprep.mubr.bf16.mxu1 %v11582_v55  ;;  %v6622_v6 = vpop.f32.mrf.mxu0  ;;  %v10643_v2 = vld [vmem:[#allocation10 + $0x3a0] ss:$16 sps:$4 sm:$0xff]   ;;  %v10672_v3 = vld [vmem:[#allocation10 + $0x564] ss:$16 sps:$4 sm:$0xff]  }
 0x452   :  { %v6579_v34 = vpop.f32.mrf.mxu1  ;;  %8463 = vmatprep.subr.bf16.mxu1 %v10594_v49  ;;  %8505 = vmatpush1.bf16.msra.mxu0 %v10604_v13  ;;  %v10651_v49 = vld [vmem:[#allocation10 + $0x384] ss:$16 sps:$4 sm:$0xff]   ;;  %v10664_v13 = vld [vmem:[#allocation10 + $0x580] ss:$16 sps:$4 sm:$0xff]  }
 0x453   :  { %v6580_v35 = vadd.f32 %v6579_v34, %v6539_v33  ;;  %v6623_v61 = vpop.f32.mrf.mxu0  ;;  %8506 = vmatprep.subr.bf16.mxu0 %v10612_v58  ;;  %v11587_v38 = vadd.f32 %v6618_v31, %v6578_v63  ;;  %v10666_v31 = vld [vmem:[#allocation10 + $0x584] ss:$16 sps:$4 sm:$0xff]   ;;  %v10670_v57 = vld [vmem:[#allocation10 + $0x560] ss:$16 sps:$4 sm:$0xff]  }
 0x454   :  { %v6581_v8 = vpop.f32.mrf.mxu1  ;;  %v10657_v58 = vld [vmem:[#allocation10 + $0x364] ss:$16 sps:$4 sm:$0xff]   ;;  %v10655_v63 = vld [vmem:[#allocation10 + $0x360] ss:$16 sps:$4 sm:$0xff]  }
 0x455   :  { %8464 = vmatpush1.bf16.msra.mxu1 %v10592_v20  ;;  %v11589_v16 = vadd.f32 %v6620_v4, %v6580_v35  ;;  %v10649_v4 = vld [vmem:[#allocation10 + $0x380] ss:$16 sps:$4 sm:$0xff]   ;;  %v10678_v33 = vld [vmem:[#allocation10 + $0x544] ss:$16 sps:$4 sm:$0xff]  }
 0x456   :  { %v6582_v17 = vpop.f32.mrf.mxu1  ;;  %8465 = vmatprep.subr.bf16.mxu1 %v10597_v50  ;;  %8507 = vmatpush1.bf16.msra.mxu0 %v10610_v29  ;;  %v10663_v6 = vld [vmem:[#allocation10 + $0x344] ss:$16 sps:$4 sm:$0xff]   ;;  %v10676_v20 = vld [vmem:[#allocation10 + $0x540] ss:$16 sps:$4 sm:$0xff]  }
 0x457   :  { %8508 = vmatprep.subr.bf16.mxu0 %v10618_v23  ;;  %v10681_v34 = vld [vmem:[#allocation10 + $0x524] ss:$16 sps:$4 sm:$0xff]   ;;  %v10661_v50 = vld [vmem:[#allocation10 + $0x340] ss:$16 sps:$4 sm:$0xff]   ;;  %v6840_v17 = vmul.f32 0.01, %v11562_v53 }
 0x458   :  { %v10669_v29 = vld [vmem:[#allocation10 + $0x324] ss:$16 sps:$4 sm:$0xff]   ;;  %v10679_v35 = vld [vmem:[#allocation10 + $0x520] ss:$16 sps:$4 sm:$0xff]  }
 0x459   :  { %8466 = vmatpush1.bf16.msra.mxu1 %v10595_v12  ;;  %v10684_v61 = vld [vmem:[#allocation10 + $0x504] ss:$16 sps:$4 sm:$0xff]   ;;  %v10667_v23 = vld [vmem:[#allocation10 + $0x320] ss:$16 sps:$4 sm:$0xff]  }
 0x45a   :  { %8467 = vmatprep.subr.bf16.mxu1 %v10603_v36  ;;  %8509 = vmatpush1.bf16.msra.mxu0 %v10616_v62  ;;  %v10675_v8 = vld [vmem:[#allocation10 + $0x304] ss:$16 sps:$4 sm:$0xff]   ;;  %v10682_v12 = vld [vmem:[#allocation10 + $0x500] ss:$16 sps:$4 sm:$0xff]   ;;  %v10687_v36 = vld [vmem:[#allocation10 + $0xec] ss:$16 sps:$4 sm:$0xff]  }
 0x45b   :  { %8510 = vmatprep.subr.bf16.mxu0 %v10624_v32  ;;  %v10673_v62 = vld [vmem:[#allocation10 + $0x300] ss:$16 sps:$4 sm:$0xff]   ;;  %v10735_v32 = vld [vmem:[#allocation10 + $0x6e4] ss:$16 sps:$4 sm:$0xff]  }
 0x45d   :  { %8468 = vmatpush1.bf16.msra.mxu1 %v10601_v39  ;;  %v6848_v39 = vsel %vm6832_vm11, %v11562_v53, %v6840_v17  ;;  %v10795_v17 = vld [vmem:[#allocation10 + $0x7a4] ss:$16 sps:$4 sm:$0xff]  }
 0x45e   :  { %8469 = vmatprep.subr.bf16.mxu1 %v10609_v41  ;;  %8511 = vmatpush1.bf16.msra.mxu0 %v10622_v7  ;;  %v10733_v7 = vld [vmem:[#allocation10 + $0x6e0] ss:$16 sps:$4 sm:$0xff]  }
 0x45f   :  { %8512 = vmatprep.subr.bf16.mxu0 %v10630_v19  ;;  %v11596_v19 = vpack.c.bf16 %v6848_v39, %v6848_v39  ;;  %v10801_v39 = vld [vmem:[#allocation10 + $0x784] ss:$16 sps:$4 sm:$0xff]  }
 0x461   :  { %8470 = vmatpush1.bf16.msra.mxu1 %v10607_v43  ;;  %v10741_v43 = vld [vmem:[#allocation10 + $0x6c4] ss:$16 sps:$4 sm:$0xff]  }
 0x462   :  { %8471 = vmatprep.subr.bf16.mxu1 %v10615_v25  ;;  %8513 = vmatpush1.bf16.msra.mxu0 %v10628_v44 }
 0x463   :  { %8514 = vmatprep.subr.bf16.mxu0 %v10636_v45 }
 0x465   :  { %8472 = vmatpush1.bf16.msra.mxu1 %v10613_v46 }
 0x466   :  { %8473 = vmatprep.subr.bf16.mxu1 %v10621_v47  ;;  %8515 = vmatpush1.bf16.msra.mxu0 %v10634_v56  ;;  %v10739_v47 = vld [vmem:[#allocation10 + $0x6c0] ss:$16 sps:$4 sm:$0xff]   ;;  %v10747_v56 = vld [vmem:[#allocation10 + $0x6a4] ss:$16 sps:$4 sm:$0xff]  }
 0x467   :  { %8516 = vmatprep.subr.bf16.mxu0 %v10642_v52 }
 0x469   :  { %8474 = vmatpush1.bf16.msra.mxu1 %v10619_v0 }
 0x46a   :  { %8475 = vmatprep.subr.bf16.mxu1 %v10627_v59  ;;  %8517 = vmatpush1.bf16.msra.mxu0 %v10640_v1 }
 0x46b   :  { %8518 = vmatprep.subr.bf16.mxu0 %v10648_v48 }
 0x46d   :  { %8476 = vmatpush1.bf16.msra.mxu1 %v10625_v27  ;;  %v10745_v27 = vld [vmem:[#allocation10 + $0x6a0] ss:$16 sps:$4 sm:$0xff]  }
 0x46e   :  { %8477 = vmatprep.subr.bf16.mxu1 %v10633_v11  ;;  %8519 = vmatpush2.bf16.msra.mxu0 %v10646_v14 }
 0x46f   :  { %8520 = vmatprep.subr.bf16.mxu0 %v10654_v22 }
 0x471   :  { %8478 = vmatpush2.bf16.msra.mxu1 %v10631_v24 }
 0x472   :  { %8479 = vmatprep.subr.bf16.mxu1 %v10639_v40  ;;  %8521 = vmatpush2.bf16.msra.mxu0 %v10652_v37  ;;  %v10685_v40 = vld [vmem:[#allocation10 + $0xe8] ss:$16 sps:$4 sm:$0xff]  }
 0x473   :  { %8522 = vmatprep.subr.bf16.mxu0 %v10660_v9  ;;  %v10690_v9 = vld [vmem:[#allocation10 + $0xcc] ss:$16 sps:$4 sm:$0xff]  }
 0x475   :  { %8480 = vmatpush2.bf16.msra.mxu1 %v10637_v26  ;;  %v10751_v26 = vld [vmem:[#allocation10 + $0x680] ss:$16 sps:$4 sm:$0xff]  }
 0x476   :  { %8481 = vmatprep.subr.bf16.mxu1 %v10645_v30  ;;  %8523 = vmatpush2.bf16.msra.mxu0 %v10658_v18  ;;  %v10688_v30 = vld [vmem:[#allocation10 + $0xc8] ss:$16 sps:$4 sm:$0xff]   ;;  %v10693_v18 = vld [vmem:[#allocation10 + $0xac] ss:$16 sps:$4 sm:$0xff]  }
 0x477   :  { %8524 = vmatprep.subr.bf16.mxu0 %v10666_v31  ;;  %v10757_v31 = vld [vmem:[#allocation10 + $0x660] ss:$16 sps:$4 sm:$0xff]  }
 0x479   :  { %8482 = vmatpush2.bf16.msra.mxu1 %v10643_v2  ;;  %v10765_v2 = vld [vmem:[#allocation10 + $0x644] ss:$16 sps:$4 sm:$0xff]  }
 0x47a   :  { %8483 = vmatprep.subr.bf16.mxu1 %v10651_v49  ;;  %8525 = vmatpush2.bf16.msra.mxu0 %v10664_v13  ;;  %v10691_v49 = vld [vmem:[#allocation10 + $0xa8] ss:$16 sps:$4 sm:$0xff]   ;;  %v10696_v13 = vld [vmem:[#allocation10 + $0x8c] ss:$16 sps:$4 sm:$0xff]  }
 0x47b   :  { %8526 = vmatprep.subr.bf16.mxu0 %v10672_v3  ;;  %v10763_v3 = vld [vmem:[#allocation10 + $0x640] ss:$16 sps:$4 sm:$0xff]  }
 0x47d   :  { %8484 = vmatpush2.bf16.msra.mxu1 %v10649_v4  ;;  %v10771_v4 = vld [vmem:[#allocation10 + $0x624] ss:$16 sps:$4 sm:$0xff]  }
 0x47e   :  { %8485 = vmatprep.subr.bf16.mxu1 %v10657_v58  ;;  %8527 = vmatpush2.bf16.msra.mxu0 %v10670_v57  ;;  %v10694_v58 = vld [vmem:[#allocation10 + $0x88] ss:$16 sps:$4 sm:$0xff]   ;;  %v10699_v57 = vld [vmem:[#allocation10 + $0x6c] ss:$16 sps:$4 sm:$0xff]  }
 0x47f   :  { %8528 = vmatprep.subr.bf16.mxu0 %v10678_v33  ;;  %v10777_v33 = vld [vmem:[#allocation10 + $0x604] ss:$16 sps:$4 sm:$0xff]  }
 0x481   :  { %8486 = vmatpush2.bf16.msra.mxu1 %v10655_v63  ;;  %v10697_v63 = vld [vmem:[#allocation10 + $0x68] ss:$16 sps:$4 sm:$0xff]  }
 0x482   :  { %8487 = vmatprep.subr.bf16.mxu1 %v10663_v6  ;;  %8529 = vmatpush2.bf16.msra.mxu0 %v10676_v20  ;;  %v10702_v6 = vld [vmem:[#allocation10 + $0x4c] ss:$16 sps:$4 sm:$0xff]   ;;  %v10775_v20 = vld [vmem:[#allocation10 + $0x600] ss:$16 sps:$4 sm:$0xff]  }
 0x483   :  { %8530 = vmatprep.subr.bf16.mxu0 %v10681_v34  ;;  %v10783_v34 = vld [vmem:[#allocation10 + $0x7e4] ss:$16 sps:$4 sm:$0xff]  }
 0x485   :  { %8488 = vmatpush2.bf16.msra.mxu1 %v10661_v50  ;;  %v10700_v50 = vld [vmem:[#allocation10 + $0x48] ss:$16 sps:$4 sm:$0xff]  }
 0x486   :  { %8489 = vmatprep.subr.bf16.mxu1 %v10669_v29  ;;  %8531 = vmatpush2.bf16.msra.mxu0 %v10679_v35  ;;  %v10705_v29 = vld [vmem:[#allocation10 + $0x2c] ss:$16 sps:$4 sm:$0xff]   ;;  %v10781_v35 = vld [vmem:[#allocation10 + $0x7e0] ss:$16 sps:$4 sm:$0xff]  }
 0x487   :  { %8532 = vmatprep.subr.bf16.mxu0 %v10684_v61  ;;  %v10789_v61 = vld [vmem:[#allocation10 + $0x7c4] ss:$16 sps:$4 sm:$0xff]  }
 0x489   :  { %8490 = vmatpush2.bf16.msra.mxu1 %v10667_v23  ;;  %v10703_v23 = vld [vmem:[#allocation10 + $0x28] ss:$16 sps:$4 sm:$0xff]  }
 0x48a   :  { %8491 = vmatprep.subr.bf16.mxu1 %v10675_v8  ;;  %8533 = vmatpush2.bf16.msra.mxu0 %v10682_v12  ;;  %v10708_v8 = vld [vmem:[#allocation10 + $0xc] ss:$16 sps:$4 sm:$0xff]   ;;  %v10787_v12 = vld [vmem:[#allocation10 + $0x7c0] ss:$16 sps:$4 sm:$0xff]  }
 0x48b   :  { %8584 = vmatprep.subr.bf16.mxu0 %v10687_v36  ;;  %v10706_v36 = vld [vmem:[#allocation10 + $0x8] ss:$16 sps:$4 sm:$0xff]  }
 0x48d   :  { %8492 = vmatpush2.bf16.msra.mxu1 %v10673_v62  ;;  %v11594_v41 = vpop.f32.mrf.mxu0  ;;  %v10711_v62 = vld [vmem:[#allocation10 + $0x1ec] ss:$16 sps:$4 sm:$0xff]  }
 0x48e   :  { %8543 = vmatprep.subr.bf16.mxu1 %v10735_v32  ;;  %v10793_v32 = vld [vmem:[#allocation10 + $0x7a0] ss:$16 sps:$4 sm:$0xff]  }
 0x48f   :  { %v11598_v25 = vpop.f32.mrf.mxu0 }
 0x490   :  { %v6659_v44 = vpop.f32.mrf.mxu1  ;;  %8494 = vmatmul.mubr.bf16.vlgmr.msra.gmra.mxu1 %v11596_v19 }
 0x491   :  { %v6660_v45 = vadd.f32 %v6659_v44, %v11587_v38  ;;  %v6704_v46 = vpop.f32.mrf.mxu0  ;;  %8544 = vmatpush1.bf16.msra.mxu1 %v10733_v7  ;;  %v10753_v38 = vld [vmem:[#allocation10 + $0x684] ss:$16 sps:$4 sm:$0xff]   ;;  %v10709_v7 = vld [vmem:[#allocation10 + $0x1e8] ss:$16 sps:$4 sm:$0xff]   ;;  %v10799_v44 = vld [vmem:[#allocation10 + $0x780] ss:$16 sps:$4 sm:$0xff]  }
 0x492   :  { %v6661_v53 = vpop.f32.mrf.mxu1  ;;  %8545 = vmatprep.subr.bf16.mxu1 %v10741_v43  ;;  %v10714_v43 = vld [vmem:[#allocation10 + $0x1cc] ss:$16 sps:$4 sm:$0xff]   ;;  %v10712_v46 = vld [vmem:[#allocation10 + $0x1c8] ss:$16 sps:$4 sm:$0xff]  }
 0x493   :  { %vm6834_vm12 = vcmp.gt.f32.partialorder %v6660_v45, 0.0  ;;  %v6842_v52 = vmul.f32 0.01, %v6660_v45  ;;  %v6662_v0 = vadd.f32 %v6661_v53, %v11589_v16  ;;  %v6705_v59 = vpop.f32.mrf.mxu0  ;;  %v10759_v16 = vld [vmem:[#allocation10 + $0x664] ss:$16 sps:$4 sm:$0xff]  }
 0x494   :  { %v6663_v1 = vpop.f32.mrf.mxu1  ;;  %v10805_v53 = vld [vmem:[#allocation10 + $0x760] ss:$16 sps:$4 sm:$0xff]  }
 0x495   :  { %vm6835_vm13 = vcmp.gt.f32.partialorder %v6662_v0, 0.0  ;;  %v6843_v48 = vmul.f32 0.01, %v6662_v0  ;;  %8546 = vmatpush1.bf16.msra.mxu1 %v10739_v47  ;;  %v6850_v11 = vsel %vm6834_vm12, %v6660_v45, %v6842_v52  ;;  %v10807_v45 = vld [vmem:[#allocation10 + $0x764] ss:$16 sps:$4 sm:$0xff]  }
 0x496   :  { %v6664_v14 = vpop.f32.mrf.mxu1  ;;  %8547 = vmatprep.subr.bf16.mxu1 %v10747_v56  ;;  %v11605_v37 = vpack.c.bf16 %v6850_v11, %v6850_v11  ;;  %v10717_v47 = vld [vmem:[#allocation10 + $0x1ac] ss:$16 sps:$4 sm:$0xff]   ;;  %v10813_v56 = vld [vmem:[#allocation10 + $0x744] ss:$16 sps:$4 sm:$0xff]   ;;  %v10715_v52 = vld [vmem:[#allocation10 + $0x1a8] ss:$16 sps:$4 sm:$0xff]  }
 0x497   :  { %v6851_v22 = vsel %vm6835_vm13, %v6662_v0, %v6843_v48  ;;  %v10720_v0 = vld [vmem:[#allocation10 + $0x18c] ss:$16 sps:$4 sm:$0xff]   ;;  %v10811_v59 = vld [vmem:[#allocation10 + $0x740] ss:$16 sps:$4 sm:$0xff]   ;;  %v10819_v1 = vld [vmem:[#allocation10 + $0x724] ss:$16 sps:$4 sm:$0xff]  }
 0x498   :  { %v11603_v24 = vpack.c.bf16 %v6851_v22, %v6851_v22  ;;  %v10718_v48 = vld [vmem:[#allocation10 + $0x188] ss:$16 sps:$4 sm:$0xff]   ;;  %v10817_v11 = vld [vmem:[#allocation10 + $0x720] ss:$16 sps:$4 sm:$0xff]   ;;  %v10825_v14 = vld [vmem:[#allocation10 + $0x704] ss:$16 sps:$4 sm:$0xff]  }
 0x499   :  { %8548 = vmatpush1.bf16.msra.mxu1 %v10745_v27  ;;  %v10723_v27 = vld [vmem:[#allocation10 + $0x16c] ss:$16 sps:$4 sm:$0xff]  }
 0x49a   :  { %8534 = vmatprep.mubr.bf16.mxu0 %v11603_v24  ;;  %8549 = vmatprep.subr.bf16.mxu1 %v10753_v38  ;;  %v10721_v38 = vld [vmem:[#allocation10 + $0x168] ss:$16 sps:$4 sm:$0xff]   ;;  %v10726_v22 = vld [vmem:[#allocation10 + $0x14c] ss:$16 sps:$4 sm:$0xff]  }
 0x49b   :  { %8535 = vmatmul.mubr.bf16.vlgmr.msra.gmra.mxu0 %v11605_v37 }
 0x49c   :  { %8585 = vmatpush1.bf16.msra.mxu0 %v10685_v40  ;;  %8616 = vmatprep.mubr.bf16.mxu0 %v11552_v10  ;;  %v10769_v10 = vld [vmem:[#allocation10 + $0x620] ss:$16 sps:$4 sm:$0xff]  }
 0x49d   :  { %8586 = vmatprep.subr.bf16.mxu0 %v10690_v9  ;;  %8550 = vmatpush1.bf16.msra.mxu1 %v10751_v26  ;;  %v10823_v40 = vld [vmem:[#allocation10 + $0x700] ss:$16 sps:$4 sm:$0xff]   ;;  %v10831_v9 = vld [vmem:[#allocation10 + $0x2ec] ss:$16 sps:$4 sm:$0xff]  }
 0x49e   :  { %8551 = vmatprep.subr.bf16.mxu1 %v10759_v16  ;;  %v10967_v26 = vld [vmem:[#allocation8] sm:$0xff] }
 0x49f   :  { %v3601_v16 = vrot.slane %v10967_v26, %v581_v28 }
 0x4a0   :  { %8587 = vmatpush1.bf16.msra.mxu0 %v10688_v30  ;;  %v10724_v30 = vld [vmem:[#allocation10 + $0x148] ss:$16 sps:$4 sm:$0xff]  }
 0x4a1   :  { %8588 = vmatprep.subr.bf16.mxu0 %v10693_v18  ;;  %8552 = vmatpush1.bf16.msra.mxu1 %v10757_v31  ;;  %v3605_v18 = vrot.slane %v10967_v26, %v585_v15  ;;  %v10828_v26 = vld [vmem:[#allocation10 + $0x50c] ss:$16 sps:$4 sm:$0xff]  }
 0x4a2   :  { %8553 = vmatprep.subr.bf16.mxu1 %v10765_v2  ;;  %v10729_v2 = vld [vmem:[#allocation10 + $0x12c] ss:$16 sps:$4 sm:$0xff]  }
 0x4a4   :  { %8589 = vmatpush1.bf16.msra.mxu0 %v10691_v49  ;;  %v6701_v49 = vadd.f32 %v11594_v41, %v3601_v16  ;;  %v10738_v41 = vld [vmem:[#allocation10 + $0x4ec] ss:$16 sps:$4 sm:$0xff]  }
 0x4a5   :  { %8590 = vmatprep.subr.bf16.mxu0 %v10696_v13  ;;  %8554 = vmatpush1.bf16.msra.mxu1 %v10763_v3 }
 0x4a6   :  { %8555 = vmatprep.subr.bf16.mxu1 %v10771_v4  ;;  %v10727_v4 = vld [vmem:[#allocation10 + $0x128] ss:$16 sps:$4 sm:$0xff]  }
 0x4a8   :  { %8591 = vmatpush1.bf16.msra.mxu0 %v10694_v58  ;;  %v6703_v58 = vadd.f32 %v11598_v25, %v3605_v18  ;;  %v10744_v25 = vld [vmem:[#allocation10 + $0x4cc] ss:$16 sps:$4 sm:$0xff]  }
 0x4a9   :  { %8592 = vmatprep.subr.bf16.mxu0 %v10699_v57  ;;  %8556 = vmatpush1.bf16.msra.mxu1 %v10769_v10  ;;  %v10732_v10 = vld [vmem:[#allocation10 + $0x10c] ss:$16 sps:$4 sm:$0xff]  }
 0x4aa   :  { %8557 = vmatprep.subr.bf16.mxu1 %v10777_v33 }
 0x4ac   :  { %8593 = vmatpush1.bf16.msra.mxu0 %v10697_v63 }
 0x4ad   :  { %8594 = vmatprep.subr.bf16.mxu0 %v10702_v6  ;;  %8558 = vmatpush1.bf16.msra.mxu1 %v10775_v20  ;;  %v10730_v20 = vld [vmem:[#allocation10 + $0x108] ss:$16 sps:$4 sm:$0xff]  }
 0x4ae   :  { %8559 = vmatprep.subr.bf16.mxu1 %v10783_v34 }
 0x4b0   :  { %8595 = vmatpush1.bf16.msra.mxu0 %v10700_v50 }
 0x4b1   :  { %8596 = vmatprep.subr.bf16.mxu0 %v10705_v29  ;;  %8560 = vmatpush2.bf16.msra.mxu1 %v10781_v35  ;;  %v10736_v29 = vld [vmem:[#allocation10 + $0x4e8] ss:$16 sps:$4 sm:$0xff]  }
 0x4b2   :  { %8561 = vmatprep.subr.bf16.mxu1 %v10789_v61  ;;  %v10742_v35 = vld [vmem:[#allocation10 + $0x4c8] ss:$16 sps:$4 sm:$0xff]   ;;  %v10750_v61 = vld [vmem:[#allocation10 + $0x4ac] ss:$16 sps:$4 sm:$0xff]  }
 0x4b4   :  { %8597 = vmatpush1.bf16.msra.mxu0 %v10703_v23  ;;  %v10748_v23 = vld [vmem:[#allocation10 + $0x4a8] ss:$16 sps:$4 sm:$0xff]  }
 0x4b5   :  { %8598 = vmatprep.subr.bf16.mxu0 %v10708_v8  ;;  %8562 = vmatpush2.bf16.msra.mxu1 %v10787_v12  ;;  %v10756_v8 = vld [vmem:[#allocation10 + $0x48c] ss:$16 sps:$4 sm:$0xff]   ;;  %v10754_v12 = vld [vmem:[#allocation10 + $0x488] ss:$16 sps:$4 sm:$0xff]  }
 0x4b6   :  { %8563 = vmatprep.subr.bf16.mxu1 %v10795_v17  ;;  %v10762_v17 = vld [vmem:[#allocation10 + $0x46c] ss:$16 sps:$4 sm:$0xff]  }
 0x4b8   :  { %8599 = vmatpush1.bf16.msra.mxu0 %v10706_v36  ;;  %v10760_v36 = vld [vmem:[#allocation10 + $0x468] ss:$16 sps:$4 sm:$0xff]  }
 0x4b9   :  { %8600 = vmatprep.subr.bf16.mxu0 %v10711_v62  ;;  %8564 = vmatpush2.bf16.msra.mxu1 %v10793_v32  ;;  %v10768_v62 = vld [vmem:[#allocation10 + $0x44c] ss:$16 sps:$4 sm:$0xff]  }
 0x4ba   :  { %8565 = vmatprep.subr.bf16.mxu1 %v10801_v39  ;;  %v10774_v32 = vld [vmem:[#allocation10 + $0x42c] ss:$16 sps:$4 sm:$0xff]  }
 0x4bb   :  { %v10780_v39 = vld [vmem:[#allocation10 + $0x40c] ss:$16 sps:$4 sm:$0xff]  }
 0x4bc   :  { %8601 = vmatpush2.bf16.msra.mxu0 %v10709_v7  ;;  %v10778_v7 = vld [vmem:[#allocation10 + $0x408] ss:$16 sps:$4 sm:$0xff]  }
 0x4bd   :  { %8602 = vmatprep.subr.bf16.mxu0 %v10714_v43  ;;  %8566 = vmatpush2.bf16.msra.mxu1 %v10799_v44  ;;  %v10786_v43 = vld [vmem:[#allocation10 + $0x5ec] ss:$16 sps:$4 sm:$0xff]   ;;  %v10784_v44 = vld [vmem:[#allocation10 + $0x5e8] ss:$16 sps:$4 sm:$0xff]  }
 0x4be   :  { %8567 = vmatprep.subr.bf16.mxu1 %v10807_v45  ;;  %v10792_v45 = vld [vmem:[#allocation10 + $0x5cc] ss:$16 sps:$4 sm:$0xff]  }
 0x4c0   :  { %8603 = vmatpush2.bf16.msra.mxu0 %v10712_v46  ;;  %v10790_v46 = vld [vmem:[#allocation10 + $0x5c8] ss:$16 sps:$4 sm:$0xff]  }
 0x4c1   :  { %8604 = vmatprep.subr.bf16.mxu0 %v10717_v47  ;;  %8568 = vmatpush2.bf16.msra.mxu1 %v10805_v53  ;;  %v10798_v47 = vld [vmem:[#allocation10 + $0x5ac] ss:$16 sps:$4 sm:$0xff]   ;;  %v10796_v53 = vld [vmem:[#allocation10 + $0x5a8] ss:$16 sps:$4 sm:$0xff]  }
 0x4c2   :  { %8569 = vmatprep.subr.bf16.mxu1 %v10813_v56  ;;  %v10804_v56 = vld [vmem:[#allocation10 + $0x58c] ss:$16 sps:$4 sm:$0xff]  }
 0x4c4   :  { %8605 = vmatpush2.bf16.msra.mxu0 %v10715_v52  ;;  %v10802_v52 = vld [vmem:[#allocation10 + $0x588] ss:$16 sps:$4 sm:$0xff]  }
 0x4c5   :  { %8606 = vmatprep.subr.bf16.mxu0 %v10720_v0  ;;  %8570 = vmatpush2.bf16.msra.mxu1 %v10811_v59  ;;  %v10810_v0 = vld [vmem:[#allocation10 + $0x56c] ss:$16 sps:$4 sm:$0xff]   ;;  %v10808_v59 = vld [vmem:[#allocation10 + $0x568] ss:$16 sps:$4 sm:$0xff]  }
 0x4c6   :  { %8571 = vmatprep.subr.bf16.mxu1 %v10819_v1  ;;  %v10816_v1 = vld [vmem:[#allocation10 + $0x54c] ss:$16 sps:$4 sm:$0xff]  }
 0x4c8   :  { %8607 = vmatpush2.bf16.msra.mxu0 %v10718_v48  ;;  %v10814_v48 = vld [vmem:[#allocation10 + $0x548] ss:$16 sps:$4 sm:$0xff]  }
 0x4c9   :  { %8608 = vmatprep.subr.bf16.mxu0 %v10723_v27  ;;  %8572 = vmatpush2.bf16.msra.mxu1 %v10817_v11  ;;  %v10822_v11 = vld [vmem:[#allocation10 + $0x52c] ss:$16 sps:$4 sm:$0xff]  }
 0x4ca   :  { %8573 = vmatprep.subr.bf16.mxu1 %v10825_v14 }
 0x4cc   :  { %8609 = vmatpush2.bf16.msra.mxu0 %v10721_v38 }
 0x4cd   :  { %v6782_v31 = vpop.f32.mrf.mxu0  ;;  %8610 = vmatprep.subr.bf16.mxu0 %v10726_v22  ;;  %8574 = vmatpush2.bf16.msra.mxu1 %v10823_v40  ;;  %v10820_v22 = vld [vmem:[#allocation10 + $0x528] ss:$16 sps:$4 sm:$0xff]  }
 0x4ce   :  { %8625 = vmatprep.subr.bf16.mxu1 %v10831_v9 }
 0x4cf   :  { %v6784_v13 = vpop.f32.mrf.mxu0 }
 0x4d0   :  { %8611 = vmatpush2.bf16.msra.mxu0 %v10724_v30  ;;  %v6741_v3 = vpop.f32.mrf.mxu1 }
 0x4d1   :  { %v6742_v57 = vadd.f32 %v6741_v3, %v6701_v49  ;;  %v6786_v28 = vpop.f32.mrf.mxu0  ;;  %8612 = vmatprep.subr.bf16.mxu0 %v10729_v2  ;;  %v10826_v49 = vld [vmem:[#allocation10 + $0x508] ss:$16 sps:$4 sm:$0xff]  }
 0x4d2   :  { %v6743_v33 = vpop.f32.mrf.mxu1  ;;  %v10829_v28 = vld [vmem:[#allocation10 + $0x2e8] ss:$16 sps:$4 sm:$0xff]  }
 0x4d3   :  { %v6744_v42 = vadd.f32 %v6743_v33, %v6703_v58  ;;  %v6787_v15 = vpop.f32.mrf.mxu0  ;;  %v11616_v63 = vadd.f32 %v6782_v31, %v6742_v57  ;;  %v10834_v33 = vld [vmem:[#allocation10 + $0x2cc] ss:$16 sps:$4 sm:$0xff]  }
 0x4d4   :  { %8613 = vmatpush2.bf16.msra.mxu0 %v10727_v4  ;;  %v6745_v6 = vpop.f32.mrf.mxu1  ;;  %v10837_v15 = vld [vmem:[#allocation10 + $0x2ac] ss:$16 sps:$4 sm:$0xff]  }
 0x4d5   :  { %8614 = vmatprep.subr.bf16.mxu0 %v10732_v10  ;;  %v11618_v34 = vadd.f32 %v6784_v13, %v6744_v42  ;;  %v10832_v42 = vld [vmem:[#allocation10 + $0x2c8] ss:$16 sps:$4 sm:$0xff]   ;;  %v10840_v6 = vld [vmem:[#allocation10 + $0x28c] ss:$16 sps:$4 sm:$0xff]  }
 0x4d6   :  { %v6746_v50 = vpop.f32.mrf.mxu1 }
 0x4d7   :  { %v10838_v50 = vld [vmem:[#allocation10 + $0x288] ss:$16 sps:$4 sm:$0xff]  }
 0x4d8   :  { %8615 = vmatpush2.bf16.msra.mxu0 %v10730_v20  ;;  %v10925_v20 = vld [vmem:[#allocation13 + $0x78] sm:$0xff]  }
 0x4d9   :  { %8666 = vmatprep.subr.bf16.mxu0 %v10738_v41  ;;  %v10926_v41 = vld [vmem:[#allocation13 + $0x38] sm:$0xff]  }
 0x4db   :  { %8617 = vmatmul.mubr.bf16.vlgmr.msra.gmra.mxu0 %v11572_v54  ;;  %v10766_v54 = vld [vmem:[#allocation10 + $0x448] ss:$16 sps:$4 sm:$0xff]  }
 0x4dc   :  { %8667 = vmatpush1.bf16.msra.mxu0 %v10736_v29  ;;  %8698 = vmatprep.mubr.bf16.mxu0 %v11603_v24  ;;  %v10772_v24 = vld [vmem:[#allocation10 + $0x428] ss:$16 sps:$4 sm:$0xff]   ;;  %v10843_v29 = vld [vmem:[#allocation10 + $0x26c] ss:$16 sps:$4 sm:$0xff]  }
 0x4dd   :  { %8668 = vmatprep.subr.bf16.mxu0 %v10744_v25  ;;  %v10929_v25 = vld [vmem:[#allocation13 + $0x68] sm:$0xff]  }
 0x4e0   :  { %8669 = vmatpush1.bf16.msra.mxu0 %v10742_v35  ;;  %v10930_v35 = vld [vmem:[#allocation13 + $0x28] sm:$0xff]  }
 0x4e1   :  { %8670 = vmatprep.subr.bf16.mxu0 %v10750_v61  ;;  %v10846_v61 = vld [vmem:[#allocation10 + $0x24c] ss:$16 sps:$4 sm:$0xff]  }
 0x4e4   :  { %8671 = vmatpush1.bf16.msra.mxu0 %v10748_v23  ;;  %v10931_v23 = vld [vmem:[#allocation13 + $0x60] sm:$0xff]  }
 0x4e5   :  { %8672 = vmatprep.subr.bf16.mxu0 %v10756_v8  ;;  %v10844_v8 = vld [vmem:[#allocation10 + $0x248] ss:$16 sps:$4 sm:$0xff]  }
 0x4e8   :  { %8673 = vmatpush1.bf16.msra.mxu0 %v10754_v12  ;;  %v10932_v12 = vld [vmem:[#allocation13 + $0x20] sm:$0xff]  }
 0x4e9   :  { %8674 = vmatprep.subr.bf16.mxu0 %v10762_v17  ;;  %v10849_v17 = vld [vmem:[#allocation10 + $0x22c] ss:$16 sps:$4 sm:$0xff]  }
 0x4ec   :  { %8675 = vmatpush1.bf16.msra.mxu0 %v10760_v36  ;;  %v10933_v36 = vld [vmem:[#allocation13 + $0x58] sm:$0xff]  }
 0x4ed   :  { %8676 = vmatprep.subr.bf16.mxu0 %v10768_v62  ;;  %v10847_v62 = vld [vmem:[#allocation10 + $0x228] ss:$16 sps:$4 sm:$0xff]  }
 0x4f0   :  { %8677 = vmatpush1.bf16.msra.mxu0 %v10766_v54  ;;  %v10934_v54 = vld [vmem:[#allocation13 + $0x18] sm:$0xff]  }
 0x4f1   :  { %8678 = vmatprep.subr.bf16.mxu0 %v10774_v32  ;;  %v10852_v32 = vld [vmem:[#allocation10 + $0x20c] ss:$16 sps:$4 sm:$0xff]  }
 0x4f4   :  { %8679 = vmatpush1.bf16.msra.mxu0 %v10772_v24  ;;  %v10850_v24 = vld [vmem:[#allocation10 + $0x208] ss:$16 sps:$4 sm:$0xff]  }
 0x4f5   :  { %8680 = vmatprep.subr.bf16.mxu0 %v10780_v39  ;;  %v10855_v39 = vld [vmem:[#allocation10 + $0x3ec] ss:$16 sps:$4 sm:$0xff]  }
 0x4f8   :  { %8681 = vmatpush1.bf16.msra.mxu0 %v10778_v7  ;;  %v10853_v7 = vld [vmem:[#allocation10 + $0x3e8] ss:$16 sps:$4 sm:$0xff]  }
 0x4f9   :  { %8682 = vmatprep.subr.bf16.mxu0 %v10786_v43  ;;  %v10858_v43 = vld [vmem:[#allocation10 + $0x3cc] ss:$16 sps:$4 sm:$0xff]  }
 0x4fc   :  { %8683 = vmatpush2.bf16.msra.mxu0 %v10784_v44  ;;  %v10856_v44 = vld [vmem:[#allocation10 + $0x3c8] ss:$16 sps:$4 sm:$0xff]  }
 0x4fd   :  { %8684 = vmatprep.subr.bf16.mxu0 %v10792_v45  ;;  %v10861_v45 = vld [vmem:[#allocation10 + $0x3ac] ss:$16 sps:$4 sm:$0xff]  }
 0x500   :  { %8685 = vmatpush2.bf16.msra.mxu0 %v10790_v46  ;;  %v10859_v46 = vld [vmem:[#allocation10 + $0x3a8] ss:$16 sps:$4 sm:$0xff]  }
 0x501   :  { %8686 = vmatprep.subr.bf16.mxu0 %v10798_v47  ;;  %v10864_v47 = vld [vmem:[#allocation10 + $0x38c] ss:$16 sps:$4 sm:$0xff]  }
 0x504   :  { %8687 = vmatpush2.bf16.msra.mxu0 %v10796_v53  ;;  %v10862_v53 = vld [vmem:[#allocation10 + $0x388] ss:$16 sps:$4 sm:$0xff]  }
 0x505   :  { %8688 = vmatprep.subr.bf16.mxu0 %v10804_v56  ;;  %v10867_v56 = vld [vmem:[#allocation10 + $0x36c] ss:$16 sps:$4 sm:$0xff]  }
 0x508   :  { %8689 = vmatpush2.bf16.msra.mxu0 %v10802_v52  ;;  %v11636_v52 = vld [vmem:[#allocation11] sm:$0xf] }
 0x509   :  { %8690 = vmatprep.subr.bf16.mxu0 %v10810_v0  ;;  %v10865_v0 = vld [vmem:[#allocation10 + $0x368] ss:$16 sps:$4 sm:$0xff]  }
 0x50c   :  { %8691 = vmatpush2.bf16.msra.mxu0 %v10808_v59  ;;  %v10870_v59 = vld [vmem:[#allocation10 + $0x34c] ss:$16 sps:$4 sm:$0xff]  }
 0x50d   :  { %v11622_v27 = vpop.f32.mrf.mxu0  ;;  %8692 = vmatprep.subr.bf16.mxu0 %v10816_v1  ;;  %v7123_v1 = vrot.slane %v11636_v52, %v11367_v51 }
 0x50f   :  { %v11624_v14 = vpop.f32.mrf.mxu0 }
 0x510   :  { %8693 = vmatpush2.bf16.msra.mxu0 %v10814_v48  ;;  %v6823_v38 = vpop.f32.mrf.mxu1  ;;  %v10868_v48 = vld [vmem:[#allocation10 + $0x348] ss:$16 sps:$4 sm:$0xff]  }
 0x511   :  { %v6824_v40 = vadd.f32 %v6823_v38, %v11616_v63  ;;  %v8458_v9 = vpop.f32.mrf.mxu0  ;;  %8694 = vmatprep.subr.bf16.mxu0 %v10822_v11  ;;  %v10835_v63 = vld [vmem:[#allocation10 + $0x2a8] ss:$16 sps:$4 sm:$0xff]   ;;  %v7127_v11 = vrot.slane %v11636_v52, %v11372_v60  ;;  %v10873_v38 = vld [vmem:[#allocation10 + $0x32c] ss:$16 sps:$4 sm:$0xff]  }
 0x512   :  { %v6825_v16 = vpop.f32.mrf.mxu1  ;;  %v10871_v9 = vld [vmem:[#allocation10 + $0x328] ss:$16 sps:$4 sm:$0xff]  }
 0x513   :  { %vm6836_vm14 = vcmp.gt.f32.partialorder %v6824_v40, 0.0  ;;  %v6844_v30 = vmul.f32 0.01, %v6824_v40  ;;  %v6826_v18 = vadd.f32 %v6825_v16, %v11618_v34  ;;  %v8459_v31 = vpop.f32.mrf.mxu0  ;;  %v10927_v34 = vld [vmem:[#allocation13 + $0x70] sm:$0xff]  }
 0x514   :  { %8695 = vmatpush2.bf16.msra.mxu0 %v10820_v22  ;;  %v6827_v2 = vpop.f32.mrf.mxu1  ;;  %v8455_v22 = vadd.f32 %v11622_v27, %v7123_v1  ;;  %v10882_v27 = vld [vmem:[#allocation10 + $0x6cc] ss:$16 sps:$4 sm:$0xff]  }
 0x515   :  { %vm6837_vm15 = vcmp.gt.f32.partialorder %v6826_v18, 0.0  ;;  %v6845_v13 = vmul.f32 0.01, %v6826_v18  ;;  %8696 = vmatprep.subr.bf16.mxu0 %v10828_v26  ;;  %v6852_v3 = vsel %vm6836_vm14, %v6824_v40, %v6844_v30  ;;  %v8457_v26 = vadd.f32 %v11624_v14, %v7127_v11  ;;  %v10876_v30 = vld [vmem:[#allocation10 + $0x30c] ss:$16 sps:$4 sm:$0xff]  }
 0x516   :  { %v6828_v4 = vpop.f32.mrf.mxu1  ;;  %v11630_v10 = vpack.c.bf16 %v6852_v3, %v6852_v3  ;;  %v10874_v2 = vld [vmem:[#allocation10 + $0x308] ss:$16 sps:$4 sm:$0xff]  }
 0x517   :  { %v6853_v58 = vsel %vm6837_vm15, %v6826_v18, %v6845_v13  ;;  %v10877_v13 = vld [vmem:[#allocation10 + $0x6e8] ss:$16 sps:$4 sm:$0xff]  }
 0x518   :  { %8697 = vmatpush2.bf16.msra.mxu0 %v10826_v49  ;;  %v11628_v57 = vpack.c.bf16 %v6853_v58, %v6853_v58  ;;  %v10879_v49 = vld [vmem:[#allocation10 + $0x6ec] ss:$16 sps:$4 sm:$0xff]   ;;  %v10935_v3 = vld [vmem:[#allocation13 + $0x50] sm:$0xff]  }
 0x519   :  { %10443 = vmatprep.subr.bf16.mxu0 %v10925_v20  ;;  %v10936_v4 = vld [vmem:[#allocation13 + $0x10] sm:$0xff]  }
 0x51a   :  { %8575 = vmatprep.mubr.bf16.mxu1 %v11628_v57 }
 0x51b   :  { %8699 = vmatmul.mubr.bf16.vlgmr.msra.gmra.mxu0 %v11605_v37  ;;  %8576 = vmatmul.mubr.bf16.vlgmr.msra.gmra.mxu1 %v11630_v10  ;;  %v10928_v37 = vld [vmem:[#allocation13 + $0x30] sm:$0xff]  }
 0x51c   :  { %8626 = vmatpush1.bf16.msra.mxu1 %v10829_v28  ;;  %8657 = vmatprep.mubr.bf16.mxu1 %v11582_v55  ;;  %v10841_v55 = vld [vmem:[#allocation10 + $0x268] ss:$16 sps:$4 sm:$0xff]  }
 0x51d   :  { %8627 = vmatprep.subr.bf16.mxu1 %v10834_v33  ;;  %10444 = vmatpush3.bf16.msra.mxu0 %v10926_v41  ;;  %v10880_v28 = vld [vmem:[#allocation10 + $0x6c8] ss:$16 sps:$4 sm:$0xff]  }
 0x51e   :  { %10445 = vmatprep.subr.bf16.mxu0 %v10927_v34  ;;  %v10888_v34 = vld [vmem:[#allocation10 + $0x68c] ss:$16 sps:$4 sm:$0xff]  }
 0x520   :  { %8628 = vmatpush1.bf16.msra.mxu1 %v10832_v42  ;;  %v10885_v42 = vld [vmem:[#allocation10 + $0x6ac] ss:$16 sps:$4 sm:$0xff]  }
 0x521   :  { %8629 = vmatprep.subr.bf16.mxu1 %v10837_v15  ;;  %10446 = vmatpush3.bf16.msra.mxu0 %v10928_v37  ;;  %v10937_v15 = vld [vmem:[#allocation13 + $0x48] sm:$0xff]   ;;  %v10940_v37 = vld [vmem:[#allocation13] sm:$0xff]  }
 0x522   :  { %10447 = vmatprep.subr.bf16.mxu0 %v10929_v25  ;;  %v10889_v25 = vld [vmem:[#allocation10 + $0x668] ss:$16 sps:$4 sm:$0xff]  }
 0x524   :  { %8630 = vmatpush1.bf16.msra.mxu1 %v10835_v63 }
 0x525   :  { %8631 = vmatprep.subr.bf16.mxu1 %v10840_v6  ;;  %10448 = vmatpush3.bf16.msra.mxu0 %v10930_v35  ;;  %v10938_v6 = vld [vmem:[#allocation13 + $0x8] sm:$0xff]   ;;  %v10892_v35 = vld [vmem:[#allocation10 + $0x648] ss:$16 sps:$4 sm:$0xff]  }
 0x526   :  { %10449 = vmatprep.subr.bf16.mxu0 %v10931_v23  ;;  %v10895_v23 = vld [vmem:[#allocation10 + $0x628] ss:$16 sps:$4 sm:$0xff]  }
 0x528   :  { %8632 = vmatpush1.bf16.msra.mxu1 %v10838_v50  ;;  %v10939_v50 = vld [vmem:[#allocation13 + $0x40] sm:$0xff]  }
 0x529   :  { %8633 = vmatprep.subr.bf16.mxu1 %v10843_v29  ;;  %10450 = vmatpush3.bf16.msra.mxu0 %v10932_v12  ;;  %v10891_v29 = vld [vmem:[#allocation10 + $0x66c] ss:$16 sps:$4 sm:$0xff]   ;;  %v10898_v12 = vld [vmem:[#allocation10 + $0x608] ss:$16 sps:$4 sm:$0xff]  }
 0x52a   :  { %10451 = vmatprep.subr.bf16.mxu0 %v10933_v36  ;;  %v10901_v36 = vld [vmem:[#allocation10 + $0x7e8] ss:$16 sps:$4 sm:$0xff]  }
 0x52c   :  { %8634 = vmatpush1.bf16.msra.mxu1 %v10841_v55  ;;  %v10894_v55 = vld [vmem:[#allocation10 + $0x64c] ss:$16 sps:$4 sm:$0xff]  }
 0x52d   :  { %8635 = vmatprep.subr.bf16.mxu1 %v10846_v61  ;;  %10452 = vmatpush3.bf16.msra.mxu0 %v10934_v54  ;;  %v10897_v61 = vld [vmem:[#allocation10 + $0x62c] ss:$16 sps:$4 sm:$0xff]   ;;  %v10904_v54 = vld [vmem:[#allocation10 + $0x7c8] ss:$16 sps:$4 sm:$0xff]  }
 0x52e   :  { %10453 = vmatprep.subr.bf16.mxu0 %v10935_v3 }
 0x530   :  { %8636 = vmatpush1.bf16.msra.mxu1 %v10844_v8  ;;  %v10900_v8 = vld [vmem:[#allocation10 + $0x60c] ss:$16 sps:$4 sm:$0xff]  }
 0x531   :  { %8637 = vmatprep.subr.bf16.mxu1 %v10849_v17  ;;  %10454 = vmatpush3.bf16.msra.mxu0 %v10936_v4  ;;  %v10903_v17 = vld [vmem:[#allocation10 + $0x7ec] ss:$16 sps:$4 sm:$0xff]  }
 0x532   :  { %10455 = vmatprep.subr.bf16.mxu0 %v10937_v15 }
 0x534   :  { %8638 = vmatpush1.bf16.msra.mxu1 %v10847_v62  ;;  %v10906_v62 = vld [vmem:[#allocation10 + $0x7cc] ss:$16 sps:$4 sm:$0xff]  }
 0x535   :  { %8639 = vmatprep.subr.bf16.mxu1 %v10852_v32  ;;  %10456 = vmatpush3.bf16.msra.mxu0 %v10938_v6  ;;  %v10909_v32 = vld [vmem:[#allocation10 + $0x7ac] ss:$16 sps:$4 sm:$0xff]  }
 0x536   :  { %10457 = vmatprep.subr.bf16.mxu0 %v10939_v50  ;;  %v10956_v50 = vld [vmem:[#allocation13 + $0x80] sm:$0xff]  }
 0x538   :  { %8640 = vmatpush1.bf16.msra.mxu1 %v10850_v24  ;;  %v10907_v24 = vld [vmem:[#allocation10 + $0x7a8] ss:$16 sps:$4 sm:$0xff]  }
 0x539   :  { %8641 = vmatprep.subr.bf16.mxu1 %v10855_v39  ;;  %10458 = vmatpush3.bf16.msra.mxu0 %v10940_v37  ;;  %v10912_v39 = vld [vmem:[#allocation10 + $0x78c] ss:$16 sps:$4 sm:$0xff]  }
 0x53c   :  { %8642 = vmatpush2.bf16.msra.mxu1 %v10853_v7  ;;  %v10910_v7 = vld [vmem:[#allocation10 + $0x788] ss:$16 sps:$4 sm:$0xff]  }
 0x53d   :  { %8643 = vmatprep.subr.bf16.mxu1 %v10858_v43  ;;  %v10915_v43 = vld [vmem:[#allocation10 + $0x76c] ss:$16 sps:$4 sm:$0xff]  }
 0x540   :  { %8644 = vmatpush2.bf16.msra.mxu1 %v10856_v44  ;;  %v10913_v44 = vld [vmem:[#allocation10 + $0x768] ss:$16 sps:$4 sm:$0xff]  }
 0x541   :  { %8645 = vmatprep.subr.bf16.mxu1 %v10861_v45  ;;  %v10918_v45 = vld [vmem:[#allocation10 + $0x74c] ss:$16 sps:$4 sm:$0xff]  }
 0x544   :  { %8646 = vmatpush2.bf16.msra.mxu1 %v10859_v46  ;;  %v10916_v46 = vld [vmem:[#allocation10 + $0x748] ss:$16 sps:$4 sm:$0xff]  }
 0x545   :  { %8647 = vmatprep.subr.bf16.mxu1 %v10864_v47  ;;  %v10921_v47 = vld [vmem:[#allocation10 + $0x72c] ss:$16 sps:$4 sm:$0xff]  }
 0x548   :  { %8648 = vmatpush2.bf16.msra.mxu1 %v10862_v53  ;;  %v10919_v53 = vld [vmem:[#allocation10 + $0x728] ss:$16 sps:$4 sm:$0xff]  }
 0x549   :  { %8649 = vmatprep.subr.bf16.mxu1 %v10867_v56  ;;  %v10924_v56 = vld [vmem:[#allocation10 + $0x70c] ss:$16 sps:$4 sm:$0xff]  }
 0x54c   :  { %8650 = vmatpush2.bf16.msra.mxu1 %v10865_v0  ;;  %v10922_v0 = vld [vmem:[#allocation10 + $0x708] ss:$16 sps:$4 sm:$0xff]  }
 0x54d   :  { %8651 = vmatprep.subr.bf16.mxu1 %v10870_v59 }
 0x550   :  { %8652 = vmatpush2.bf16.msra.mxu1 %v10868_v48  ;;  %v8495_v40 = vpop.f32.mrf.mxu1 }
 0x551   :  { %v8496_v16 = vadd.f32 %v8495_v40, %v8455_v22  ;;  %8653 = vmatprep.subr.bf16.mxu1 %v10873_v38  ;;  %v10941_v38 = vld [vmem:[#allocation13 + $0xf8] sm:$0xff]   ;;  %v10943_v40 = vld [vmem:[#allocation13 + $0xf0] sm:$0xff]  }
 0x552   :  { %v8497_v18 = vpop.f32.mrf.mxu1  ;;  %v10942_v22 = vld [vmem:[#allocation13 + $0xb8] sm:$0xff]  }
 0x553   :  { %v8498_v31 = vadd.f32 %v8497_v18, %v8457_v26  ;;  %v10945_v26 = vld [vmem:[#allocation13 + $0xe8] sm:$0xff]   ;;  %v10948_v18 = vld [vmem:[#allocation13 + $0xa0] sm:$0xff]  }
 0x554   :  { %8654 = vmatpush2.bf16.msra.mxu1 %v10871_v9  ;;  %v8499_v51 = vpop.f32.mrf.mxu1  ;;  %v10944_v9 = vld [vmem:[#allocation13 + $0xb0] sm:$0xff]  }
 0x555   :  { %8655 = vmatprep.subr.bf16.mxu1 %v10876_v30  ;;  %v10947_v30 = vld [vmem:[#allocation13 + $0xe0] sm:$0xff]   ;;  %v10951_v51 = vld [vmem:[#allocation13 + $0xd0] sm:$0xff]  }
 0x556   :  { %v8500_v60 = vpop.f32.mrf.mxu1 }
 0x558   :  { %8656 = vmatpush2.bf16.msra.mxu1 %v10874_v2  ;;  %v10952_v2 = vld [vmem:[#allocation13 + $0x90] sm:$0xff]  }
 0x559   :  { %8707 = vmatprep.subr.bf16.mxu1 %v10879_v49 }
 0x55b   :  { %8658 = vmatmul.mubr.bf16.vlgmr.msra.gmra.mxu1 %v11596_v19  ;;  %v8536_v14 = vpop.f32.mrf.mxu0  ;;  %v10883_v19 = vld [vmem:[#allocation10 + $0x6a8] ss:$16 sps:$4 sm:$0xff]  }
 0x55c   :  { %v11645_v58 = vadd.f32 %v8536_v14, %v8496_v16  ;;  %8708 = vmatpush1.bf16.msra.mxu1 %v10877_v13  ;;  %8739 = vmatprep.mubr.bf16.mxu1 %v11628_v57  ;;  %v10886_v57 = vld [vmem:[#allocation10 + $0x688] ss:$16 sps:$4 sm:$0xff]   ;;  %v10946_v16 = vld [vmem:[#allocation13 + $0xa8] sm:$0xff]  }
 0x55d   :  { %v8538_v33 = vpop.f32.mrf.mxu0  ;;  %8709 = vmatprep.subr.bf16.mxu1 %v10882_v27  ;;  %v10953_v27 = vld [vmem:[#allocation13 + $0xc8] sm:$0xff]  }
 0x55e   :  { %v11648_v63 = vadd.f32 %v8538_v33, %v8498_v31  ;;  %v10950_v31 = vld [vmem:[#allocation13 + $0x98] sm:$0xff]   ;;  %v10954_v14 = vld [vmem:[#allocation13 + $0x88] sm:$0xff]  }
 0x55f   :  { %v8540_v20 = vpop.f32.mrf.mxu0 }
 0x560   :  { %8710 = vmatpush1.bf16.msra.mxu1 %v10880_v28  ;;  %v10955_v20 = vld [vmem:[#allocation13 + $0xc0] sm:$0xff]  }
 0x561   :  { %v8541_v41 = vpop.f32.mrf.mxu0  ;;  %8711 = vmatprep.subr.bf16.mxu1 %v10885_v42 }
 0x564   :  { %8712 = vmatpush1.bf16.msra.mxu1 %v10883_v19 }
 0x565   :  { %8713 = vmatprep.subr.bf16.mxu1 %v10888_v34 }
 0x568   :  { %8714 = vmatpush1.bf16.msra.mxu1 %v10886_v57 }
 0x569   :  { %8715 = vmatprep.subr.bf16.mxu1 %v10891_v29 }
 0x56c   :  { %8716 = vmatpush1.bf16.msra.mxu1 %v10889_v25 }
 0x56d   :  { %8717 = vmatprep.subr.bf16.mxu1 %v10894_v55 }
 0x570   :  { %8718 = vmatpush1.bf16.msra.mxu1 %v10892_v35  ;;  %v10957_v35 = vld [vmem:[#allocation16 + $0x38] sm:$0xff]  }
 0x571   :  { %8719 = vmatprep.subr.bf16.mxu1 %v10897_v61  ;;  %v11218_v61 = vmov 0.0  }
 0x572   :  { %10496 = vmatprep.subr.bf16.mxu0 %v11218_v61 }
 0x574   :  { %8720 = vmatpush1.bf16.msra.mxu1 %v10895_v23  ;;  %v10958_v23 = vld [vmem:[#allocation16 + $0x30] sm:$0xff]  }
 0x575   :  { %8721 = vmatprep.subr.bf16.mxu1 %v10900_v8  ;;  %v10959_v8 = vld [vmem:[#allocation16 + $0x28] sm:$0xff]  }
 0x578   :  { %8722 = vmatpush1.bf16.msra.mxu1 %v10898_v12  ;;  %v10960_v12 = vld [vmem:[#allocation16 + $0x20] sm:$0xff]  }
 0x579   :  { %8723 = vmatprep.subr.bf16.mxu1 %v10903_v17  ;;  %v10961_v17 = vld [vmem:[#allocation16 + $0x18] sm:$0xff]  }
 0x57c   :  { %8724 = vmatpush2.bf16.msra.mxu1 %v10901_v36  ;;  %v7131_v36 = vrot.slane %v11636_v52, %v11420_v21 }
 0x57d   :  { %8725 = vmatprep.subr.bf16.mxu1 %v10906_v62  ;;  %v7135_v62 = vrot.slane %v11636_v52, %v11402_v5 }
 0x580   :  { %8726 = vmatpush2.bf16.msra.mxu1 %v10904_v54 }
 0x581   :  { %8727 = vmatprep.subr.bf16.mxu1 %v10909_v32 }
 0x584   :  { %8728 = vmatpush2.bf16.msra.mxu1 %v10907_v24 }
 0x585   :  { %8729 = vmatprep.subr.bf16.mxu1 %v10912_v39 }
 0x588   :  { %8730 = vmatpush2.bf16.msra.mxu1 %v10910_v7 }
 0x589   :  { %8731 = vmatprep.subr.bf16.mxu1 %v10915_v43 }
 0x58c   :  { %8732 = vmatpush2.bf16.msra.mxu1 %v10913_v44 }
 0x58d   :  { %8733 = vmatprep.subr.bf16.mxu1 %v10918_v45 }
 0x590   :  { %8734 = vmatpush2.bf16.msra.mxu1 %v10916_v46 }
 0x591   :  { %8735 = vmatprep.subr.bf16.mxu1 %v10921_v47 }
 0x594   :  { %8736 = vmatpush2.bf16.msra.mxu1 %v10919_v53 }
 0x595   :  { %8737 = vmatprep.subr.bf16.mxu1 %v10924_v56 }
 0x598   :  { %8738 = vmatpush2.bf16.msra.mxu1 %v10922_v0 }
 0x599   :  { %10465 = vmatprep.subr.bf16.mxu1 %v10941_v38 }
 0x59b   :  { %v11650_v59 = vpop.f32.mrf.mxu0  ;;  %8740 = vmatmul.mubr.bf16.vlgmr.msra.gmra.mxu1 %v11630_v10  ;;  %v10949_v10 = vld [vmem:[#allocation13 + $0xd8] sm:$0xff]  }
 0x59c   :  { %10466 = vmatpush3.bf16.msra.mxu1 %v10942_v22  ;;  %v8619_v54 = vadd.f32 %v11650_v59, %v7131_v36 }
 0x59d   :  { %v11653_v1 = vpop.f32.mrf.mxu0  ;;  %10467 = vmatprep.subr.bf16.mxu1 %v10943_v40  ;;  %v10963_v40 = vld [vmem:[#allocation16 + $0x8] sm:$0xff]  }
 0x59e   :  { %v8621_v32 = vadd.f32 %v11653_v1, %v7135_v62  ;;  %v10962_v1 = vld [vmem:[#allocation16 + $0x10] sm:$0xff]  }
 0x59f   :  { %v8622_v48 = vpop.f32.mrf.mxu0 }
 0x5a0   :  { %10468 = vmatpush3.bf16.msra.mxu1 %v10944_v9 }
 0x5a1   :  { %v8623_v11 = vpop.f32.mrf.mxu0  ;;  %10469 = vmatprep.subr.bf16.mxu1 %v10945_v26 }
 0x5a4   :  { %10470 = vmatpush3.bf16.msra.mxu1 %v10946_v16  ;;  %v10964_v16 = vld [vmem:[#allocation16] sm:$0xff]  }
 0x5a5   :  { %10471 = vmatprep.subr.bf16.mxu1 %v10947_v30  ;;  %v10401_v30 = vld [vmem:[#allocation14] ss:$0 sm:$0xff] }
 0x5a8   :  { %10472 = vmatpush3.bf16.msra.mxu1 %v10948_v18 }
 0x5a9   :  { %10473 = vmatprep.subr.bf16.mxu1 %v10949_v10 }
 0x5ac   :  { %10474 = vmatpush3.bf16.msra.mxu1 %v10950_v31 }
 0x5ad   :  { %10475 = vmatprep.subr.bf16.mxu1 %v10951_v51 }
 0x5b0   :  { %10476 = vmatpush3.bf16.msra.mxu1 %v10952_v2 }
 0x5b1   :  { %10477 = vmatprep.subr.bf16.mxu1 %v10953_v27 }
 0x5b4   :  { %10478 = vmatpush3.bf16.msra.mxu1 %v10954_v14 }
 0x5b5   :  { %10479 = vmatprep.subr.bf16.mxu1 %v10955_v20 }
 0x5b8   :  { %10480 = vmatpush3.bf16.msra.mxu1 %v10956_v50 }
 0x5db   :  { %v8700_v49 = vpop.f32.mrf.mxu0  ;;  %v8577_v60 = vpop.f32.mrf.mxu1 }
 0x5dc   :  { %v8578_v13 = vadd.f32 %v8577_v60, %v11645_v58 }
 0x5dd   :  { %v8702_v3 = vpop.f32.mrf.mxu0  ;;  %v8579_v4 = vpop.f32.mrf.mxu1 }
 0x5de   :  { %vm8748_vm0 = vcmp.gt.f32.partialorder %v8578_v13, 0.0  ;;  %v8752_v28 = vmul.f32 0.01, %v8578_v13  ;;  %v8580_v33 = vadd.f32 %v8579_v4, %v11648_v63  ;;  %v10434_v4 = vld [vmem:[#allocation17] ss:$0 sm:$0xff] }
 0x5df   :  { %v8704_v42 = vpop.f32.mrf.mxu0  ;;  %v8581_v15 = vpop.f32.mrf.mxu1 }
 0x5e0   :  { %vm8749_vm1 = vcmp.gt.f32.partialorder %v8580_v33, 0.0  ;;  %v8753_v6 = vmul.f32 0.01, %v8580_v33  ;;  %v8756_v19 = vsel %vm8748_vm0, %v8578_v13, %v8752_v28 }
 0x5e1   :  { %v8705_v41 = vpop.f32.mrf.mxu0  ;;  %v8582_v34 = vpop.f32.mrf.mxu1  ;;  %v8760_v57 = vpack.c.bf16 %v8756_v19, %v8756_v19 }
 0x5e2   :  { %v8757_v58 = vsel %vm8749_vm1, %v8580_v33, %v8753_v6 }
 0x5e3   :  { %v8761_v37 = vpack.c.bf16 %v8757_v58, %v8757_v58 }
 0x5e5   :  { %9059 = vmatprep.mubr.bf16.mxu0 %v8761_v37 }
 0x5e6   :  { %9060 = vmatmul.mubr.bf16.vlgmr.msra.gmra.mxu0 %v8760_v57 }
 0x5e7   :  { %10497 = vmatpush3.bf16.msra.mxu0 %v10957_v35  ;;  %10512 = vmatprep.mubr.msk.bf16.mxu0 %vm11219_vm4, %v11218_v61 }
 0x5e8   :  { %10498 = vmatprep.subr.bf16.mxu0 %v11218_v61 }
 0x5eb   :  { %10499 = vmatpush3.bf16.msra.mxu0 %v10958_v23 }
 0x5ec   :  { %10500 = vmatprep.subr.bf16.mxu0 %v11218_v61 }
 0x5ef   :  { %10501 = vmatpush3.bf16.msra.mxu0 %v10959_v8 }
 0x5f0   :  { %10502 = vmatprep.subr.bf16.mxu0 %v11218_v61 }
 0x5f3   :  { %10503 = vmatpush3.bf16.msra.mxu0 %v10960_v12 }
 0x5f4   :  { %10504 = vmatprep.subr.bf16.mxu0 %v11218_v61 }
 0x5f7   :  { %10505 = vmatpush3.bf16.msra.mxu0 %v10961_v17 }
 0x5f8   :  { %10506 = vmatprep.subr.bf16.mxu0 %v11218_v61 }
 0x5fb   :  { %10507 = vmatpush3.bf16.msra.mxu0 %v10962_v1 }
 0x5fc   :  { %10508 = vmatprep.subr.bf16.mxu0 %v11218_v61 }
 0x5ff   :  { %10509 = vmatpush3.bf16.msra.mxu0 %v10963_v40 }
 0x600   :  { %10510 = vmatprep.subr.bf16.mxu0 %v11218_v61 }
 0x603   :  { %10511 = vmatpush3.bf16.msra.mxu0 %v10964_v16 }
 0x61b   :  { %v8659_v29 = vpop.f32.mrf.mxu1 }
 0x61c   :  { %v8660_v24 = vadd.f32 %v8659_v29, %v8619_v54 }
 0x61d   :  { %v8661_v63 = vpop.f32.mrf.mxu1 }
 0x61e   :  { %v8662_v39 = vadd.f32 %v8661_v63, %v8621_v32  ;;  %v8701_v7 = vadd.f32 %v8700_v49, %v8660_v24 }
 0x61f   :  { %v8663_v25 = vpop.f32.mrf.mxu1 }
 0x620   :  { %v8703_v45 = vadd.f32 %v8702_v3, %v8662_v39 }
 0x621   :  { %v8664_v55 = vpop.f32.mrf.mxu1 }
 0x65b   :  { %v8741_v43 = vpop.f32.mrf.mxu1 }
 0x65c   :  { %v8742_v44 = vadd.f32 %v8741_v43, %v8701_v7 }
 0x65d   :  { %v8743_v46 = vpop.f32.mrf.mxu1 }
 0x65e   :  { %vm8750_vm2 = vcmp.gt.f32.partialorder %v8742_v44, 0.0  ;;  %v8754_v47 = vmul.f32 0.01, %v8742_v44  ;;  %v8744_v53 = vadd.f32 %v8743_v46, %v8703_v45 }
 0x65f   :  { %v8745_v56 = vpop.f32.mrf.mxu1 }
 0x660   :  { %vm8751_vm3 = vcmp.gt.f32.partialorder %v8744_v53, 0.0  ;;  %v8755_v21 = vmul.f32 0.01, %v8744_v53  ;;  %v8758_v0 = vsel %vm8750_vm2, %v8742_v44, %v8754_v47 }
 0x661   :  { %v8746_v48 = vpop.f32.mrf.mxu1  ;;  %v8762_v59 = vpack.c.bf16 %v8758_v0, %v8758_v0 }
 0x662   :  { %v8759_v5 = vsel %vm8751_vm3, %v8744_v53, %v8755_v21 }
 0x663   :  { %v8763_v52 = vpack.c.bf16 %v8759_v5, %v8759_v5 }
 0x665   :  { %9099 = vmatprep.mubr.bf16.mxu1 %v8763_v52 }
 0x666   :  { %9100 = vmatmul.mubr.bf16.vlgmr.msra.gmra.mxu1 %v8762_v59 }
 0x6a6   :  { %v10459_v11 = vpop.f32.mrf.mxu0 }
 0x6a8   :  { %v10460_v38 = vpop.f32.mrf.mxu0 }
 0x6a9   :  { %v10461_v22 = vadd.f32 %v10460_v38, %v10459_v11 }
 0x6aa   :  { %v10462_v9 = vpop.f32.mrf.mxu0 }
 0x6ab   :  { %v9062_v31 = vadd.f32 %v10461_v22, %v10401_v30 }
 0x6ac   :  { %v10463_v26 = vpop.f32.mrf.mxu0 }
 0x726   :  { %v10481_v18 = vpop.f32.mrf.mxu1 }
 0x728   :  { %v10482_v10 = vpop.f32.mrf.mxu1 }
 0x729   :  { %v10483_v51 = vadd.f32 %v10482_v10, %v10481_v18 }
 0x72a   :  { %v10484_v2 = vpop.f32.mrf.mxu1 }
 0x72b   :  { %v9102_v49 = vadd.f32 %v10483_v51, %v9062_v31 }
 0x72c   :  { %v10485_v60 = vpop.f32.mrf.mxu1 }
 0x72d   :  { %vm9107_vm5 = vcmp.gt.f32.partialorder %v9102_v49, 0.0  ;;  %v9108_v13 = vmul.f32 0.01, %v9102_v49 }
 0x72f   :  { %v9109_v27 = vsel %vm9107_vm5, %v9102_v49, %v9108_v13 }
 0x730   :  { %v9110_v3 = vpack.c.bf16 %v9109_v27, %v9109_v27 }
 0x732   :  { %10513 = vmatmul.mubr.bf16.vlgmr.msra.gmra.mxu0 %v9110_v3 }
 0x7f2   :  { %v9216_v14 = vpop.f32.mrf.mxu0 }
 0x7f3   :  { %v9217_v28 = vadd.f32 %v10434_v4, %v9216_v14 }
 0x7f4   :  { %v10514_v33 = vpop.f32.mrf.mxu0 }
 0x7f5   :  { %9222 = vst [vmem:[#allocation19] sm:$0xff] %v9217_v28 }
 0x7f6   :  { %v9219_v42 = vpop.f32.mrf.mxu0 }
 0x7f7   :  { %11179 = shalt.err (!%p11176_p12)
}
 0x7f8   :  { %9232 = dma.vmem_to_hbm [thread:$0]  %s9230_s29, 128, %s11677_s11, [#allocation4]   ;;  %v10515_v15 = vpop.f32.mrf.mxu0 }
 0x7f9   :  { %11200 = dma.done.wait [#allocation4], 128  }
 0x7fa   :  { %11201 = vsyncadd [#allocation4], 4294967168 }
 0x7fb   :  { %9236 = vsyncpa [#allocation3], 1 }
 0x7fc   :  { %9237 = vsyncpa [#allocation6], 1 }
 0x7fd   :  { %9238 = vsyncpa [#allocation9], 1 }
 0x7fe   :  { %9239 = vsyncpa [#allocation12], 1 }
 0x7ff   :  { %9240 = vsyncpa [#allocation15], 1 }
 0x800   :  { %9241 = vsyncpa [#allocation18], 1 }
 0x801   :  { %9242 = vsyncpa [#allocation4], 1 }

</bundles_post_ra>
